<compile_context>
chip_gen: v6e
topology: v6e:2x2x1
jax: 0.10.0
libtpu: 0.0.40
codegen_flags: <defaults>
</compile_context>

<pallas_src>
import numpy as np
import jax
import jax.numpy as jnp
from jax.experimental import pallas as pl
from jax.experimental.pallas import tpu as pltpu


def _pe_kernel(a_ref, b_ref, out_ref):
    """out = sin(A + B) via the angle-addition identity (pure VPU, ~3 ops/elem).

    a_ref  : (C, 2, tw)  [sin(A), cos(A)] for the tw columns of this block
    b_ref  : (C, th, 2)  [sin(B), cos(B)] for the th rows of this block
    out_ref: (C, th, tw) float32
    """
    sa = a_ref[:, 0:1, :]          # (C, 1, tw) -> sublane-broadcast over rows
    ca = a_ref[:, 1:2, :]
    sb = b_ref[:, :, 0:1]          # (C, th, 1) -> lane-broadcast over columns
    cb = b_ref[:, :, 1:2]
    out_ref[...] = sa * cb + ca * sb


def _pick_tiles(h, w, c, target_bytes=4 * 1024 * 1024):
    """Pick (th, tw) for the (C, th, tw) f32 output block.

    tw (lanes): whole rows when an 8-row slab fits the budget, otherwise the
    largest multiple of 128 that does.  th (sublanes): multiple of 8 (or the
    full H) targeting ~target_bytes per output block, capped at ceil(H/2) so
    the H grid axis has >= 2 programs whenever H allows it (keeps both
    TensorCores busy on v7x; ~free on single-core chips).
    """
    if w <= 128 or c * 8 * w * 4 <= target_bytes:
        tw = w
    else:
        tw = min(w, max(128, (target_bytes // (c * 8 * 4)) // 128 * 128))
    th = max(1, target_bytes // (c * tw * 4))
    if h > 8:
        th = min(th, (h + 1) // 2)       # >= 2 grid steps over H when possible
    if th >= h:
        th = h                           # full extent (always a legal block dim)
    else:
        th = max(8, (th // 8) * 8)       # multiple of 8 (partial tail is masked)
    return th, tw


def pe_layer_forward(gaussian_matrix: jax.Array, size) -> jax.Array:
    """Equivalent of pe_layer.forward(size); returns (2*F, H, W) float32."""
    h, w = size
    g = gaussian_matrix.astype(jnp.float32)
    f = g.shape[1]
    c = 2 * f
    two_pi = np.float32(2.0 * np.pi)

    # O(C*(H+W)) precompute (tiny vs the C*H*W output): separable sin/cos
    # tables.  The cos half of the channels is folded in as a +pi/2 phase on A.
    x = 2.0 * ((jnp.arange(w, dtype=jnp.float32) + 0.5) / w) - 1.0      # (W,)
    y = 2.0 * ((jnp.arange(h, dtype=jnp.float32) + 0.5) / h) - 1.0      # (H,)
    gx2 = jnp.concatenate([g[0], g[0]]) * two_pi                        # (C,)
    gy2 = jnp.concatenate([g[1], g[1]]) * two_pi                        # (C,)
    phase = jnp.concatenate([jnp.zeros((f,), jnp.float32),
                             jnp.full((f,), np.pi / 2.0, jnp.float32)]) # (C,)

    a = gx2[:, None] * x[None, :] + phase[:, None]                      # (C, W)
    b = gy2[:, None] * y[None, :]                                       # (C, H)
    a_tab = jnp.stack([jnp.sin(a), jnp.cos(a)], axis=1)                 # (C, 2, W)
    b_tab = jnp.stack([jnp.sin(b), jnp.cos(b)], axis=2)                 # (C, H, 2)

    th, tw = _pick_tiles(h, w, c)
    grid = (pl.cdiv(h, th), pl.cdiv(w, tw))

    return pl.pallas_call(
        _pe_kernel,
        out_shape=jax.ShapeDtypeStruct((c, h, w), jnp.float32),
        grid=grid,
        in_specs=[
            pl.BlockSpec((c, 2, tw), lambda i, j: (0, 0, j)),   # column table
            pl.BlockSpec((c, th, 2), lambda i, j: (0, i, 0)),   # row table
        ],
        out_specs=pl.BlockSpec((c, th, tw), lambda i, j: (0, i, j)),
        compiler_params=pltpu.CompilerParams(
            # independent spatial tiles -> megacore sharding where available
            dimension_semantics=("parallel", "parallel"),
            # >= every generation's scoped default, <= every physical VMEM
            vmem_limit_bytes=32 * 1024 * 1024),
    )(a_tab, b_tab)


def _reference_forward(gaussian_matrix, size):
    """Pure-JAX reference matching the PyTorch module, for a sanity check."""
    h, w = size
    grid = jnp.ones((h, w), jnp.float32)
    y_embed = (jnp.cumsum(grid, axis=0) - 0.5) / h
    x_embed = (jnp.cumsum(grid, axis=1) - 0.5) / w
    coords = jnp.stack([x_embed, y_embed], axis=-1)
    coords = 2 * coords - 1
    coords = jnp.matmul(coords, gaussian_matrix,
                        precision=jax.lax.Precision.HIGHEST)
    coords = 2 * np.pi * coords
    pe = jnp.concatenate([jnp.sin(coords), jnp.cos(coords)], axis=-1)
    return jnp.transpose(pe, (2, 0, 1))


# TODO(synk): forward_with_coords (arbitrary, non-grid point encoding) is not
# kernelized here; only forward(size) is implemented.

if __name__ == "__main__":
    # __init__: positional_encoding_gaussian_matrix = scale * randn((2, num_pos_feats))
    num_pos_feats = 64
    scale = 1.0
    key = jax.random.PRNGKey(0)
    gaussian_matrix = scale * jax.random.normal(
        key, (2, num_pos_feats), dtype=jnp.float32)

    # Small single-ish case, a multi-tile case, and an odd (non-8/128-multiple)
    # case to exercise the masked partial blocks.
    for size in [(16, 16), (128, 128), (30, 200)]:
        pe = jax.block_until_ready(pe_layer_forward(gaussian_matrix, size))
        ref = _reference_forward(gaussian_matrix, size)
        np.testing.assert_allclose(np.asarray(pe), np.asarray(ref),
                                   rtol=1e-5, atol=1e-5)
        assert pe.shape == (2 * num_pos_feats, size[0], size[1])

    print("KERNEL_OK")
</pallas_src>

<mosaic_0001>
module attributes {stable_mosaic.version = 11 : i64} {
  func.func @_pe_kernel(%arg0: i32, %arg1: i32, %arg2: memref<128x2x16xf32, #tpu.memory_space<vmem>>, %arg3: memref<128x8x2xf32, #tpu.memory_space<vmem>>, %arg4: memref<128x8x16xf32, #tpu.memory_space<vmem>>) attributes {dimension_semantics = [#tpu.dimension_semantics<parallel>, #tpu.dimension_semantics<parallel>], iteration_bounds = array<i64: 2, 1>, scalar_prefetch = 0 : i64, scratch_operands = 0 : i64, tpu.core_type = #tpu.core_type<tc>, window_params = [{transform_indices = @transform_0, window_bounds = array<i64: 128, 2, 16>}, {transform_indices = @transform_1, window_bounds = array<i64: 128, 8, 2>}, {transform_indices = @transform_2, window_bounds = array<i64: 128, 8, 16>}]} {
    %c0 = arith.constant 0 : index
    %c0_0 = arith.constant 0 : index
    %c0_1 = arith.constant 0 : index
    %0 = vector.load %arg2[%c0, %c0_0, %c0_1] : memref<128x2x16xf32, #tpu.memory_space<vmem>>, vector<128x1x16xf32>
    %c0_2 = arith.constant 0 : index
    %c1 = arith.constant 1 : index
    %c0_3 = arith.constant 0 : index
    %1 = vector.load %arg2[%c0_2, %c1, %c0_3] : memref<128x2x16xf32, #tpu.memory_space<vmem>>, vector<128x1x16xf32>
    %c0_4 = arith.constant 0 : index
    %c0_5 = arith.constant 0 : index
    %c0_6 = arith.constant 0 : index
    %2 = vector.load %arg3[%c0_4, %c0_5, %c0_6] : memref<128x8x2xf32, #tpu.memory_space<vmem>>, vector<128x8x1xf32>
    %c0_7 = arith.constant 0 : index
    %c0_8 = arith.constant 0 : index
    %c1_9 = arith.constant 1 : index
    %3 = vector.load %arg3[%c0_7, %c0_8, %c1_9] : memref<128x8x2xf32, #tpu.memory_space<vmem>>, vector<128x8x1xf32>
    %4 = vector.broadcast %0 : vector<128x1x16xf32> to vector<128x8x16xf32>
    %5 = vector.broadcast %3 : vector<128x8x1xf32> to vector<128x8x16xf32>
    %6 = arith.mulf %4, %5 : vector<128x8x16xf32>
    %7 = vector.broadcast %1 : vector<128x1x16xf32> to vector<128x8x16xf32>
    %8 = vector.broadcast %2 : vector<128x8x1xf32> to vector<128x8x16xf32>
    %9 = arith.mulf %7, %8 : vector<128x8x16xf32>
    %10 = arith.addf %6, %9 : vector<128x8x16xf32>
    %c0_10 = arith.constant 0 : index
    %c0_11 = arith.constant 0 : index
    %c0_12 = arith.constant 0 : index
    %11 = vector.load %arg4[%c0_10, %c0_11, %c0_12] : memref<128x8x16xf32, #tpu.memory_space<vmem>>, vector<128x8x16xf32>
    tpu.vector_store %arg4[%c0_10, %c0_11, %c0_12], %10 {strides = array<i32>} : memref<128x8x16xf32, #tpu.memory_space<vmem>>, vector<128x8x16xf32>,
    return
  }
  func.func @transform_0(%arg0: i32, %arg1: i32) -> (i32, i32, i32) {
    %c0_i32 = arith.constant 0 : i32
    %c0_i32_0 = arith.constant 0 : i32
    %c0_i32_1 = arith.constant 0 : i32
    return %c0_i32, %c0_i32_0, %arg1 : i32, i32, i32
  }
  func.func @transform_1(%arg0: i32, %arg1: i32) -> (i32, i32, i32) {
    %c0_i32 = arith.constant 0 : i32
    %c0_i32_0 = arith.constant 0 : i32
    %c0_i32_1 = arith.constant 0 : i32
    return %c0_i32, %arg0, %c0_i32_0 : i32, i32, i32
  }
  func.func @transform_2(%arg0: i32, %arg1: i32) -> (i32, i32, i32) {
    %c0_i32 = arith.constant 0 : i32
    %c0_i32_0 = arith.constant 0 : i32
    return %c0_i32, %arg0, %arg1 : i32, i32, i32
  }
}

</mosaic_0001>

<bundles_post_ra>
// kernel: tpu_custom_call.1
= control target key start
LH: loop header
LB: loop body
LE: loop exit
PB: predicated region body
PF: predicated region fallthrough
CT: control target
= control target key end

     0   :  { %s4820_s9 = smov 0   ;;  %s4822_s10 = smov 0   ;;  %s7376_s0 = inlined_call_operand.vmem [shape: f32[128,2,16], index: 0, kind: input, shape index: {}]   ;;  %s7377_s1 = inlined_call_operand.vmem [shape: f32[128,16,2], index: 1, kind: input, shape index: {}]   ;;  %s7378_s2 = inlined_call_operand.vmem [shape: f32[128,16,16], index: 2, kind: output, shape index: {}]  }
   0x1   :  { %s4824_s11 = smov 0   ;;  %s4826_s12 = smov 0  }
   0x2   :  { %s4828_s13 = smov 0  }
   0x3 LB: > { %s24_s14 = sadd.s32 1, %s4797_s12  ;;  %s4417_s15 = sadd.s32 4294967295, %s4801_s13   ;;  %s4801_s13 = sphi %s4828_s13, %s12_s13   ;;  %s4797_s12 = sphi %s4826_s12, %s7689_s12   ;;  %s4793_s11 = sphi %s4824_s11, %s7688_s11   ;;  %s4789_s10 = sphi %s4822_s10, %s7687_s10   ;;  %s4785_s9 = sphi %s4820_s9, %s7686_s9  }
   0x4   : > { %p26_p0 = scmp.ge.s32.totalorder %s24_s14, 2  ;;  %p64_p1 = scmp.ne.s32.totalorder %s4789_s10, %s4785_s9 }
   0x5   : > { %p65_p2 = scmp.eq.s32.totalorder %s4801_s13, 0  ;;  %p96_p4 = scmp.eq.s32.totalorder %s4417_s15, 1 }
   0x6   : > { %s7691_s14 = smov (%p26_p0, %s24_s14), 0  ;;  %s57_s17 = sadd.s32 1, %s4789_s10 }
   0x7   : > { %p66_p3 = por %p65_p2, %p64_p1  ;;  %s54_s16 = ssub.s32 %s4797_s12, %s7691_s14 }
   0x8   : > { %p55_p5 = scmp.eq.s32.totalorder %s54_s16, 0  ;;  %p4855_p6 = por %p96_p4, %p64_p1 }
   0x9   : > { %p4421_p7 = scmp.ge.s32.totalorder %s4801_s13, 2 }
   0xa   : > { %s4860_s19 = scalar_select %p55_p5, %s4789_s10, %s57_s17  }
   0xb   : > { %125 = sbr.rel (%p4421_p7) target bundleno = 84 (0x54), region = 20 }
  0x10   : > { %128 = sbr.rel (!%p66_p3) target bundleno = 84 (0x54), region = 24  ;;  %s130_s20 = sand.u32 (%p66_p3), 1, %s4789_s10  }
  0x11   : > { %s4423_s21 = sshll.u32 (%p66_p3), %s4797_s12, 3  ;;  %s4422_s22 = sshll.u32 (%p66_p3), %s130_s20, 10 }
  0x12   : > { %s4868_s25 = scalar_lea.vmem (%p66_p3), %s7377_s1, %s4423_s21  ;;  %s4873_s26 = scalar_lea.vmem (%p66_p3), [#allocation2], %s4422_s22 }
  0x13   : > { %v417_v0 = vld [vmem:[%s4868_s25] sm:$0xff] (%p66_p3)  ;;  %v419_v1 = vld [vmem:[%s4868_s25 + $0x10] sm:$0xff] (%p66_p3) }
  0x14   : > { %v421_v2 = vld [vmem:[%s4868_s25 + $0x20] sm:$0xff] (%p66_p3)  ;;  %418 = vst [vmem:[%s4873_s26] sm:$0xff] (%p66_p3), %v417_v0  ;;  %420 = vst [vmem:[%s4873_s26 + $0x8] sm:$0xff] (%p66_p3), %v419_v1  ;;  %v423_v3 = vld [vmem:[%s4868_s25 + $0x30] sm:$0xff] (%p66_p3) }
  0x15   : > { %422 = vst [vmem:[%s4873_s26 + $0x10] sm:$0xff] %v421_v2  ;;  %v425_v4 = vld [vmem:[%s4868_s25 + $0x40] sm:$0xff]  ;;  %v427_v5 = vld [vmem:[%s4868_s25 + $0x50] sm:$0xff]  ;;  %424 = vst [vmem:[%s4873_s26 + $0x18] sm:$0xff] %v423_v3 }
  0x16   : > { %426 = vst [vmem:[%s4873_s26 + $0x20] sm:$0xff] %v425_v4  ;;  %428 = vst [vmem:[%s4873_s26 + $0x28] sm:$0xff] %v427_v5  ;;  %v429_v6 = vld [vmem:[%s4868_s25 + $0x60] sm:$0xff]  ;;  %v431_v7 = vld [vmem:[%s4868_s25 + $0x70] sm:$0xff] }
  0x17   : > { %v433_v8 = vld [vmem:[%s4868_s25 + $0x80] sm:$0xff]  ;;  %430 = vst [vmem:[%s4873_s26 + $0x30] sm:$0xff] %v429_v6  ;;  %432 = vst [vmem:[%s4873_s26 + $0x38] sm:$0xff] %v431_v7  ;;  %v435_v9 = vld [vmem:[%s4868_s25 + $0x90] sm:$0xff] }
  0x18   : > { %434 = vst [vmem:[%s4873_s26 + $0x40] sm:$0xff] %v433_v8  ;;  %v437_v10 = vld [vmem:[%s4868_s25 + $0xa0] sm:$0xff]  ;;  %v439_v11 = vld [vmem:[%s4868_s25 + $0xb0] sm:$0xff]  ;;  %436 = vst [vmem:[%s4873_s26 + $0x48] sm:$0xff] %v435_v9 }
  0x19   : > { %438 = vst [vmem:[%s4873_s26 + $0x50] sm:$0xff] %v437_v10  ;;  %440 = vst [vmem:[%s4873_s26 + $0x58] sm:$0xff] %v439_v11  ;;  %v441_v12 = vld [vmem:[%s4868_s25 + $0xc0] sm:$0xff]  ;;  %v443_v13 = vld [vmem:[%s4868_s25 + $0xd0] sm:$0xff] }
  0x1a   : > { %v445_v14 = vld [vmem:[%s4868_s25 + $0xe0] sm:$0xff]  ;;  %442 = vst [vmem:[%s4873_s26 + $0x60] sm:$0xff] %v441_v12  ;;  %444 = vst [vmem:[%s4873_s26 + $0x68] sm:$0xff] %v443_v13  ;;  %v447_v15 = vld [vmem:[%s4868_s25 + $0xf0] sm:$0xff] }
  0x1b   : > { %446 = vst [vmem:[%s4873_s26 + $0x70] sm:$0xff] %v445_v14  ;;  %v449_v16 = vld [vmem:[%s4868_s25 + $0x100] sm:$0xff]  ;;  %v451_v17 = vld [vmem:[%s4868_s25 + $0x110] sm:$0xff]  ;;  %448 = vst [vmem:[%s4873_s26 + $0x78] sm:$0xff] %v447_v15 }
  0x1c   : > { %450 = vst [vmem:[%s4873_s26 + $0x80] sm:$0xff] %v449_v16  ;;  %452 = vst [vmem:[%s4873_s26 + $0x88] sm:$0xff] %v451_v17  ;;  %v453_v18 = vld [vmem:[%s4868_s25 + $0x120] sm:$0xff]  ;;  %v455_v19 = vld [vmem:[%s4868_s25 + $0x130] sm:$0xff] }
  0x1d   : > { %v457_v20 = vld [vmem:[%s4868_s25 + $0x140] sm:$0xff]  ;;  %454 = vst [vmem:[%s4873_s26 + $0x90] sm:$0xff] %v453_v18  ;;  %456 = vst [vmem:[%s4873_s26 + $0x98] sm:$0xff] %v455_v19  ;;  %v459_v21 = vld [vmem:[%s4868_s25 + $0x150] sm:$0xff] }
  0x1e   : > { %458 = vst [vmem:[%s4873_s26 + $0xa0] sm:$0xff] %v457_v20  ;;  %v461_v22 = vld [vmem:[%s4868_s25 + $0x160] sm:$0xff]  ;;  %v463_v23 = vld [vmem:[%s4868_s25 + $0x170] sm:$0xff]  ;;  %460 = vst [vmem:[%s4873_s26 + $0xa8] sm:$0xff] %v459_v21 }
  0x1f   : > { %462 = vst [vmem:[%s4873_s26 + $0xb0] sm:$0xff] %v461_v22  ;;  %464 = vst [vmem:[%s4873_s26 + $0xb8] sm:$0xff] %v463_v23  ;;  %v465_v24 = vld [vmem:[%s4868_s25 + $0x180] sm:$0xff]  ;;  %v467_v25 = vld [vmem:[%s4868_s25 + $0x190] sm:$0xff] }
  0x20   : > { %v469_v26 = vld [vmem:[%s4868_s25 + $0x1a0] sm:$0xff]  ;;  %466 = vst [vmem:[%s4873_s26 + $0xc0] sm:$0xff] %v465_v24  ;;  %468 = vst [vmem:[%s4873_s26 + $0xc8] sm:$0xff] %v467_v25  ;;  %v471_v27 = vld [vmem:[%s4868_s25 + $0x1b0] sm:$0xff] }
  0x21   : > { %470 = vst [vmem:[%s4873_s26 + $0xd0] sm:$0xff] %v469_v26  ;;  %v473_v28 = vld [vmem:[%s4868_s25 + $0x1c0] sm:$0xff]  ;;  %v475_v29 = vld [vmem:[%s4868_s25 + $0x1d0] sm:$0xff]  ;;  %472 = vst [vmem:[%s4873_s26 + $0xd8] sm:$0xff] %v471_v27 }
  0x22   : > { %474 = vst [vmem:[%s4873_s26 + $0xe0] sm:$0xff] %v473_v28  ;;  %476 = vst [vmem:[%s4873_s26 + $0xe8] sm:$0xff] %v475_v29  ;;  %v477_v30 = vld [vmem:[%s4868_s25 + $0x1e0] sm:$0xff]  ;;  %v479_v31 = vld [vmem:[%s4868_s25 + $0x1f0] sm:$0xff] }
  0x23   : > { %v481_v32 = vld [vmem:[%s4868_s25 + $0x200] sm:$0xff]  ;;  %478 = vst [vmem:[%s4873_s26 + $0xf0] sm:$0xff] %v477_v30  ;;  %480 = vst [vmem:[%s4873_s26 + $0xf8] sm:$0xff] %v479_v31  ;;  %v483_v33 = vld [vmem:[%s4868_s25 + $0x210] sm:$0xff] }
  0x24   : > { %482 = vst [vmem:[%s4873_s26 + $0x100] sm:$0xff] %v481_v32  ;;  %v485_v34 = vld [vmem:[%s4868_s25 + $0x220] sm:$0xff]  ;;  %v487_v35 = vld [vmem:[%s4868_s25 + $0x230] sm:$0xff]  ;;  %484 = vst [vmem:[%s4873_s26 + $0x108] sm:$0xff] %v483_v33 }
  0x25   : > { %486 = vst [vmem:[%s4873_s26 + $0x110] sm:$0xff] %v485_v34  ;;  %488 = vst [vmem:[%s4873_s26 + $0x118] sm:$0xff] %v487_v35  ;;  %v489_v36 = vld [vmem:[%s4868_s25 + $0x240] sm:$0xff]  ;;  %v491_v37 = vld [vmem:[%s4868_s25 + $0x250] sm:$0xff] }
  0x26   : > { %v493_v38 = vld [vmem:[%s4868_s25 + $0x260] sm:$0xff]  ;;  %490 = vst [vmem:[%s4873_s26 + $0x120] sm:$0xff] %v489_v36  ;;  %492 = vst [vmem:[%s4873_s26 + $0x128] sm:$0xff] %v491_v37  ;;  %v495_v39 = vld [vmem:[%s4868_s25 + $0x270] sm:$0xff] }
  0x27   : > { %494 = vst [vmem:[%s4873_s26 + $0x130] sm:$0xff] %v493_v38  ;;  %v497_v40 = vld [vmem:[%s4868_s25 + $0x280] sm:$0xff]  ;;  %v499_v41 = vld [vmem:[%s4868_s25 + $0x290] sm:$0xff]  ;;  %496 = vst [vmem:[%s4873_s26 + $0x138] sm:$0xff] %v495_v39 }
  0x28   : > { %498 = vst [vmem:[%s4873_s26 + $0x140] sm:$0xff] %v497_v40  ;;  %500 = vst [vmem:[%s4873_s26 + $0x148] sm:$0xff] %v499_v41  ;;  %v501_v42 = vld [vmem:[%s4868_s25 + $0x2a0] sm:$0xff]  ;;  %v503_v43 = vld [vmem:[%s4868_s25 + $0x2b0] sm:$0xff] }
  0x29   : > { %v505_v44 = vld [vmem:[%s4868_s25 + $0x2c0] sm:$0xff]  ;;  %502 = vst [vmem:[%s4873_s26 + $0x150] sm:$0xff] %v501_v42  ;;  %504 = vst [vmem:[%s4873_s26 + $0x158] sm:$0xff] %v503_v43  ;;  %v507_v45 = vld [vmem:[%s4868_s25 + $0x2d0] sm:$0xff] }
  0x2a   : > { %506 = vst [vmem:[%s4873_s26 + $0x160] sm:$0xff] %v505_v44  ;;  %v509_v46 = vld [vmem:[%s4868_s25 + $0x2e0] sm:$0xff]  ;;  %v511_v47 = vld [vmem:[%s4868_s25 + $0x2f0] sm:$0xff]  ;;  %508 = vst [vmem:[%s4873_s26 + $0x168] sm:$0xff] %v507_v45 }
  0x2b   : > { %510 = vst [vmem:[%s4873_s26 + $0x170] sm:$0xff] %v509_v46  ;;  %512 = vst [vmem:[%s4873_s26 + $0x178] sm:$0xff] %v511_v47  ;;  %v513_v48 = vld [vmem:[%s4868_s25 + $0x300] sm:$0xff]  ;;  %v515_v49 = vld [vmem:[%s4868_s25 + $0x310] sm:$0xff] }
  0x2c   : > { %v517_v50 = vld [vmem:[%s4868_s25 + $0x320] sm:$0xff]  ;;  %514 = vst [vmem:[%s4873_s26 + $0x180] sm:$0xff] %v513_v48  ;;  %516 = vst [vmem:[%s4873_s26 + $0x188] sm:$0xff] %v515_v49  ;;  %v519_v51 = vld [vmem:[%s4868_s25 + $0x330] sm:$0xff] }
  0x2d   : > { %518 = vst [vmem:[%s4873_s26 + $0x190] sm:$0xff] %v517_v50  ;;  %v521_v52 = vld [vmem:[%s4868_s25 + $0x340] sm:$0xff]  ;;  %v523_v53 = vld [vmem:[%s4868_s25 + $0x350] sm:$0xff]  ;;  %520 = vst [vmem:[%s4873_s26 + $0x198] sm:$0xff] %v519_v51 }
  0x2e   : > { %522 = vst [vmem:[%s4873_s26 + $0x1a0] sm:$0xff] %v521_v52  ;;  %524 = vst [vmem:[%s4873_s26 + $0x1a8] sm:$0xff] %v523_v53  ;;  %v525_v54 = vld [vmem:[%s4868_s25 + $0x360] sm:$0xff]  ;;  %v527_v55 = vld [vmem:[%s4868_s25 + $0x370] sm:$0xff] }
  0x2f   : > { %v529_v56 = vld [vmem:[%s4868_s25 + $0x380] sm:$0xff]  ;;  %526 = vst [vmem:[%s4873_s26 + $0x1b0] sm:$0xff] %v525_v54  ;;  %528 = vst [vmem:[%s4873_s26 + $0x1b8] sm:$0xff] %v527_v55  ;;  %v531_v57 = vld [vmem:[%s4868_s25 + $0x390] sm:$0xff] }
  0x30   : > { %530 = vst [vmem:[%s4873_s26 + $0x1c0] sm:$0xff] %v529_v56  ;;  %v533_v58 = vld [vmem:[%s4868_s25 + $0x3a0] sm:$0xff]  ;;  %v535_v59 = vld [vmem:[%s4868_s25 + $0x3b0] sm:$0xff]  ;;  %532 = vst [vmem:[%s4873_s26 + $0x1c8] sm:$0xff] %v531_v57 }
  0x31   : > { %534 = vst [vmem:[%s4873_s26 + $0x1d0] sm:$0xff] %v533_v58  ;;  %536 = vst [vmem:[%s4873_s26 + $0x1d8] sm:$0xff] %v535_v59  ;;  %v537_v60 = vld [vmem:[%s4868_s25 + $0x3c0] sm:$0xff]  ;;  %v539_v61 = vld [vmem:[%s4868_s25 + $0x3d0] sm:$0xff] }
  0x32   : > { %v541_v62 = vld [vmem:[%s4868_s25 + $0x3e0] sm:$0xff]  ;;  %538 = vst [vmem:[%s4873_s26 + $0x1e0] sm:$0xff] %v537_v60  ;;  %540 = vst [vmem:[%s4873_s26 + $0x1e8] sm:$0xff] %v539_v61  ;;  %v543_v63 = vld [vmem:[%s4868_s25 + $0x3f0] sm:$0xff] }
  0x33   : > { %542 = vst [vmem:[%s4873_s26 + $0x1f0] sm:$0xff] %v541_v62  ;;  %v545_v0 = vld [vmem:[%s4868_s25 + $0x400] sm:$0xff]  ;;  %v547_v1 = vld [vmem:[%s4868_s25 + $0x410] sm:$0xff]  ;;  %544 = vst [vmem:[%s4873_s26 + $0x1f8] sm:$0xff] %v543_v63 }
  0x34   : > { %546 = vst [vmem:[%s4873_s26 + $0x200] sm:$0xff] %v545_v0  ;;  %548 = vst [vmem:[%s4873_s26 + $0x208] sm:$0xff] %v547_v1  ;;  %v549_v2 = vld [vmem:[%s4868_s25 + $0x420] sm:$0xff]  ;;  %v551_v3 = vld [vmem:[%s4868_s25 + $0x430] sm:$0xff] }
  0x35   : > { %v553_v4 = vld [vmem:[%s4868_s25 + $0x440] sm:$0xff]  ;;  %550 = vst [vmem:[%s4873_s26 + $0x210] sm:$0xff] %v549_v2  ;;  %552 = vst [vmem:[%s4873_s26 + $0x218] sm:$0xff] %v551_v3  ;;  %v555_v5 = vld [vmem:[%s4868_s25 + $0x450] sm:$0xff] }
  0x36   : > { %554 = vst [vmem:[%s4873_s26 + $0x220] sm:$0xff] %v553_v4  ;;  %v557_v6 = vld [vmem:[%s4868_s25 + $0x460] sm:$0xff]  ;;  %v559_v7 = vld [vmem:[%s4868_s25 + $0x470] sm:$0xff]  ;;  %556 = vst [vmem:[%s4873_s26 + $0x228] sm:$0xff] %v555_v5 }
  0x37   : > { %558 = vst [vmem:[%s4873_s26 + $0x230] sm:$0xff] %v557_v6  ;;  %560 = vst [vmem:[%s4873_s26 + $0x238] sm:$0xff] %v559_v7  ;;  %v561_v8 = vld [vmem:[%s4868_s25 + $0x480] sm:$0xff]  ;;  %v563_v9 = vld [vmem:[%s4868_s25 + $0x490] sm:$0xff] }
  0x38   : > { %v565_v10 = vld [vmem:[%s4868_s25 + $0x4a0] sm:$0xff]  ;;  %562 = vst [vmem:[%s4873_s26 + $0x240] sm:$0xff] %v561_v8  ;;  %564 = vst [vmem:[%s4873_s26 + $0x248] sm:$0xff] %v563_v9  ;;  %v567_v11 = vld [vmem:[%s4868_s25 + $0x4b0] sm:$0xff] }
  0x39   : > { %566 = vst [vmem:[%s4873_s26 + $0x250] sm:$0xff] %v565_v10  ;;  %v569_v12 = vld [vmem:[%s4868_s25 + $0x4c0] sm:$0xff]  ;;  %v571_v13 = vld [vmem:[%s4868_s25 + $0x4d0] sm:$0xff]  ;;  %568 = vst [vmem:[%s4873_s26 + $0x258] sm:$0xff] %v567_v11 }
  0x3a   : > { %570 = vst [vmem:[%s4873_s26 + $0x260] sm:$0xff] %v569_v12  ;;  %572 = vst [vmem:[%s4873_s26 + $0x268] sm:$0xff] %v571_v13  ;;  %v573_v14 = vld [vmem:[%s4868_s25 + $0x4e0] sm:$0xff]  ;;  %v575_v15 = vld [vmem:[%s4868_s25 + $0x4f0] sm:$0xff] }
  0x3b   : > { %v577_v16 = vld [vmem:[%s4868_s25 + $0x500] sm:$0xff]  ;;  %574 = vst [vmem:[%s4873_s26 + $0x270] sm:$0xff] %v573_v14  ;;  %576 = vst [vmem:[%s4873_s26 + $0x278] sm:$0xff] %v575_v15  ;;  %v579_v17 = vld [vmem:[%s4868_s25 + $0x510] sm:$0xff] }
  0x3c   : > { %578 = vst [vmem:[%s4873_s26 + $0x280] sm:$0xff] %v577_v16  ;;  %v581_v18 = vld [vmem:[%s4868_s25 + $0x520] sm:$0xff]  ;;  %v583_v19 = vld [vmem:[%s4868_s25 + $0x530] sm:$0xff]  ;;  %580 = vst [vmem:[%s4873_s26 + $0x288] sm:$0xff] %v579_v17 }
  0x3d   : > { %582 = vst [vmem:[%s4873_s26 + $0x290] sm:$0xff] %v581_v18  ;;  %584 = vst [vmem:[%s4873_s26 + $0x298] sm:$0xff] %v583_v19  ;;  %v585_v20 = vld [vmem:[%s4868_s25 + $0x540] sm:$0xff]  ;;  %v587_v21 = vld [vmem:[%s4868_s25 + $0x550] sm:$0xff] }
  0x3e   : > { %v589_v22 = vld [vmem:[%s4868_s25 + $0x560] sm:$0xff]  ;;  %586 = vst [vmem:[%s4873_s26 + $0x2a0] sm:$0xff] %v585_v20  ;;  %588 = vst [vmem:[%s4873_s26 + $0x2a8] sm:$0xff] %v587_v21  ;;  %v591_v23 = vld [vmem:[%s4868_s25 + $0x570] sm:$0xff] }
  0x3f   : > { %590 = vst [vmem:[%s4873_s26 + $0x2b0] sm:$0xff] %v589_v22  ;;  %v593_v24 = vld [vmem:[%s4868_s25 + $0x580] sm:$0xff]  ;;  %v595_v25 = vld [vmem:[%s4868_s25 + $0x590] sm:$0xff]  ;;  %592 = vst [vmem:[%s4873_s26 + $0x2b8] sm:$0xff] %v591_v23 }
  0x40   : > { %594 = vst [vmem:[%s4873_s26 + $0x2c0] sm:$0xff] %v593_v24  ;;  %596 = vst [vmem:[%s4873_s26 + $0x2c8] sm:$0xff] %v595_v25  ;;  %v597_v26 = vld [vmem:[%s4868_s25 + $0x5a0] sm:$0xff]  ;;  %v599_v27 = vld [vmem:[%s4868_s25 + $0x5b0] sm:$0xff] }
  0x41   : > { %v601_v28 = vld [vmem:[%s4868_s25 + $0x5c0] sm:$0xff]  ;;  %598 = vst [vmem:[%s4873_s26 + $0x2d0] sm:$0xff] %v597_v26  ;;  %600 = vst [vmem:[%s4873_s26 + $0x2d8] sm:$0xff] %v599_v27  ;;  %v603_v29 = vld [vmem:[%s4868_s25 + $0x5d0] sm:$0xff] }
  0x42   : > { %602 = vst [vmem:[%s4873_s26 + $0x2e0] sm:$0xff] %v601_v28  ;;  %v605_v30 = vld [vmem:[%s4868_s25 + $0x5e0] sm:$0xff]  ;;  %v607_v31 = vld [vmem:[%s4868_s25 + $0x5f0] sm:$0xff]  ;;  %604 = vst [vmem:[%s4873_s26 + $0x2e8] sm:$0xff] %v603_v29 }
  0x43   : > { %606 = vst [vmem:[%s4873_s26 + $0x2f0] sm:$0xff] %v605_v30  ;;  %608 = vst [vmem:[%s4873_s26 + $0x2f8] sm:$0xff] %v607_v31  ;;  %v609_v32 = vld [vmem:[%s4868_s25 + $0x600] sm:$0xff]  ;;  %v611_v33 = vld [vmem:[%s4868_s25 + $0x610] sm:$0xff] }
  0x44   : > { %v613_v34 = vld [vmem:[%s4868_s25 + $0x620] sm:$0xff]  ;;  %610 = vst [vmem:[%s4873_s26 + $0x300] sm:$0xff] %v609_v32  ;;  %612 = vst [vmem:[%s4873_s26 + $0x308] sm:$0xff] %v611_v33  ;;  %v615_v35 = vld [vmem:[%s4868_s25 + $0x630] sm:$0xff] }
  0x45   : > { %614 = vst [vmem:[%s4873_s26 + $0x310] sm:$0xff] %v613_v34  ;;  %v617_v36 = vld [vmem:[%s4868_s25 + $0x640] sm:$0xff]  ;;  %v619_v37 = vld [vmem:[%s4868_s25 + $0x650] sm:$0xff]  ;;  %616 = vst [vmem:[%s4873_s26 + $0x318] sm:$0xff] %v615_v35 }
  0x46   : > { %618 = vst [vmem:[%s4873_s26 + $0x320] sm:$0xff] %v617_v36  ;;  %620 = vst [vmem:[%s4873_s26 + $0x328] sm:$0xff] %v619_v37  ;;  %v621_v38 = vld [vmem:[%s4868_s25 + $0x660] sm:$0xff]  ;;  %v623_v39 = vld [vmem:[%s4868_s25 + $0x670] sm:$0xff] }
  0x47   : > { %v625_v40 = vld [vmem:[%s4868_s25 + $0x680] sm:$0xff]  ;;  %622 = vst [vmem:[%s4873_s26 + $0x330] sm:$0xff] %v621_v38  ;;  %624 = vst [vmem:[%s4873_s26 + $0x338] sm:$0xff] %v623_v39  ;;  %v627_v41 = vld [vmem:[%s4868_s25 + $0x690] sm:$0xff] }
  0x48   : > { %626 = vst [vmem:[%s4873_s26 + $0x340] sm:$0xff] %v625_v40  ;;  %v629_v42 = vld [vmem:[%s4868_s25 + $0x6a0] sm:$0xff]  ;;  %v631_v43 = vld [vmem:[%s4868_s25 + $0x6b0] sm:$0xff]  ;;  %628 = vst [vmem:[%s4873_s26 + $0x348] sm:$0xff] %v627_v41 }
  0x49   : > { %630 = vst [vmem:[%s4873_s26 + $0x350] sm:$0xff] %v629_v42  ;;  %632 = vst [vmem:[%s4873_s26 + $0x358] sm:$0xff] %v631_v43  ;;  %v633_v44 = vld [vmem:[%s4868_s25 + $0x6c0] sm:$0xff]  ;;  %v635_v45 = vld [vmem:[%s4868_s25 + $0x6d0] sm:$0xff] }
  0x4a   : > { %v637_v46 = vld [vmem:[%s4868_s25 + $0x6e0] sm:$0xff]  ;;  %634 = vst [vmem:[%s4873_s26 + $0x360] sm:$0xff] %v633_v44  ;;  %636 = vst [vmem:[%s4873_s26 + $0x368] sm:$0xff] %v635_v45  ;;  %v639_v47 = vld [vmem:[%s4868_s25 + $0x6f0] sm:$0xff] }
  0x4b   : > { %638 = vst [vmem:[%s4873_s26 + $0x370] sm:$0xff] %v637_v46  ;;  %v641_v48 = vld [vmem:[%s4868_s25 + $0x700] sm:$0xff]  ;;  %v643_v49 = vld [vmem:[%s4868_s25 + $0x710] sm:$0xff]  ;;  %640 = vst [vmem:[%s4873_s26 + $0x378] sm:$0xff] %v639_v47 }
  0x4c   : > { %642 = vst [vmem:[%s4873_s26 + $0x380] sm:$0xff] %v641_v48  ;;  %644 = vst [vmem:[%s4873_s26 + $0x388] sm:$0xff] %v643_v49  ;;  %v645_v50 = vld [vmem:[%s4868_s25 + $0x720] sm:$0xff]  ;;  %v647_v51 = vld [vmem:[%s4868_s25 + $0x730] sm:$0xff] }
  0x4d   : > { %v649_v52 = vld [vmem:[%s4868_s25 + $0x740] sm:$0xff]  ;;  %646 = vst [vmem:[%s4873_s26 + $0x390] sm:$0xff] %v645_v50  ;;  %648 = vst [vmem:[%s4873_s26 + $0x398] sm:$0xff] %v647_v51  ;;  %v651_v53 = vld [vmem:[%s4868_s25 + $0x750] sm:$0xff] }
  0x4e   : > { %650 = vst [vmem:[%s4873_s26 + $0x3a0] sm:$0xff] %v649_v52  ;;  %v653_v54 = vld [vmem:[%s4868_s25 + $0x760] sm:$0xff]  ;;  %v655_v55 = vld [vmem:[%s4868_s25 + $0x770] sm:$0xff]  ;;  %652 = vst [vmem:[%s4873_s26 + $0x3a8] sm:$0xff] %v651_v53 }
  0x4f   : > { %654 = vst [vmem:[%s4873_s26 + $0x3b0] sm:$0xff] %v653_v54  ;;  %656 = vst [vmem:[%s4873_s26 + $0x3b8] sm:$0xff] %v655_v55  ;;  %v657_v56 = vld [vmem:[%s4868_s25 + $0x780] sm:$0xff]  ;;  %v659_v57 = vld [vmem:[%s4868_s25 + $0x790] sm:$0xff] }
  0x50   : > { %v661_v58 = vld [vmem:[%s4868_s25 + $0x7a0] sm:$0xff]  ;;  %658 = vst [vmem:[%s4873_s26 + $0x3c0] sm:$0xff] %v657_v56  ;;  %660 = vst [vmem:[%s4873_s26 + $0x3c8] sm:$0xff] %v659_v57  ;;  %v663_v59 = vld [vmem:[%s4868_s25 + $0x7b0] sm:$0xff] }
  0x51   : > { %662 = vst [vmem:[%s4873_s26 + $0x3d0] sm:$0xff] %v661_v58  ;;  %v665_v60 = vld [vmem:[%s4868_s25 + $0x7c0] sm:$0xff]  ;;  %v667_v61 = vld [vmem:[%s4868_s25 + $0x7d0] sm:$0xff]  ;;  %664 = vst [vmem:[%s4873_s26 + $0x3d8] sm:$0xff] %v663_v59 }
  0x52   : > { %666 = vst [vmem:[%s4873_s26 + $0x3e0] sm:$0xff] %v665_v60  ;;  %668 = vst [vmem:[%s4873_s26 + $0x3e8] sm:$0xff] %v667_v61  ;;  %v669_v62 = vld [vmem:[%s4868_s25 + $0x7e0] sm:$0xff]  ;;  %v671_v63 = vld [vmem:[%s4868_s25 + $0x7f0] sm:$0xff] }
  0x53   : > { %670 = vst [vmem:[%s4873_s26 + $0x3f0] sm:$0xff] %v669_v62  ;;  %672 = vst [vmem:[%s4873_s26 + $0x3f8] sm:$0xff] %v671_v63 }
  0x54 PF: > { %p4424_p8 = scmp.ge.s32.totalorder %s4801_s13, 1  ;;  %p677_p9 = scmp.lt.s32.totalorder %s4801_s13, 3 }
  0x56   : > { %p678_p10 = pnand %p4424_p8, %p677_p9 }
  0x58   : > { %681 = sbr.rel (%p678_p10) target bundleno = 777 (0x309), region = 62 }
  0x5d   : > { %s684_s27 = sand.u32 1, %s4785_s9   ;;  %v4803_v0 = vmov 1   ;;  %vm3656_vm0 = vcmask 130048  }
  0x5e   : > { %4730 = vset.pattern.permute.xlu1 %v4803_v0  ;;  %4729 = vset.pattern.permute.xlu0 %v4803_v0  ;;  %s5131_s28 = sshll.u32 %s684_s27, 10 }
  0x5f   : > { %s5134_s29 = scalar_lea.vmem [#allocation2], %s5131_s28  ;;  %s5910_s27 = scalar_lea.vmem [#allocation3], %s5131_s28 }
  0x60   : > { %v5137_v1 = vld [vmem:[%s5134_s29 + $0x10] sm:$0xff]  ;;  %v5140_v2 = vld [vmem:[%s5134_s29] sm:$0xff]  ;;  %v5145_v3 = vld [vmem:[%s5134_s29 + $0x18] sm:$0xff] }
  0x61   : > { %1620 = vperm.xlu1 %4730, %v5137_v1   ;;  %1610 = vperm.xlu0 %4729, %v5140_v2   ;;  %v5148_v4 = vld [vmem:[%s5134_s29 + $0x8] sm:$0xff]  ;;  %v5156_v6 = vld [vmem:[%s5134_s29 + $0x20] sm:$0xff]  ;;  %v5161_v7 = vld [vmem:[%s5134_s29 + $0x38] sm:$0xff] }
  0x62   : > { %v5153_v5 = vld [vmem:[%s5134_s29 + $0x28] sm:$0xff]  ;;  %v5164_v8 = vld [vmem:[%s5134_s29 + $0x30] sm:$0xff]  ;;  %v5172_v10 = vld [vmem:[%s5134_s29 + $0x40] sm:$0xff] }
  0x63   : > { %v5169_v9 = vld [vmem:[%s5134_s29 + $0x48] sm:$0xff]  ;;  %v5177_v11 = vld [vmem:[%s5134_s29 + $0x58] sm:$0xff]  ;;  %v5180_v12 = vld [vmem:[%s5134_s29 + $0x50] sm:$0xff] }
  0x64   : > { %v5185_v13 = vld [vmem:[%s5134_s29 + $0x68] sm:$0xff]  ;;  %v5188_v14 = vld [vmem:[%s5134_s29 + $0x60] sm:$0xff]  ;;  %v5193_v15 = vld [vmem:[%s5134_s29 + $0x78] sm:$0xff] }
  0x65   : > { %1625 = vperm.xlu1 %4730, %v5145_v3   ;;  %1615 = vperm.xlu0 %4729, %v5148_v4   ;;  %v5196_v16 = vld [vmem:[%s5134_s29 + $0x70] sm:$0xff]  ;;  %v5201_v17 = vld [vmem:[%s5134_s29 + $0x88] sm:$0xff]  ;;  %v5204_v18 = vld [vmem:[%s5134_s29 + $0x80] sm:$0xff] }
  0x66   : > { %v5209_v19 = vld [vmem:[%s5134_s29 + $0x98] sm:$0xff]  ;;  %v5212_v20 = vld [vmem:[%s5134_s29 + $0x90] sm:$0xff]  ;;  %v5217_v21 = vld [vmem:[%s5134_s29 + $0xa8] sm:$0xff] }
  0x67   : > { %v5220_v22 = vld [vmem:[%s5134_s29 + $0xa0] sm:$0xff]  ;;  %v5225_v23 = vld [vmem:[%s5134_s29 + $0xb8] sm:$0xff]  ;;  %v5228_v24 = vld [vmem:[%s5134_s29 + $0xb0] sm:$0xff] }
  0x68   : > { %v5233_v25 = vld [vmem:[%s5134_s29 + $0xc8] sm:$0xff]  ;;  %v5236_v26 = vld [vmem:[%s5134_s29 + $0xc0] sm:$0xff]  ;;  %v5241_v27 = vld [vmem:[%s5134_s29 + $0xd8] sm:$0xff] }
  0x69   : > { %1635 = vperm.xlu1 %4730, %v5153_v5   ;;  %1630 = vperm.xlu0 %4729, %v5156_v6   ;;  %v5244_v28 = vld [vmem:[%s5134_s29 + $0xd0] sm:$0xff]  ;;  %v5249_v29 = vld [vmem:[%s5134_s29 + $0xe8] sm:$0xff]  ;;  %v5252_v30 = vld [vmem:[%s5134_s29 + $0xe0] sm:$0xff] }
  0x6a   : > { %v5257_v31 = vld [vmem:[%s5134_s29 + $0xf8] sm:$0xff]  ;;  %v5260_v32 = vld [vmem:[%s5134_s29 + $0xf0] sm:$0xff]  ;;  %v5265_v33 = vld [vmem:[%s5134_s29 + $0x108] sm:$0xff] }
  0x6b   : > { %v5268_v34 = vld [vmem:[%s5134_s29 + $0x100] sm:$0xff]  ;;  %v5273_v35 = vld [vmem:[%s5134_s29 + $0x118] sm:$0xff]  ;;  %v5276_v36 = vld [vmem:[%s5134_s29 + $0x110] sm:$0xff] }
  0x6c   : > { %v5281_v37 = vld [vmem:[%s5134_s29 + $0x128] sm:$0xff]  ;;  %v5284_v38 = vld [vmem:[%s5134_s29 + $0x120] sm:$0xff]  ;;  %v5289_v39 = vld [vmem:[%s5134_s29 + $0x138] sm:$0xff] }
  0x6d   : > { %1645 = vperm.xlu1 %4730, %v5161_v7   ;;  %1640 = vperm.xlu0 %4729, %v5164_v8   ;;  %v5292_v40 = vld [vmem:[%s5134_s29 + $0x130] sm:$0xff]  ;;  %v5297_v41 = vld [vmem:[%s5134_s29 + $0x148] sm:$0xff]  ;;  %v5300_v42 = vld [vmem:[%s5134_s29 + $0x140] sm:$0xff] }
  0x6e   : > { %v5305_v43 = vld [vmem:[%s5134_s29 + $0x158] sm:$0xff]  ;;  %v5308_v44 = vld [vmem:[%s5134_s29 + $0x150] sm:$0xff]  ;;  %v5313_v45 = vld [vmem:[%s5134_s29 + $0x168] sm:$0xff] }
  0x6f   : > { %v5316_v46 = vld [vmem:[%s5134_s29 + $0x160] sm:$0xff]  ;;  %v5321_v47 = vld [vmem:[%s5134_s29 + $0x178] sm:$0xff]  ;;  %v5324_v48 = vld [vmem:[%s5134_s29 + $0x170] sm:$0xff] }
  0x70   : > { %v5329_v49 = vld [vmem:[%s5134_s29 + $0x188] sm:$0xff]  ;;  %v5332_v50 = vld [vmem:[%s5134_s29 + $0x180] sm:$0xff]  ;;  %v5337_v51 = vld [vmem:[%s5134_s29 + $0x198] sm:$0xff] }
  0x71   : > { %1655 = vperm.xlu1 %4730, %v5169_v9   ;;  %1650 = vperm.xlu0 %4729, %v5172_v10   ;;  %v5340_v52 = vld [vmem:[%s5134_s29 + $0x190] sm:$0xff]  ;;  %v5345_v53 = vld [vmem:[%s5134_s29 + $0x1a8] sm:$0xff]  ;;  %v5348_v54 = vld [vmem:[%s5134_s29 + $0x1a0] sm:$0xff] }
  0x72   : > { %7426 = vst [vmem:[#allocation4_spill] sm:$0xff] %v5345_v53  ;;  %7427 = vst [vmem:[#allocation5_spill] sm:$0xff] %v5348_v54  ;;  %v5353_v55 = vld [vmem:[%s5134_s29 + $0x1b8] sm:$0xff]  ;;  %v5356_v56 = vld [vmem:[%s5134_s29 + $0x1b0] sm:$0xff] }
  0x73   : > { %7428 = vst [vmem:[#allocation6_spill] sm:$0xff] %v5353_v55  ;;  %7429 = vst [vmem:[#allocation7_spill] sm:$0xff] %v5356_v56  ;;  %v5361_v57 = vld [vmem:[%s5134_s29 + $0x1c8] sm:$0xff]  ;;  %v5364_v58 = vld [vmem:[%s5134_s29 + $0x1c0] sm:$0xff] }
  0x74   : > { %7430 = vst [vmem:[#allocation8_spill] sm:$0xff] %v5361_v57  ;;  %7431 = vst [vmem:[#allocation9_spill] sm:$0xff] %v5364_v58  ;;  %v5369_v59 = vld [vmem:[%s5134_s29 + $0x1d8] sm:$0xff]  ;;  %v5372_v60 = vld [vmem:[%s5134_s29 + $0x1d0] sm:$0xff] }
  0x75   : > { %1665 = vperm.xlu1 %4730, %v5177_v11   ;;  %1660 = vperm.xlu0 %4729, %v5180_v12   ;;  %7432 = vst [vmem:[#allocation10_spill] sm:$0xff] %v5369_v59  ;;  %7433 = vst [vmem:[#allocation11_spill] sm:$0xff] %v5372_v60  ;;  %v5377_v61 = vld [vmem:[%s5134_s29 + $0x1e8] sm:$0xff]  ;;  %v5380_v62 = vld [vmem:[%s5134_s29 + $0x1e0] sm:$0xff] }
  0x76   : > { %7434 = vst [vmem:[#allocation12_spill] sm:$0xff] %v5377_v61  ;;  %7435 = vst [vmem:[#allocation13_spill] sm:$0xff] %v5380_v62  ;;  %v5385_v63 = vld [vmem:[%s5134_s29 + $0x1f8] sm:$0xff]  ;;  %v5388_v0 = vld [vmem:[%s5134_s29 + $0x1f0] sm:$0xff] }
  0x77   : > { %7436 = vst [vmem:[#allocation14_spill] sm:$0xff] %v5385_v63  ;;  %7437 = vst [vmem:[#allocation15_spill] sm:$0xff] %v5388_v0 }
  0x79   : > { %1675 = vperm.xlu1 %4730, %v5185_v13   ;;  %1670 = vperm.xlu0 %4729, %v5188_v14  }
  0x7d   : > { %1685 = vperm.xlu1 %4730, %v5193_v15   ;;  %1680 = vperm.xlu0 %4729, %v5196_v16  }
  0x81   : > { %1695 = vperm.xlu1 %4730, %v5201_v17   ;;  %1690 = vperm.xlu0 %4729, %v5204_v18  }
  0x85   : > { %1705 = vperm.xlu1 %4730, %v5209_v19   ;;  %1700 = vperm.xlu0 %4729, %v5212_v20  }
  0x89   : > { %1715 = vperm.xlu1 %4730, %v5217_v21   ;;  %1710 = vperm.xlu0 %4729, %v5220_v22  }
  0x8d   : > { %1725 = vperm.xlu1 %4730, %v5225_v23   ;;  %1720 = vperm.xlu0 %4729, %v5228_v24  }
  0x91   : > { %1735 = vperm.xlu1 %4730, %v5233_v25   ;;  %1730 = vperm.xlu0 %4729, %v5236_v26  }
  0x95   : > { %1745 = vperm.xlu1 %4730, %v5241_v27   ;;  %1740 = vperm.xlu0 %4729, %v5244_v28  }
  0x99   : > { %1755 = vperm.xlu1 %4730, %v5249_v29   ;;  %1750 = vperm.xlu0 %4729, %v5252_v30  }
  0x9d   : > { %1765 = vperm.xlu1 %4730, %v5257_v31   ;;  %1760 = vperm.xlu0 %4729, %v5260_v32  }
  0xa1   : > { %1775 = vperm.xlu1 %4730, %v5265_v33   ;;  %1770 = vperm.xlu0 %4729, %v5268_v34  }
  0xa5   : > { %1785 = vperm.xlu1 %4730, %v5273_v35   ;;  %1780 = vperm.xlu0 %4729, %v5276_v36  }
  0xa9   : > { %1795 = vperm.xlu1 %4730, %v5281_v37   ;;  %1790 = vperm.xlu0 %4729, %v5284_v38  }
  0xad   : > { %1805 = vperm.xlu1 %4730, %v5289_v39   ;;  %1800 = vperm.xlu0 %4729, %v5292_v40  }
  0xb1   : > { %1815 = vperm.xlu1 %4730, %v5297_v41   ;;  %1810 = vperm.xlu0 %4729, %v5300_v42  }
  0xb5   : > { %1825 = vperm.xlu1 %4730, %v5305_v43   ;;  %1820 = vperm.xlu0 %4729, %v5308_v44  }
  0xb9   : > { %1835 = vperm.xlu1 %4730, %v5313_v45   ;;  %1830 = vperm.xlu0 %4729, %v5316_v46  }
  0xbd   : > { %1845 = vperm.xlu1 %4730, %v5321_v47   ;;  %1840 = vperm.xlu0 %4729, %v5324_v48  }
  0xc1   : > { %1855 = vperm.xlu1 %4730, %v5329_v49   ;;  %1850 = vperm.xlu0 %4729, %v5332_v50  }
  0xc5   : > { %1865 = vperm.xlu1 %4730, %v5337_v51   ;;  %1860 = vperm.xlu0 %4729, %v5340_v52  }
  0xc9   : > { %1875 = vperm.xlu1 %4730, %v5345_v53   ;;  %1870 = vperm.xlu0 %4729, %v5348_v54  }
  0xcd   : > { %1885 = vperm.xlu1 %4730, %v5353_v55   ;;  %1880 = vperm.xlu0 %4729, %v5356_v56  }
  0xd1   : > { %1895 = vperm.xlu1 %4730, %v5361_v57   ;;  %1890 = vperm.xlu0 %4729, %v5364_v58   ;;  %v5400_v58 = vld [vmem:[%s5134_s29 + $0x200] sm:$0xff] }
  0xd2   : > { %7441 = vst [vmem:[#allocation19_spill] sm:$0xff] %v5400_v58 }
  0xd5   : > { %1905 = vperm.xlu1 %4730, %v5369_v59   ;;  %1900 = vperm.xlu0 %4729, %v5372_v60   ;;  %v5397_v60 = vld [vmem:[%s5134_s29 + $0x208] sm:$0xff] }
  0xd6   : > { %7440 = vst [vmem:[#allocation18_spill] sm:$0xff] %v5397_v60 }
  0xd9   : > { %1915 = vperm.xlu1 %4730, %v5377_v61   ;;  %1910 = vperm.xlu0 %4729, %v5380_v62  }
  0xdc   : > { %v5390_v57 = vpop.permute.xlu1 %1620  ;;  %v5392_v59 = vpop.permute.xlu0 %1610 }
  0xdd   : > { %7438 = vst [vmem:[#allocation16_spill] sm:$0xff] %v5390_v57  ;;  %7439 = vst [vmem:[#allocation17_spill] sm:$0xff] %v5392_v59  ;;  %1925 = vperm.xlu1 %4730, %v5385_v63   ;;  %1920 = vperm.xlu0 %4729, %v5388_v0   ;;  %v5409_v57 = vld [vmem:[%s5134_s29 + $0x218] sm:$0xff]  ;;  %v5412_v59 = vld [vmem:[%s5134_s29 + $0x210] sm:$0xff] }
  0xde   : > { %7444 = vst [vmem:[#allocation22_spill] sm:$0xff] %v5409_v57  ;;  %7445 = vst [vmem:[#allocation23_spill] sm:$0xff] %v5412_v59 }
  0xe0   : > { %v5402_v61 = vpop.permute.xlu1 %1625  ;;  %v5404_v62 = vpop.permute.xlu0 %1615 }
  0xe1   : > { %7442 = vst [vmem:[#allocation20_spill] sm:$0xff] %v5402_v61  ;;  %7443 = vst [vmem:[#allocation21_spill] sm:$0xff] %v5404_v62  ;;  %1935 = vperm.xlu1 %4730, %v5397_v60   ;;  %1930 = vperm.xlu0 %4729, %v5400_v58   ;;  %v5421_v61 = vld [vmem:[%s5134_s29 + $0x228] sm:$0xff]  ;;  %v5424_v62 = vld [vmem:[%s5134_s29 + $0x220] sm:$0xff] }
  0xe2   : > { %7448 = vst [vmem:[#allocation26_spill] sm:$0xff] %v5421_v61  ;;  %7449 = vst [vmem:[#allocation27_spill] sm:$0xff] %v5424_v62 }
  0xe4   : > { %v5414_v63 = vpop.permute.xlu1 %1635  ;;  %v5416_v0 = vpop.permute.xlu0 %1630 }
  0xe5   : > { %7446 = vst [vmem:[#allocation24_spill] sm:$0xff] %v5414_v63  ;;  %7447 = vst [vmem:[#allocation25_spill] sm:$0xff] %v5416_v0  ;;  %1945 = vperm.xlu1 %4730, %v5409_v57   ;;  %1940 = vperm.xlu0 %4729, %v5412_v59   ;;  %v5433_v0 = vld [vmem:[%s5134_s29 + $0x238] sm:$0xff]  ;;  %v5436_v63 = vld [vmem:[%s5134_s29 + $0x230] sm:$0xff] }
  0xe6   : > { %7452 = vst [vmem:[#allocation30_spill] sm:$0xff] %v5433_v0  ;;  %7453 = vst [vmem:[#allocation31_spill] sm:$0xff] %v5436_v63 }
  0xe8   : > { %v5426_v60 = vpop.permute.xlu1 %1645  ;;  %v5428_v58 = vpop.permute.xlu0 %1640 }
  0xe9   : > { %7450 = vst [vmem:[#allocation28_spill] sm:$0xff] %v5426_v60  ;;  %7451 = vst [vmem:[#allocation29_spill] sm:$0xff] %v5428_v58  ;;  %1955 = vperm.xlu1 %4730, %v5421_v61   ;;  %1950 = vperm.xlu0 %4729, %v5424_v62   ;;  %v5445_v58 = vld [vmem:[%s5134_s29 + $0x248] sm:$0xff]  ;;  %v5448_v60 = vld [vmem:[%s5134_s29 + $0x240] sm:$0xff] }
  0xea   : > { %7456 = vst [vmem:[#allocation34_spill] sm:$0xff] %v5445_v58  ;;  %7457 = vst [vmem:[#allocation35_spill] sm:$0xff] %v5448_v60 }
  0xec   : > { %v5438_v57 = vpop.permute.xlu1 %1655  ;;  %v5440_v59 = vpop.permute.xlu0 %1650 }
  0xed   : > { %7454 = vst [vmem:[#allocation32_spill] sm:$0xff] %v5438_v57  ;;  %7455 = vst [vmem:[#allocation33_spill] sm:$0xff] %v5440_v59  ;;  %1965 = vperm.xlu1 %4730, %v5433_v0   ;;  %1960 = vperm.xlu0 %4729, %v5436_v63   ;;  %v5457_v59 = vld [vmem:[%s5134_s29 + $0x258] sm:$0xff]  ;;  %v5460_v57 = vld [vmem:[%s5134_s29 + $0x250] sm:$0xff] }
  0xee   : > { %7460 = vst [vmem:[#allocation38_spill] sm:$0xff] %v5457_v59  ;;  %7461 = vst [vmem:[#allocation39_spill] sm:$0xff] %v5460_v57 }
  0xf0   : > { %v5450_v61 = vpop.permute.xlu1 %1665  ;;  %v5452_v62 = vpop.permute.xlu0 %1660 }
  0xf1   : > { %7458 = vst [vmem:[#allocation36_spill] sm:$0xff] %v5450_v61  ;;  %7459 = vst [vmem:[#allocation37_spill] sm:$0xff] %v5452_v62  ;;  %1975 = vperm.xlu1 %4730, %v5445_v58   ;;  %1970 = vperm.xlu0 %4729, %v5448_v60   ;;  %v5469_v62 = vld [vmem:[%s5134_s29 + $0x268] sm:$0xff]  ;;  %v5472_v61 = vld [vmem:[%s5134_s29 + $0x260] sm:$0xff] }
  0xf2   : > { %7464 = vst [vmem:[#allocation42_spill] sm:$0xff] %v5469_v62  ;;  %7465 = vst [vmem:[#allocation43_spill] sm:$0xff] %v5472_v61 }
  0xf4   : > { %v5462_v0 = vpop.permute.xlu1 %1675  ;;  %v5464_v63 = vpop.permute.xlu0 %1670 }
  0xf5   : > { %7462 = vst [vmem:[#allocation40_spill] sm:$0xff] %v5462_v0  ;;  %7463 = vst [vmem:[#allocation41_spill] sm:$0xff] %v5464_v63  ;;  %1985 = vperm.xlu1 %4730, %v5457_v59   ;;  %1980 = vperm.xlu0 %4729, %v5460_v57   ;;  %v5481_v63 = vld [vmem:[%s5134_s29 + $0x278] sm:$0xff]  ;;  %v5484_v0 = vld [vmem:[%s5134_s29 + $0x270] sm:$0xff] }
  0xf6   : > { %7468 = vst [vmem:[#allocation46_spill] sm:$0xff] %v5481_v63  ;;  %7469 = vst [vmem:[#allocation47_spill] sm:$0xff] %v5484_v0 }
  0xf8   : > { %v5474_v58 = vpop.permute.xlu1 %1685  ;;  %v5476_v60 = vpop.permute.xlu0 %1680 }
  0xf9   : > { %7466 = vst [vmem:[#allocation44_spill] sm:$0xff] %v5474_v58  ;;  %7467 = vst [vmem:[#allocation45_spill] sm:$0xff] %v5476_v60  ;;  %1995 = vperm.xlu1 %4730, %v5469_v62   ;;  %1990 = vperm.xlu0 %4729, %v5472_v61   ;;  %v5493_v60 = vld [vmem:[%s5134_s29 + $0x288] sm:$0xff]  ;;  %v5496_v58 = vld [vmem:[%s5134_s29 + $0x280] sm:$0xff] }
  0xfa   : > { %7472 = vst [vmem:[#allocation50_spill] sm:$0xff] %v5493_v60  ;;  %7473 = vst [vmem:[#allocation51_spill] sm:$0xff] %v5496_v58 }
  0xfc   : > { %v5486_v59 = vpop.permute.xlu1 %1695  ;;  %v5488_v57 = vpop.permute.xlu0 %1690 }
  0xfd   : > { %7470 = vst [vmem:[#allocation48_spill] sm:$0xff] %v5486_v59  ;;  %7471 = vst [vmem:[#allocation49_spill] sm:$0xff] %v5488_v57  ;;  %2005 = vperm.xlu1 %4730, %v5481_v63   ;;  %2000 = vperm.xlu0 %4729, %v5484_v0   ;;  %v5505_v57 = vld [vmem:[%s5134_s29 + $0x298] sm:$0xff]  ;;  %v5508_v59 = vld [vmem:[%s5134_s29 + $0x290] sm:$0xff] }
  0xfe   : > { %7476 = vst [vmem:[#allocation54_spill] sm:$0xff] %v5505_v57  ;;  %7477 = vst [vmem:[#allocation55_spill] sm:$0xff] %v5508_v59 }
 0x100   : > { %v5498_v62 = vpop.permute.xlu1 %1705  ;;  %v5500_v61 = vpop.permute.xlu0 %1700 }
 0x101   : > { %7474 = vst [vmem:[#allocation52_spill] sm:$0xff] %v5498_v62  ;;  %7475 = vst [vmem:[#allocation53_spill] sm:$0xff] %v5500_v61  ;;  %2015 = vperm.xlu1 %4730, %v5493_v60   ;;  %2010 = vperm.xlu0 %4729, %v5496_v58   ;;  %v5517_v61 = vld [vmem:[%s5134_s29 + $0x2a8] sm:$0xff]  ;;  %v5520_v62 = vld [vmem:[%s5134_s29 + $0x2a0] sm:$0xff] }
 0x102   : > { %7480 = vst [vmem:[#allocation58_spill] sm:$0xff] %v5517_v61  ;;  %7481 = vst [vmem:[#allocation59_spill] sm:$0xff] %v5520_v62 }
 0x104   : > { %v5510_v63 = vpop.permute.xlu1 %1715  ;;  %v5512_v0 = vpop.permute.xlu0 %1710 }
 0x105   : > { %7478 = vst [vmem:[#allocation56_spill] sm:$0xff] %v5510_v63  ;;  %7479 = vst [vmem:[#allocation57_spill] sm:$0xff] %v5512_v0  ;;  %2025 = vperm.xlu1 %4730, %v5505_v57   ;;  %2020 = vperm.xlu0 %4729, %v5508_v59   ;;  %v5529_v0 = vld [vmem:[%s5134_s29 + $0x2b8] sm:$0xff]  ;;  %v5532_v63 = vld [vmem:[%s5134_s29 + $0x2b0] sm:$0xff] }
 0x106   : > { %7484 = vst [vmem:[#allocation62_spill] sm:$0xff] %v5529_v0  ;;  %7485 = vst [vmem:[#allocation63_spill] sm:$0xff] %v5532_v63 }
 0x108   : > { %v5522_v60 = vpop.permute.xlu1 %1725  ;;  %v5524_v58 = vpop.permute.xlu0 %1720 }
 0x109   : > { %7482 = vst [vmem:[#allocation60_spill] sm:$0xff] %v5522_v60  ;;  %7483 = vst [vmem:[#allocation61_spill] sm:$0xff] %v5524_v58  ;;  %2035 = vperm.xlu1 %4730, %v5517_v61   ;;  %2030 = vperm.xlu0 %4729, %v5520_v62   ;;  %v5541_v58 = vld [vmem:[%s5134_s29 + $0x2c8] sm:$0xff]  ;;  %v5544_v60 = vld [vmem:[%s5134_s29 + $0x2c0] sm:$0xff] }
 0x10a   : > { %7488 = vst [vmem:[#allocation66_spill] sm:$0xff] %v5541_v58  ;;  %7489 = vst [vmem:[#allocation67_spill] sm:$0xff] %v5544_v60 }
 0x10c   : > { %v5534_v57 = vpop.permute.xlu1 %1735  ;;  %v5536_v59 = vpop.permute.xlu0 %1730 }
 0x10d   : > { %7486 = vst [vmem:[#allocation64_spill] sm:$0xff] %v5534_v57  ;;  %7487 = vst [vmem:[#allocation65_spill] sm:$0xff] %v5536_v59  ;;  %2045 = vperm.xlu1 %4730, %v5529_v0   ;;  %2040 = vperm.xlu0 %4729, %v5532_v63   ;;  %v5553_v59 = vld [vmem:[%s5134_s29 + $0x2d8] sm:$0xff]  ;;  %v5556_v57 = vld [vmem:[%s5134_s29 + $0x2d0] sm:$0xff] }
 0x10e   : > { %7492 = vst [vmem:[#allocation70_spill] sm:$0xff] %v5553_v59  ;;  %7493 = vst [vmem:[#allocation71_spill] sm:$0xff] %v5556_v57 }
 0x110   : > { %v5546_v61 = vpop.permute.xlu1 %1745  ;;  %v5548_v62 = vpop.permute.xlu0 %1740 }
 0x111   : > { %7490 = vst [vmem:[#allocation68_spill] sm:$0xff] %v5546_v61  ;;  %7491 = vst [vmem:[#allocation69_spill] sm:$0xff] %v5548_v62  ;;  %2055 = vperm.xlu1 %4730, %v5541_v58   ;;  %2050 = vperm.xlu0 %4729, %v5544_v60   ;;  %v5565_v62 = vld [vmem:[%s5134_s29 + $0x2e8] sm:$0xff]  ;;  %v5568_v61 = vld [vmem:[%s5134_s29 + $0x2e0] sm:$0xff] }
 0x112   : > { %7496 = vst [vmem:[#allocation74_spill] sm:$0xff] %v5565_v62  ;;  %7497 = vst [vmem:[#allocation75_spill] sm:$0xff] %v5568_v61 }
 0x114   : > { %v5558_v0 = vpop.permute.xlu1 %1755  ;;  %v5560_v63 = vpop.permute.xlu0 %1750 }
 0x115   : > { %7494 = vst [vmem:[#allocation72_spill] sm:$0xff] %v5558_v0  ;;  %7495 = vst [vmem:[#allocation73_spill] sm:$0xff] %v5560_v63  ;;  %2065 = vperm.xlu1 %4730, %v5553_v59   ;;  %2060 = vperm.xlu0 %4729, %v5556_v57   ;;  %v5577_v63 = vld [vmem:[%s5134_s29 + $0x2f8] sm:$0xff]  ;;  %v5580_v0 = vld [vmem:[%s5134_s29 + $0x2f0] sm:$0xff] }
 0x116   : > { %7500 = vst [vmem:[#allocation78_spill] sm:$0xff] %v5577_v63  ;;  %7501 = vst [vmem:[#allocation79_spill] sm:$0xff] %v5580_v0 }
 0x118   : > { %v5570_v58 = vpop.permute.xlu1 %1765  ;;  %v5572_v60 = vpop.permute.xlu0 %1760 }
 0x119   : > { %7498 = vst [vmem:[#allocation76_spill] sm:$0xff] %v5570_v58  ;;  %7499 = vst [vmem:[#allocation77_spill] sm:$0xff] %v5572_v60  ;;  %2075 = vperm.xlu1 %4730, %v5565_v62   ;;  %2070 = vperm.xlu0 %4729, %v5568_v61   ;;  %v5589_v60 = vld [vmem:[%s5134_s29 + $0x308] sm:$0xff]  ;;  %v5592_v58 = vld [vmem:[%s5134_s29 + $0x300] sm:$0xff] }
 0x11a   : > { %7504 = vst [vmem:[#allocation82_spill] sm:$0xff] %v5589_v60  ;;  %7505 = vst [vmem:[#allocation83_spill] sm:$0xff] %v5592_v58 }
 0x11c   : > { %v5582_v59 = vpop.permute.xlu1 %1775  ;;  %v5584_v57 = vpop.permute.xlu0 %1770 }
 0x11d   : > { %7502 = vst [vmem:[#allocation80_spill] sm:$0xff] %v5582_v59  ;;  %7503 = vst [vmem:[#allocation81_spill] sm:$0xff] %v5584_v57  ;;  %2085 = vperm.xlu1 %4730, %v5577_v63   ;;  %2080 = vperm.xlu0 %4729, %v5580_v0   ;;  %v1067_v57 = vld [vmem:[%s5134_s29 + $0x318] sm:$0xff]  ;;  %v1066_v59 = vld [vmem:[%s5134_s29 + $0x310] sm:$0xff] }
 0x11e   : > { %v1069_v0 = vld [vmem:[%s5134_s29 + $0x328] sm:$0xff] }
 0x120   : > { %v5594_v62 = vpop.permute.xlu1 %1785  ;;  %v5596_v61 = vpop.permute.xlu0 %1780 }
 0x121   : > { %7506 = vst [vmem:[#allocation84_spill] sm:$0xff] %v5594_v62  ;;  %7507 = vst [vmem:[#allocation85_spill] sm:$0xff] %v5596_v61  ;;  %2095 = vperm.xlu1 %4730, %v5589_v60   ;;  %2090 = vperm.xlu0 %4729, %v5592_v58   ;;  %v1068_v62 = vld [vmem:[%s5134_s29 + $0x320] sm:$0xff]  ;;  %v1071_v60 = vld [vmem:[%s5134_s29 + $0x338] sm:$0xff] }
 0x122   : > { %v1070_v58 = vld [vmem:[%s5134_s29 + $0x330] sm:$0xff] }
 0x124   : > { %v5602_v55 = vpop.permute.xlu1 %1795  ;;  %v5604_v63 = vpop.permute.xlu0 %1790 }
 0x125   : > { %7508 = vst [vmem:[#allocation86_spill] sm:$0xff] %v5602_v55  ;;  %7509 = vst [vmem:[#allocation87_spill] sm:$0xff] %v5604_v63  ;;  %2105 = vperm.xlu1 %4730, %v1067_v57   ;;  %2100 = vperm.xlu0 %4729, %v1066_v59   ;;  %v1073_v57 = vld [vmem:[%s5134_s29 + $0x348] sm:$0xff]  ;;  %v1072_v59 = vld [vmem:[%s5134_s29 + $0x340] sm:$0xff] }
 0x128   : > { %v5608_v56 = vpop.permute.xlu1 %1805  ;;  %v5610_v61 = vpop.permute.xlu0 %1800 }
 0x129   : > { %7510 = vst [vmem:[#allocation88_spill] sm:$0xff] %v5608_v56  ;;  %7511 = vst [vmem:[#allocation89_spill] sm:$0xff] %v5610_v61  ;;  %2115 = vperm.xlu1 %4730, %v1069_v0   ;;  %2110 = vperm.xlu0 %4729, %v1068_v62   ;;  %v1075_v62 = vld [vmem:[%s5134_s29 + $0x358] sm:$0xff]  ;;  %v1074_v0 = vld [vmem:[%s5134_s29 + $0x350] sm:$0xff] }
 0x12c   : > { %v5614_v53 = vpop.permute.xlu1 %1815  ;;  %v5616_v55 = vpop.permute.xlu0 %1810 }
 0x12d   : > { %7512 = vst [vmem:[#allocation90_spill] sm:$0xff] %v5614_v53  ;;  %7513 = vst [vmem:[#allocation91_spill] sm:$0xff] %v5616_v55  ;;  %2125 = vperm.xlu1 %4730, %v1071_v60   ;;  %2120 = vperm.xlu0 %4729, %v1070_v58   ;;  %v1077_v58 = vld [vmem:[%s5134_s29 + $0x368] sm:$0xff]  ;;  %v1076_v60 = vld [vmem:[%s5134_s29 + $0x360] sm:$0xff] }
 0x130   : > { %v5620_v63 = vpop.permute.xlu1 %1825  ;;  %v5622_v56 = vpop.permute.xlu0 %1820 }
 0x131   : > { %7514 = vst [vmem:[#allocation92_spill] sm:$0xff] %v5620_v63  ;;  %7515 = vst [vmem:[#allocation93_spill] sm:$0xff] %v5622_v56  ;;  %2135 = vperm.xlu1 %4730, %v1073_v57   ;;  %2130 = vperm.xlu0 %4729, %v1072_v59   ;;  %v1079_v57 = vld [vmem:[%s5134_s29 + $0x378] sm:$0xff]  ;;  %v1078_v59 = vld [vmem:[%s5134_s29 + $0x370] sm:$0xff] }
 0x134   : > { %v5626_v61 = vpop.permute.xlu1 %1835  ;;  %v5628_v53 = vpop.permute.xlu0 %1830 }
 0x135   : > { %7516 = vst [vmem:[#allocation94_spill] sm:$0xff] %v5626_v61  ;;  %7517 = vst [vmem:[#allocation95_spill] sm:$0xff] %v5628_v53  ;;  %2145 = vperm.xlu1 %4730, %v1075_v62   ;;  %2140 = vperm.xlu0 %4729, %v1074_v0   ;;  %v1081_v62 = vld [vmem:[%s5134_s29 + $0x388] sm:$0xff]  ;;  %v1080_v0 = vld [vmem:[%s5134_s29 + $0x380] sm:$0xff] }
 0x138   : > { %v5632_v55 = vpop.permute.xlu1 %1845  ;;  %v5634_v63 = vpop.permute.xlu0 %1840 }
 0x139   : > { %7518 = vst [vmem:[#allocation96_spill] sm:$0xff] %v5632_v55  ;;  %7519 = vst [vmem:[#allocation97_spill] sm:$0xff] %v5634_v63  ;;  %2155 = vperm.xlu1 %4730, %v1077_v58   ;;  %2150 = vperm.xlu0 %4729, %v1076_v60   ;;  %v1083_v58 = vld [vmem:[%s5134_s29 + $0x398] sm:$0xff]  ;;  %v1082_v60 = vld [vmem:[%s5134_s29 + $0x390] sm:$0xff] }
 0x13c   : > { %v5638_v56 = vpop.permute.xlu1 %1855  ;;  %v5640_v61 = vpop.permute.xlu0 %1850 }
 0x13d   : > { %7520 = vst [vmem:[#allocation98_spill] sm:$0xff] %v5638_v56  ;;  %7521 = vst [vmem:[#allocation99_spill] sm:$0xff] %v5640_v61  ;;  %2165 = vperm.xlu1 %4730, %v1079_v57   ;;  %2160 = vperm.xlu0 %4729, %v1078_v59   ;;  %v1085_v57 = vld [vmem:[%s5134_s29 + $0x3a8] sm:$0xff]  ;;  %v1084_v59 = vld [vmem:[%s5134_s29 + $0x3a0] sm:$0xff] }
 0x140   : > { %v5644_v53 = vpop.permute.xlu1 %1865  ;;  %v5646_v55 = vpop.permute.xlu0 %1860 }
 0x141   : > { %7522 = vst [vmem:[#allocation100_spill] sm:$0xff] %v5644_v53  ;;  %7523 = vst [vmem:[#allocation101_spill] sm:$0xff] %v5646_v55  ;;  %2175 = vperm.xlu1 %4730, %v1081_v62   ;;  %2170 = vperm.xlu0 %4729, %v1080_v0   ;;  %v1087_v62 = vld [vmem:[%s5134_s29 + $0x3b8] sm:$0xff]  ;;  %v1086_v0 = vld [vmem:[%s5134_s29 + $0x3b0] sm:$0xff] }
 0x144   : > { %v5650_v63 = vpop.permute.xlu1 %1875  ;;  %v5652_v56 = vpop.permute.xlu0 %1870 }
 0x145   : > { %7524 = vst [vmem:[#allocation102_spill] sm:$0xff] %v5650_v63  ;;  %7525 = vst [vmem:[#allocation103_spill] sm:$0xff] %v5652_v56  ;;  %2185 = vperm.xlu1 %4730, %v1083_v58   ;;  %2180 = vperm.xlu0 %4729, %v1082_v60   ;;  %v1089_v58 = vld [vmem:[%s5134_s29 + $0x3c8] sm:$0xff]  ;;  %v1088_v60 = vld [vmem:[%s5134_s29 + $0x3c0] sm:$0xff] }
 0x148   : > { %v5656_v61 = vpop.permute.xlu1 %1885  ;;  %v5658_v53 = vpop.permute.xlu0 %1880 }
 0x149   : > { %7526 = vst [vmem:[#allocation104_spill] sm:$0xff] %v5656_v61  ;;  %7527 = vst [vmem:[#allocation105_spill] sm:$0xff] %v5658_v53  ;;  %2195 = vperm.xlu1 %4730, %v1085_v57   ;;  %2190 = vperm.xlu0 %4729, %v1084_v59   ;;  %v1091_v57 = vld [vmem:[%s5134_s29 + $0x3d8] sm:$0xff]  ;;  %v1090_v59 = vld [vmem:[%s5134_s29 + $0x3d0] sm:$0xff] }
 0x14c   : > { %v5662_v55 = vpop.permute.xlu1 %1895  ;;  %v5664_v63 = vpop.permute.xlu0 %1890 }
 0x14d   : > { %7528 = vst [vmem:[#allocation106_spill] sm:$0xff] %v5662_v55  ;;  %7529 = vst [vmem:[#allocation107_spill] sm:$0xff] %v5664_v63  ;;  %2205 = vperm.xlu1 %4730, %v1087_v62   ;;  %2200 = vperm.xlu0 %4729, %v1086_v0   ;;  %v1093_v62 = vld [vmem:[%s5134_s29 + $0x3e8] sm:$0xff]  ;;  %v1092_v0 = vld [vmem:[%s5134_s29 + $0x3e0] sm:$0xff] }
 0x150   : > { %v5668_v56 = vpop.permute.xlu1 %1905  ;;  %v5670_v61 = vpop.permute.xlu0 %1900 }
 0x151   : > { %7530 = vst [vmem:[#allocation108_spill] sm:$0xff] %v5668_v56  ;;  %7531 = vst [vmem:[#allocation109_spill] sm:$0xff] %v5670_v61  ;;  %2215 = vperm.xlu1 %4730, %v1089_v58   ;;  %2210 = vperm.xlu0 %4729, %v1088_v60   ;;  %v1095_v61 = vld [vmem:[%s5134_s29 + $0x3f8] sm:$0xff]  ;;  %v1094_v56 = vld [vmem:[%s5134_s29 + $0x3f0] sm:$0xff] }
 0x154   : > { %v5674_v53 = vpop.permute.xlu1 %1915  ;;  %v5676_v55 = vpop.permute.xlu0 %1910 }
 0x155   : > { %7532 = vst [vmem:[#allocation110_spill] sm:$0xff] %v5674_v53  ;;  %2225 = vperm.xlu1 %4730, %v1091_v57   ;;  %2220 = vperm.xlu0 %4729, %v1090_v59   ;;  %v4804_v59 = vmov 0  }
 0x158   : > { %v5680_v63 = vpop.permute.xlu1 %1925  ;;  %v5682_v54 = vpop.permute.xlu0 %1920 }
 0x159   : > { %2235 = vperm.xlu1 %4730, %v1093_v62   ;;  %2230 = vperm.xlu0 %4729, %v1092_v0  }
 0x15c   : > { %v5686_v58 = vpop.permute.xlu1 %1935  ;;  %v5688_v60 = vpop.permute.xlu0 %1930 }
 0x15d   : > { %2245 = vperm.xlu1 %4730, %v1095_v61   ;;  %2240 = vperm.xlu0 %4729, %v1094_v56  }
 0x160   : > { %v5690_v53 = vpop.permute.xlu1 %1945  ;;  %v5692_v57 = vpop.permute.xlu0 %1940 }
 0x161   : > { %4732 = vset.pattern.permute.xlu1 %v4804_v59  ;;  %4731 = vset.pattern.permute.xlu0 %v4804_v59 }
 0x162   : > { %2893 = vperm.xlu1 %4732, %v5148_v4   ;;  %2889 = vperm.xlu0 %4731, %v5140_v2  }
 0x164   : > { %v5696_v62 = vpop.permute.xlu1 %1955  ;;  %v5698_v0 = vpop.permute.xlu0 %1950 }
 0x166   : > { %2897 = vperm.xlu1 %4732, %v5137_v1   ;;  %2901 = vperm.xlu0 %4731, %v5145_v3  }
 0x168   : > { %v5702_v56 = vpop.permute.xlu1 %1965  ;;  %v5704_v61 = vpop.permute.xlu0 %1960 }
 0x16a   : > { %2905 = vperm.xlu1 %4732, %v5156_v6   ;;  %2909 = vperm.xlu0 %4731, %v5153_v5  }
 0x16c   : > { %v5708_v59 = vpop.permute.xlu1 %1975  ;;  %v5710_v4 = vpop.permute.xlu0 %1970 }
 0x16e   : > { %2913 = vperm.xlu1 %4732, %v5164_v8   ;;  %2917 = vperm.xlu0 %4731, %v5161_v7  }
 0x170   : > { %v5714_v2 = vpop.permute.xlu1 %1985  ;;  %v5716_v1 = vpop.permute.xlu0 %1980 }
 0x172   : > { %2921 = vperm.xlu1 %4732, %v5172_v10   ;;  %2925 = vperm.xlu0 %4731, %v5169_v9  }
 0x174   : > { %v5720_v3 = vpop.permute.xlu1 %1995  ;;  %v5722_v6 = vpop.permute.xlu0 %1990 }
 0x176   : > { %2929 = vperm.xlu1 %4732, %v5180_v12   ;;  %2933 = vperm.xlu0 %4731, %v5177_v11  }
 0x178   : > { %v5726_v5 = vpop.permute.xlu1 %2005  ;;  %v5728_v8 = vpop.permute.xlu0 %2000 }
 0x17a   : > { %2937 = vperm.xlu1 %4732, %v5188_v14   ;;  %2941 = vperm.xlu0 %4731, %v5185_v13  }
 0x17c   : > { %v5732_v7 = vpop.permute.xlu1 %2015  ;;  %v5734_v10 = vpop.permute.xlu0 %2010 }
 0x17e   : > { %2945 = vperm.xlu1 %4732, %v5196_v16   ;;  %2949 = vperm.xlu0 %4731, %v5193_v15  }
 0x180   : > { %v5738_v9 = vpop.permute.xlu1 %2025  ;;  %v5740_v12 = vpop.permute.xlu0 %2020 }
 0x182   : > { %2953 = vperm.xlu1 %4732, %v5204_v18   ;;  %2957 = vperm.xlu0 %4731, %v5201_v17  }
 0x184   : > { %v5744_v11 = vpop.permute.xlu1 %2035  ;;  %v5746_v14 = vpop.permute.xlu0 %2030 }
 0x186   : > { %2961 = vperm.xlu1 %4732, %v5212_v20   ;;  %2965 = vperm.xlu0 %4731, %v5209_v19  }
 0x188   : > { %v5750_v13 = vpop.permute.xlu1 %2045  ;;  %v5752_v16 = vpop.permute.xlu0 %2040 }
 0x18a   : > { %2969 = vperm.xlu1 %4732, %v5220_v22   ;;  %2973 = vperm.xlu0 %4731, %v5217_v21  }
 0x18c   : > { %v5756_v15 = vpop.permute.xlu1 %2055  ;;  %v5758_v18 = vpop.permute.xlu0 %2050 }
 0x18e   : > { %2977 = vperm.xlu1 %4732, %v5228_v24   ;;  %2981 = vperm.xlu0 %4731, %v5225_v23  }
 0x190   : > { %v5762_v17 = vpop.permute.xlu1 %2065  ;;  %v5764_v20 = vpop.permute.xlu0 %2060 }
 0x192   : > { %2985 = vperm.xlu1 %4732, %v5236_v26   ;;  %2989 = vperm.xlu0 %4731, %v5233_v25  }
 0x194   : > { %v5768_v19 = vpop.permute.xlu1 %2075  ;;  %v5770_v22 = vpop.permute.xlu0 %2070 }
 0x196   : > { %2993 = vperm.xlu1 %4732, %v5244_v28   ;;  %2997 = vperm.xlu0 %4731, %v5241_v27  }
 0x198   : > { %v5774_v21 = vpop.permute.xlu1 %2085  ;;  %v5776_v24 = vpop.permute.xlu0 %2080 }
 0x19a   : > { %3001 = vperm.xlu1 %4732, %v5252_v30   ;;  %3005 = vperm.xlu0 %4731, %v5249_v29  }
 0x19c   : > { %v5780_v23 = vpop.permute.xlu1 %2095  ;;  %v5782_v26 = vpop.permute.xlu0 %2090 }
 0x19e   : > { %3009 = vperm.xlu1 %4732, %v5260_v32   ;;  %3013 = vperm.xlu0 %4731, %v5257_v31  }
 0x1a0   : > { %v5786_v25 = vpop.permute.xlu1 %2105  ;;  %v5788_v28 = vpop.permute.xlu0 %2100 }
 0x1a2   : > { %3017 = vperm.xlu1 %4732, %v5268_v34   ;;  %3021 = vperm.xlu0 %4731, %v5265_v33  }
 0x1a4   : > { %v5792_v27 = vpop.permute.xlu1 %2115  ;;  %v5794_v30 = vpop.permute.xlu0 %2110 }
 0x1a6   : > { %3025 = vperm.xlu1 %4732, %v5276_v36   ;;  %3029 = vperm.xlu0 %4731, %v5273_v35  }
 0x1a8   : > { %v5798_v29 = vpop.permute.xlu1 %2125  ;;  %v5800_v32 = vpop.permute.xlu0 %2120 }
 0x1aa   : > { %3033 = vperm.xlu1 %4732, %v5284_v38   ;;  %3037 = vperm.xlu0 %4731, %v5281_v37  }
 0x1ac   : > { %v5804_v31 = vpop.permute.xlu1 %2135  ;;  %v5806_v34 = vpop.permute.xlu0 %2130 }
 0x1ad   : > { %7533 = vst [vmem:[#allocation111_spill] sm:$0xff] %v5806_v34 }
 0x1ae   : > { %3041 = vperm.xlu1 %4732, %v5292_v40   ;;  %3045 = vperm.xlu0 %4731, %v5289_v39  }
 0x1b0   : > { %v5810_v33 = vpop.permute.xlu1 %2145  ;;  %v5812_v36 = vpop.permute.xlu0 %2140 }
 0x1b1   : > { %7534 = vst [vmem:[#allocation112_spill] sm:$0xff] %v5810_v33  ;;  %7535 = vst [vmem:[#allocation113_spill] sm:$0xff] %v5812_v36  ;;  %v7570_v33 = vld [vmem:[#allocation16_spill] sm:$0xff] }
 0x1b2   : > { %3049 = vperm.xlu1 %4732, %v5300_v42   ;;  %3053 = vperm.xlu0 %4731, %v5297_v41  }
 0x1b4   : > { %v5816_v35 = vpop.permute.xlu1 %2155  ;;  %v5818_v38 = vpop.permute.xlu0 %2150 }
 0x1b5   : > { %7536 = vst [vmem:[#allocation114_spill] sm:$0xff] %v5816_v35  ;;  %7537 = vst [vmem:[#allocation115_spill] sm:$0xff] %v5818_v38  ;;  %v7569_v38 = vld [vmem:[#allocation14_spill] sm:$0xff] }
 0x1b6   : > { %3057 = vperm.xlu1 %4732, %v5308_v44   ;;  %3061 = vperm.xlu0 %4731, %v5305_v43  }
 0x1b8   : > { %v5822_v37 = vpop.permute.xlu1 %2165  ;;  %v5824_v40 = vpop.permute.xlu0 %2160 }
 0x1b9   : > { %7538 = vst [vmem:[#allocation116_spill] sm:$0xff] %v5822_v37  ;;  %7539 = vst [vmem:[#allocation117_spill] sm:$0xff] %v5824_v40  ;;  %v7568_v37 = vld [vmem:[#allocation15_spill] sm:$0xff] }
 0x1ba   : > { %3065 = vperm.xlu1 %4732, %v5316_v46   ;;  %3069 = vperm.xlu0 %4731, %v5313_v45  }
 0x1bc   : > { %v5828_v39 = vpop.permute.xlu1 %2175  ;;  %v5830_v42 = vpop.permute.xlu0 %2170 }
 0x1bd   : > { %7540 = vst [vmem:[#allocation118_spill] sm:$0xff] %v5828_v39  ;;  %7541 = vst [vmem:[#allocation119_spill] sm:$0xff] %v5830_v42 }
 0x1be   : > { %3073 = vperm.xlu1 %4732, %v5324_v48   ;;  %3077 = vperm.xlu0 %4731, %v5321_v47   ;;  %v7548_v47 = vld [vmem:[#allocation5_spill] sm:$0xff] }
 0x1c0   : > { %v5834_v41 = vpop.permute.xlu1 %2185  ;;  %v5836_v44 = vpop.permute.xlu0 %2180 }
 0x1c1   : > { %7542 = vst [vmem:[#allocation120_spill] sm:$0xff] %v5834_v41  ;;  %7543 = vst [vmem:[#allocation121_spill] sm:$0xff] %v5836_v44  ;;  %v7549_v41 = vld [vmem:[#allocation4_spill] sm:$0xff] }
 0x1c2   : > { %3081 = vperm.xlu1 %4732, %v5332_v50   ;;  %3085 = vperm.xlu0 %4731, %v5329_v49   ;;  %v7552_v49 = vld [vmem:[#allocation7_spill] sm:$0xff] }
 0x1c4   : > { %v5840_v43 = vpop.permute.xlu1 %2195  ;;  %v5842_v46 = vpop.permute.xlu0 %2190 }
 0x1c5   : > { %7544 = vst [vmem:[#allocation122_spill] sm:$0xff] %v5840_v43  ;;  %7545 = vst [vmem:[#allocation123_spill] sm:$0xff] %v5842_v46  ;;  %v7553_v43 = vld [vmem:[#allocation6_spill] sm:$0xff] }
 0x1c6   : > { %3089 = vperm.xlu1 %4732, %v5340_v52   ;;  %3093 = vperm.xlu0 %4731, %v5337_v51   ;;  %v7556_v51 = vld [vmem:[#allocation9_spill] sm:$0xff] }
 0x1c8   : > { %v5846_v45 = vpop.permute.xlu1 %2205  ;;  %v5848_v48 = vpop.permute.xlu0 %2200 }
 0x1c9   : > { %7546 = vst [vmem:[#allocation124_spill] sm:$0xff] %v5846_v45  ;;  %7547 = vst [vmem:[#allocation125_spill] sm:$0xff] %v5848_v48  ;;  %v7557_v45 = vld [vmem:[#allocation8_spill] sm:$0xff] }
 0x1ca   : > { %3097 = vperm.xlu1 %4732, %v7548_v47   ;;  %3101 = vperm.xlu0 %4731, %v7549_v41   ;;  %v7560_v41 = vld [vmem:[#allocation11_spill] sm:$0xff] }
 0x1cc   : > { %v5852_v44 = vpop.permute.xlu1 %2215  ;;  %v5854_v50 = vpop.permute.xlu0 %2210 }
 0x1cd   : > { %7550 = vst [vmem:[#allocation5_spill] sm:$0xff] %v5852_v44  ;;  %7551 = vst [vmem:[#allocation4_spill] sm:$0xff] %v5854_v50  ;;  %v7561_v44 = vld [vmem:[#allocation10_spill] sm:$0xff] }
 0x1ce   : > { %3105 = vperm.xlu1 %4732, %v7552_v49   ;;  %3109 = vperm.xlu0 %4731, %v7553_v43   ;;  %v4427_v43 = vld [vmem:[%s7376_s0] ss:$0 sm:$0xff] }
 0x1d0   : > { %v5858_v46 = vpop.permute.xlu1 %2225  ;;  %v5860_v52 = vpop.permute.xlu0 %2220 }
 0x1d1   : > { %7554 = vst [vmem:[#allocation7_spill] sm:$0xff] %v5858_v46  ;;  %7555 = vst [vmem:[#allocation6_spill] sm:$0xff] %v5860_v52  ;;  %v7564_v52 = vld [vmem:[#allocation13_spill] sm:$0xff] }
 0x1d2   : > { %3113 = vperm.xlu1 %4732, %v7556_v51   ;;  %3117 = vperm.xlu0 %4731, %v7557_v45   ;;  %v7565_v51 = vld [vmem:[#allocation12_spill] sm:$0xff]  ;;  %v7567_v46 = vld [vmem:[#allocation21_spill] sm:$0xff] }
 0x1d3   : > { %v4428_v45 = vld [vmem:[%s7376_s0 + $0x2] ss:$0 sm:$0xff] }
 0x1d4   : > { %v5864_v48 = vpop.permute.xlu1 %2235  ;;  %v5866_v47 = vpop.permute.xlu0 %2230  ;;  %v2249_v42 = vmul.f32 %v4428_v45, %v7567_v46 }
 0x1d5   : > { %7558 = vst [vmem:[#allocation9_spill] sm:$0xff] %v5864_v48  ;;  %7559 = vst [vmem:[#allocation8_spill] sm:$0xff] %v5866_v47 }
 0x1d6   : > { %3121 = vperm.xlu1 %4732, %v7560_v41   ;;  %3125 = vperm.xlu0 %4731, %v7561_v44   ;;  %v4556_v44 = vld [vmem:[%s7376_s0 + $0x3] ss:$0 sm:$0xff]  ;;  %v4555_v41 = vld [vmem:[%s7376_s0 + $0x1] ss:$0 sm:$0xff] }
 0x1d8   : > { %v5870_v50 = vpop.permute.xlu1 %2245  ;;  %v5872_v49 = vpop.permute.xlu0 %2240 }
 0x1d9   : > { %7562 = vst [vmem:[#allocation11_spill] sm:$0xff] %v5870_v50  ;;  %7563 = vst [vmem:[#allocation10_spill] sm:$0xff] %v5872_v49  ;;  %v7566_v49 = vld [vmem:[#allocation17_spill] sm:$0xff] }
 0x1da   : > { %3129 = vperm.xlu1 %4732, %v7564_v52   ;;  %3133 = vperm.xlu0 %4731, %v7565_v51   ;;  %v2248_v50 = vmul.f32 %v4427_v43, %v7566_v49  ;;  %v4429_v52 = vld [vmem:[%s7376_s0 + $0x4] ss:$0 sm:$0xff]  ;;  %v4430_v51 = vld [vmem:[%s7376_s0 + $0x6] ss:$0 sm:$0xff]  ;;  %v4557_v49 = vld [vmem:[%s7376_s0 + $0x5] ss:$0 sm:$0xff] }
 0x1db   : > { %v4558_v43 = vld [vmem:[%s7376_s0 + $0x7] ss:$0 sm:$0xff]  ;;  %v2250_v34 = vmul.f32 %v4429_v52, %v7570_v33 }
 0x1dd   : > { %v2894_v47 = vpop.permute.xlu1 %2893  ;;  %v2890_v48 = vpop.permute.xlu0 %2889 }
 0x1de   : > { %v3401_v39 = vmul.f32 %v4556_v44, %v2894_v47  ;;  %v3400_v40 = vmul.f32 %v4555_v41, %v2890_v48  ;;  %3137 = vperm.xlu1 %4732, %v7568_v37   ;;  %3141 = vperm.xlu0 %4731, %v7569_v38   ;;  %v7571_v48 = vld [vmem:[#allocation20_spill] sm:$0xff]  ;;  %v4432_v38 = vld [vmem:[%s7376_s0 + $0xa] ss:$0 sm:$0xff] }
 0x1df   : > { %v2251_v45 = vmul.f32 %v4430_v51, %v7571_v48  ;;  %v7574_v41 = vld [vmem:[#allocation24_spill] sm:$0xff] }
 0x1e0   : > { %v3529_v35 = vadd.f32 %v3401_v39, %v2249_v42  ;;  %v3528_v36 = vadd.f32 %v3400_v40, %v2248_v50  ;;  %v7572_v40 = vld [vmem:[#allocation19_spill] sm:$0xff]  ;;  %v7573_v39 = vld [vmem:[#allocation18_spill] sm:$0xff]  ;;  %v4431_v42 = vld [vmem:[%s7376_s0 + $0x8] ss:$0 sm:$0xff]  ;;  %v2253_v52 = vmul.f32 %v4432_v38, %v7574_v41 }
 0x1e1   : > { %v2898_v46 = vpop.permute.xlu1 %2897  ;;  %v2902_v47 = vpop.permute.xlu0 %2901  ;;  %v4559_v50 = vld [vmem:[%s7376_s0 + $0x9] ss:$0 sm:$0xff]  ;;  %v4433_v38 = vld [vmem:[%s7376_s0 + $0xc] ss:$0 sm:$0xff] }
 0x1e2   : > { %3658 = vst.msk [vmem:[%s5910_s27 + $0x8] sm:$0xff] %vm3656_vm0, %v3529_v35  ;;  %3657 = vst.msk [vmem:[%s5910_s27] sm:$0xff] %vm3656_vm0, %v3528_v36  ;;  %v3402_v37 = vmul.f32 %v4557_v49, %v2898_v46  ;;  %v3403_v33 = vmul.f32 %v4558_v43, %v2902_v47  ;;  %3145 = vperm.xlu1 %4732, %v7572_v40   ;;  %3149 = vperm.xlu0 %4731, %v7573_v39   ;;  %v4560_v35 = vld [vmem:[%s7376_s0 + $0xb] ss:$0 sm:$0xff]  ;;  %v4434_v47 = vld [vmem:[%s7376_s0 + $0xe] ss:$0 sm:$0xff] }
 0x1e3   : > { %v7575_v43 = vld [vmem:[#allocation25_spill] sm:$0xff] }
 0x1e4   : > { %v3530_v36 = vadd.f32 %v3402_v37, %v2250_v34  ;;  %v3531_v44 = vadd.f32 %v3403_v33, %v2251_v45  ;;  %v2252_v46 = vmul.f32 %v4431_v42, %v7575_v43  ;;  %v7576_v34 = vld [vmem:[#allocation23_spill] sm:$0xff]  ;;  %v7577_v45 = vld [vmem:[#allocation22_spill] sm:$0xff]  ;;  %v4561_v37 = vld [vmem:[%s7376_s0 + $0xd] ss:$0 sm:$0xff] }
 0x1e5   : > { %v2906_v51 = vpop.permute.xlu1 %2905  ;;  %v2910_v49 = vpop.permute.xlu0 %2909  ;;  %v4562_v33 = vld [vmem:[%s7376_s0 + $0xf] ss:$0 sm:$0xff] }
 0x1e6   : > { %3659 = vst.msk [vmem:[%s5910_s27 + $0x10] sm:$0xff] %vm3656_vm0, %v3530_v36  ;;  %3660 = vst.msk [vmem:[%s5910_s27 + $0x18] sm:$0xff] %vm3656_vm0, %v3531_v44  ;;  %v3404_v48 = vmul.f32 %v4559_v50, %v2906_v51  ;;  %v3405_v40 = vmul.f32 %v4560_v35, %v2910_v49  ;;  %3153 = vperm.xlu1 %4732, %v7576_v34   ;;  %3157 = vperm.xlu0 %4731, %v7577_v45   ;;  %v7578_v50 = vld [vmem:[#allocation28_spill] sm:$0xff]  ;;  %v7579_v41 = vld [vmem:[#allocation29_spill] sm:$0xff] }
 0x1e7   : > { %v2255_v35 = vmul.f32 %v4434_v47, %v7578_v50  ;;  %v2254_v51 = vmul.f32 %v4433_v38, %v7579_v41  ;;  %v4436_v49 = vld [vmem:[%s7376_s0 + $0x12] ss:$0 sm:$0xff]  ;;  %v4435_v47 = vld [vmem:[%s7376_s0 + $0x10] ss:$0 sm:$0xff]  ;;  %v7583_v50 = vld [vmem:[#allocation33_spill] sm:$0xff] }
 0x1e8   : > { %v3532_v39 = vadd.f32 %v3404_v48, %v2252_v46  ;;  %v3533_v42 = vadd.f32 %v3405_v40, %v2253_v52  ;;  %v7580_v46 = vld [vmem:[#allocation27_spill] sm:$0xff]  ;;  %v7581_v52 = vld [vmem:[#allocation26_spill] sm:$0xff] }
 0x1e9   : > { %v2914_v36 = vpop.permute.xlu1 %2913  ;;  %v2918_v44 = vpop.permute.xlu0 %2917  ;;  %v4563_v48 = vld [vmem:[%s7376_s0 + $0x11] ss:$0 sm:$0xff]  ;;  %v4564_v40 = vld [vmem:[%s7376_s0 + $0x13] ss:$0 sm:$0xff] }
 0x1ea   : > { %3661 = vst.msk [vmem:[%s5910_s27 + $0x20] sm:$0xff] %vm3656_vm0, %v3532_v39  ;;  %3662 = vst.msk [vmem:[%s5910_s27 + $0x28] sm:$0xff] %vm3656_vm0, %v3533_v42  ;;  %v3406_v43 = vmul.f32 %v4561_v37, %v2914_v36  ;;  %v3407_v34 = vmul.f32 %v4562_v33, %v2918_v44  ;;  %3161 = vperm.xlu1 %4732, %v7580_v46   ;;  %3165 = vperm.xlu0 %4731, %v7581_v52   ;;  %v7582_v37 = vld [vmem:[#allocation32_spill] sm:$0xff]  ;;  %v4438_v44 = vld [vmem:[%s7376_s0 + $0x16] ss:$0 sm:$0xff] }
 0x1eb   : > { %v2257_v33 = vmul.f32 %v4436_v49, %v7582_v37  ;;  %v2256_v36 = vmul.f32 %v4435_v47, %v7583_v50  ;;  %v4437_v49 = vld [vmem:[%s7376_s0 + $0x14] ss:$0 sm:$0xff]  ;;  %v7587_v37 = vld [vmem:[#allocation37_spill] sm:$0xff] }
 0x1ec   : > { %v3534_v45 = vadd.f32 %v3406_v43, %v2254_v51  ;;  %v3535_v38 = vadd.f32 %v3407_v34, %v2255_v35  ;;  %v7584_v51 = vld [vmem:[#allocation31_spill] sm:$0xff]  ;;  %v7585_v35 = vld [vmem:[#allocation30_spill] sm:$0xff] }
 0x1ed   : > { %v2922_v39 = vpop.permute.xlu1 %2921  ;;  %v2926_v42 = vpop.permute.xlu0 %2925  ;;  %v4565_v43 = vld [vmem:[%s7376_s0 + $0x15] ss:$0 sm:$0xff]  ;;  %v4566_v34 = vld [vmem:[%s7376_s0 + $0x17] ss:$0 sm:$0xff] }
 0x1ee   : > { %3663 = vst.msk [vmem:[%s5910_s27 + $0x30] sm:$0xff] %vm3656_vm0, %v3534_v45  ;;  %3664 = vst.msk [vmem:[%s5910_s27 + $0x38] sm:$0xff] %vm3656_vm0, %v3535_v38  ;;  %v3408_v41 = vmul.f32 %v4563_v48, %v2922_v39  ;;  %v3409_v46 = vmul.f32 %v4564_v40, %v2926_v42  ;;  %3169 = vperm.xlu1 %4732, %v7584_v51   ;;  %3173 = vperm.xlu0 %4731, %v7585_v35   ;;  %v7586_v48 = vld [vmem:[#allocation36_spill] sm:$0xff]  ;;  %v4440_v42 = vld [vmem:[%s7376_s0 + $0x1a] ss:$0 sm:$0xff] }
 0x1ef   : > { %v2259_v40 = vmul.f32 %v4438_v44, %v7586_v48  ;;  %v2258_v39 = vmul.f32 %v4437_v49, %v7587_v37  ;;  %v4439_v44 = vld [vmem:[%s7376_s0 + $0x18] ss:$0 sm:$0xff]  ;;  %v7591_v48 = vld [vmem:[#allocation41_spill] sm:$0xff] }
 0x1f0   : > { %v3536_v52 = vadd.f32 %v3408_v41, %v2256_v36  ;;  %v3537_v47 = vadd.f32 %v3409_v46, %v2257_v33  ;;  %v7588_v36 = vld [vmem:[#allocation35_spill] sm:$0xff]  ;;  %v7589_v33 = vld [vmem:[#allocation34_spill] sm:$0xff] }
 0x1f1   : > { %v2930_v45 = vpop.permute.xlu1 %2929  ;;  %v2934_v38 = vpop.permute.xlu0 %2933  ;;  %v4567_v41 = vld [vmem:[%s7376_s0 + $0x19] ss:$0 sm:$0xff]  ;;  %v4568_v46 = vld [vmem:[%s7376_s0 + $0x1b] ss:$0 sm:$0xff] }
 0x1f2   : > { %3665 = vst.msk [vmem:[%s5910_s27 + $0x40] sm:$0xff] %vm3656_vm0, %v3536_v52  ;;  %3666 = vst.msk [vmem:[%s5910_s27 + $0x48] sm:$0xff] %vm3656_vm0, %v3537_v47  ;;  %v3410_v50 = vmul.f32 %v4565_v43, %v2930_v45  ;;  %v3411_v51 = vmul.f32 %v4566_v34, %v2934_v38  ;;  %3177 = vperm.xlu1 %4732, %v7588_v36   ;;  %3181 = vperm.xlu0 %4731, %v7589_v33   ;;  %v7590_v43 = vld [vmem:[#allocation40_spill] sm:$0xff]  ;;  %v4442_v38 = vld [vmem:[%s7376_s0 + $0x1e] ss:$0 sm:$0xff] }
 0x1f3   : > { %v2261_v34 = vmul.f32 %v4440_v42, %v7590_v43  ;;  %v2260_v45 = vmul.f32 %v4439_v44, %v7591_v48  ;;  %v4441_v42 = vld [vmem:[%s7376_s0 + $0x1c] ss:$0 sm:$0xff]  ;;  %v7595_v43 = vld [vmem:[#allocation45_spill] sm:$0xff] }
 0x1f4   : > { %v3538_v35 = vadd.f32 %v3410_v50, %v2258_v39  ;;  %v3539_v49 = vadd.f32 %v3411_v51, %v2259_v40  ;;  %v7592_v39 = vld [vmem:[#allocation39_spill] sm:$0xff]  ;;  %v7593_v40 = vld [vmem:[#allocation38_spill] sm:$0xff] }
 0x1f5   : > { %v2938_v52 = vpop.permute.xlu1 %2937  ;;  %v2942_v47 = vpop.permute.xlu0 %2941  ;;  %v4569_v50 = vld [vmem:[%s7376_s0 + $0x1d] ss:$0 sm:$0xff]  ;;  %v4570_v51 = vld [vmem:[%s7376_s0 + $0x1f] ss:$0 sm:$0xff] }
 0x1f6   : > { %3667 = vst.msk [vmem:[%s5910_s27 + $0x50] sm:$0xff] %vm3656_vm0, %v3538_v35  ;;  %3668 = vst.msk [vmem:[%s5910_s27 + $0x58] sm:$0xff] %vm3656_vm0, %v3539_v49  ;;  %v3412_v37 = vmul.f32 %v4567_v41, %v2938_v52  ;;  %v3413_v36 = vmul.f32 %v4568_v46, %v2942_v47  ;;  %3185 = vperm.xlu1 %4732, %v7592_v39   ;;  %3189 = vperm.xlu0 %4731, %v7593_v40   ;;  %v7594_v41 = vld [vmem:[#allocation44_spill] sm:$0xff] }
 0x1f7   : > { %v2263_v46 = vmul.f32 %v4442_v38, %v7594_v41  ;;  %v2262_v52 = vmul.f32 %v4441_v42, %v7595_v43  ;;  %v4444_v47 = vld [vmem:[%s7376_s0 + $0x22] ss:$0 sm:$0xff]  ;;  %v4443_v38 = vld [vmem:[%s7376_s0 + $0x20] ss:$0 sm:$0xff]  ;;  %v7599_v41 = vld [vmem:[#allocation49_spill] sm:$0xff] }
 0x1f8   : > { %v3540_v33 = vadd.f32 %v3412_v37, %v2260_v45  ;;  %v3541_v44 = vadd.f32 %v3413_v36, %v2261_v34  ;;  %v7596_v45 = vld [vmem:[#allocation43_spill] sm:$0xff]  ;;  %v7597_v34 = vld [vmem:[#allocation42_spill] sm:$0xff]  ;;  %v4571_v37 = vld [vmem:[%s7376_s0 + $0x21] ss:$0 sm:$0xff] }
 0x1f9   : > { %v2946_v35 = vpop.permute.xlu1 %2945  ;;  %v2950_v49 = vpop.permute.xlu0 %2949  ;;  %v4572_v36 = vld [vmem:[%s7376_s0 + $0x23] ss:$0 sm:$0xff] }
 0x1fa   : > { %3669 = vst.msk [vmem:[%s5910_s27 + $0x60] sm:$0xff] %vm3656_vm0, %v3540_v33  ;;  %3670 = vst.msk [vmem:[%s5910_s27 + $0x68] sm:$0xff] %vm3656_vm0, %v3541_v44  ;;  %v3414_v48 = vmul.f32 %v4569_v50, %v2946_v35  ;;  %v3415_v39 = vmul.f32 %v4570_v51, %v2950_v49  ;;  %3193 = vperm.xlu1 %4732, %v7596_v45   ;;  %3197 = vperm.xlu0 %4731, %v7597_v34   ;;  %v7598_v50 = vld [vmem:[#allocation48_spill] sm:$0xff] }
 0x1fb   : > { %v2265_v51 = vmul.f32 %v4444_v47, %v7598_v50  ;;  %v2264_v35 = vmul.f32 %v4443_v38, %v7599_v41  ;;  %v4446_v49 = vld [vmem:[%s7376_s0 + $0x26] ss:$0 sm:$0xff]  ;;  %v4445_v47 = vld [vmem:[%s7376_s0 + $0x24] ss:$0 sm:$0xff]  ;;  %v7603_v50 = vld [vmem:[#allocation53_spill] sm:$0xff] }
 0x1fc   : > { %v3542_v40 = vadd.f32 %v3414_v48, %v2262_v52  ;;  %v3543_v42 = vadd.f32 %v3415_v39, %v2263_v46  ;;  %v7600_v52 = vld [vmem:[#allocation47_spill] sm:$0xff]  ;;  %v7601_v46 = vld [vmem:[#allocation46_spill] sm:$0xff]  ;;  %v4573_v48 = vld [vmem:[%s7376_s0 + $0x25] ss:$0 sm:$0xff] }
 0x1fd   : > { %v2954_v33 = vpop.permute.xlu1 %2953  ;;  %v2958_v44 = vpop.permute.xlu0 %2957  ;;  %v4574_v39 = vld [vmem:[%s7376_s0 + $0x27] ss:$0 sm:$0xff] }
 0x1fe   : > { %3671 = vst.msk [vmem:[%s5910_s27 + $0x70] sm:$0xff] %vm3656_vm0, %v3542_v40  ;;  %3672 = vst.msk [vmem:[%s5910_s27 + $0x78] sm:$0xff] %vm3656_vm0, %v3543_v42  ;;  %v3416_v43 = vmul.f32 %v4571_v37, %v2954_v33  ;;  %v3417_v45 = vmul.f32 %v4572_v36, %v2958_v44  ;;  %3201 = vperm.xlu1 %4732, %v7600_v52   ;;  %3205 = vperm.xlu0 %4731, %v7601_v46   ;;  %v7602_v37 = vld [vmem:[#allocation52_spill] sm:$0xff]  ;;  %v4448_v44 = vld [vmem:[%s7376_s0 + $0x2a] ss:$0 sm:$0xff] }
 0x1ff   : > { %v2267_v36 = vmul.f32 %v4446_v49, %v7602_v37  ;;  %v2266_v33 = vmul.f32 %v4445_v47, %v7603_v50  ;;  %v4447_v49 = vld [vmem:[%s7376_s0 + $0x28] ss:$0 sm:$0xff] }
 0x200   : > { %v3544_v34 = vadd.f32 %v3416_v43, %v2264_v35  ;;  %v3545_v38 = vadd.f32 %v3417_v45, %v2265_v51  ;;  %v7604_v35 = vld [vmem:[#allocation51_spill] sm:$0xff]  ;;  %v7605_v51 = vld [vmem:[#allocation50_spill] sm:$0xff]  ;;  %v4575_v43 = vld [vmem:[%s7376_s0 + $0x29] ss:$0 sm:$0xff] }
 0x201   : > { %v2962_v40 = vpop.permute.xlu1 %2961  ;;  %v2966_v42 = vpop.permute.xlu0 %2965  ;;  %v4576_v45 = vld [vmem:[%s7376_s0 + $0x2b] ss:$0 sm:$0xff] }
 0x202   : > { %3673 = vst.msk [vmem:[%s5910_s27 + $0x80] sm:$0xff] %vm3656_vm0, %v3544_v34  ;;  %3674 = vst.msk [vmem:[%s5910_s27 + $0x88] sm:$0xff] %vm3656_vm0, %v3545_v38  ;;  %v3418_v41 = vmul.f32 %v4573_v48, %v2962_v40  ;;  %v3419_v52 = vmul.f32 %v4574_v39, %v2966_v42  ;;  %3209 = vperm.xlu1 %4732, %v7604_v35   ;;  %3213 = vperm.xlu0 %4731, %v7605_v51   ;;  %v7606_v48 = vld [vmem:[#allocation56_spill] sm:$0xff]  ;;  %v7607_v37 = vld [vmem:[#allocation57_spill] sm:$0xff] }
 0x203   : > { %v2269_v39 = vmul.f32 %v4448_v44, %v7606_v48  ;;  %v2268_v40 = vmul.f32 %v4447_v49, %v7607_v37  ;;  %v4450_v42 = vld [vmem:[%s7376_s0 + $0x2e] ss:$0 sm:$0xff]  ;;  %v4449_v44 = vld [vmem:[%s7376_s0 + $0x2c] ss:$0 sm:$0xff] }
 0x204   : > { %v3546_v46 = vadd.f32 %v3418_v41, %v2266_v33  ;;  %v3547_v47 = vadd.f32 %v3419_v52, %v2267_v36  ;;  %v7608_v33 = vld [vmem:[#allocation55_spill] sm:$0xff]  ;;  %v7609_v36 = vld [vmem:[#allocation54_spill] sm:$0xff]  ;;  %v4577_v41 = vld [vmem:[%s7376_s0 + $0x2d] ss:$0 sm:$0xff] }
 0x205   : > { %v2970_v34 = vpop.permute.xlu1 %2969  ;;  %v2974_v38 = vpop.permute.xlu0 %2973  ;;  %v4578_v52 = vld [vmem:[%s7376_s0 + $0x2f] ss:$0 sm:$0xff] }
 0x206   : > { %3675 = vst.msk [vmem:[%s5910_s27 + $0x90] sm:$0xff] %vm3656_vm0, %v3546_v46  ;;  %3676 = vst.msk [vmem:[%s5910_s27 + $0x98] sm:$0xff] %vm3656_vm0, %v3547_v47  ;;  %v3420_v50 = vmul.f32 %v4575_v43, %v2970_v34  ;;  %v3421_v35 = vmul.f32 %v4576_v45, %v2974_v38  ;;  %3217 = vperm.xlu1 %4732, %v7608_v33   ;;  %3221 = vperm.xlu0 %4731, %v7609_v36   ;;  %v7610_v43 = vld [vmem:[#allocation60_spill] sm:$0xff]  ;;  %v7611_v48 = vld [vmem:[#allocation61_spill] sm:$0xff] }
 0x207   : > { %v2271_v45 = vmul.f32 %v4450_v42, %v7610_v43  ;;  %v2270_v34 = vmul.f32 %v4449_v44, %v7611_v48  ;;  %v4452_v38 = vld [vmem:[%s7376_s0 + $0x32] ss:$0 sm:$0xff]  ;;  %v4451_v42 = vld [vmem:[%s7376_s0 + $0x30] ss:$0 sm:$0xff]  ;;  %v7615_v43 = vld [vmem:[#allocation65_spill] sm:$0xff] }
 0x208   : > { %v3548_v51 = vadd.f32 %v3420_v50, %v2268_v40  ;;  %v3549_v49 = vadd.f32 %v3421_v35, %v2269_v39  ;;  %v7612_v40 = vld [vmem:[#allocation59_spill] sm:$0xff]  ;;  %v7613_v39 = vld [vmem:[#allocation58_spill] sm:$0xff] }
 0x209   : > { %v2978_v46 = vpop.permute.xlu1 %2977  ;;  %v2982_v47 = vpop.permute.xlu0 %2981  ;;  %v4579_v50 = vld [vmem:[%s7376_s0 + $0x31] ss:$0 sm:$0xff]  ;;  %v4580_v35 = vld [vmem:[%s7376_s0 + $0x33] ss:$0 sm:$0xff] }
 0x20a   : > { %3677 = vst.msk [vmem:[%s5910_s27 + $0xa0] sm:$0xff] %vm3656_vm0, %v3548_v51  ;;  %3678 = vst.msk [vmem:[%s5910_s27 + $0xa8] sm:$0xff] %vm3656_vm0, %v3549_v49  ;;  %v3422_v37 = vmul.f32 %v4577_v41, %v2978_v46  ;;  %v3423_v33 = vmul.f32 %v4578_v52, %v2982_v47  ;;  %3225 = vperm.xlu1 %4732, %v7612_v40   ;;  %3229 = vperm.xlu0 %4731, %v7613_v39   ;;  %v7614_v41 = vld [vmem:[#allocation64_spill] sm:$0xff]  ;;  %v4454_v47 = vld [vmem:[%s7376_s0 + $0x36] ss:$0 sm:$0xff] }
 0x20b   : > { %v2273_v52 = vmul.f32 %v4452_v38, %v7614_v41  ;;  %v2272_v46 = vmul.f32 %v4451_v42, %v7615_v43  ;;  %v4453_v38 = vld [vmem:[%s7376_s0 + $0x34] ss:$0 sm:$0xff]  ;;  %v7619_v41 = vld [vmem:[#allocation69_spill] sm:$0xff] }
 0x20c   : > { %v3550_v36 = vadd.f32 %v3422_v37, %v2270_v34  ;;  %v3551_v44 = vadd.f32 %v3423_v33, %v2271_v45  ;;  %v7616_v34 = vld [vmem:[#allocation63_spill] sm:$0xff]  ;;  %v7617_v45 = vld [vmem:[#allocation62_spill] sm:$0xff] }
 0x20d   : > { %v2986_v51 = vpop.permute.xlu1 %2985  ;;  %v2990_v49 = vpop.permute.xlu0 %2989  ;;  %v4581_v37 = vld [vmem:[%s7376_s0 + $0x35] ss:$0 sm:$0xff]  ;;  %v4582_v33 = vld [vmem:[%s7376_s0 + $0x37] ss:$0 sm:$0xff] }
 0x20e   : > { %3679 = vst.msk [vmem:[%s5910_s27 + $0xb0] sm:$0xff] %vm3656_vm0, %v3550_v36  ;;  %3680 = vst.msk [vmem:[%s5910_s27 + $0xb8] sm:$0xff] %vm3656_vm0, %v3551_v44  ;;  %v3424_v48 = vmul.f32 %v4579_v50, %v2986_v51  ;;  %v3425_v40 = vmul.f32 %v4580_v35, %v2990_v49  ;;  %3233 = vperm.xlu1 %4732, %v7616_v34   ;;  %3237 = vperm.xlu0 %4731, %v7617_v45   ;;  %v7618_v50 = vld [vmem:[#allocation68_spill] sm:$0xff]  ;;  %v4456_v49 = vld [vmem:[%s7376_s0 + $0x3a] ss:$0 sm:$0xff] }
 0x20f   : > { %v2275_v35 = vmul.f32 %v4454_v47, %v7618_v50  ;;  %v2274_v51 = vmul.f32 %v4453_v38, %v7619_v41  ;;  %v4455_v47 = vld [vmem:[%s7376_s0 + $0x38] ss:$0 sm:$0xff]  ;;  %v7623_v50 = vld [vmem:[#allocation73_spill] sm:$0xff] }
 0x210   : > { %v3552_v39 = vadd.f32 %v3424_v48, %v2272_v46  ;;  %v3553_v42 = vadd.f32 %v3425_v40, %v2273_v52  ;;  %v7620_v46 = vld [vmem:[#allocation67_spill] sm:$0xff]  ;;  %v7621_v52 = vld [vmem:[#allocation66_spill] sm:$0xff] }
 0x211   : > { %v2994_v36 = vpop.permute.xlu1 %2993  ;;  %v2998_v44 = vpop.permute.xlu0 %2997  ;;  %v4583_v48 = vld [vmem:[%s7376_s0 + $0x39] ss:$0 sm:$0xff]  ;;  %v4584_v40 = vld [vmem:[%s7376_s0 + $0x3b] ss:$0 sm:$0xff] }
 0x212   : > { %3681 = vst.msk [vmem:[%s5910_s27 + $0xc0] sm:$0xff] %vm3656_vm0, %v3552_v39  ;;  %3682 = vst.msk [vmem:[%s5910_s27 + $0xc8] sm:$0xff] %vm3656_vm0, %v3553_v42  ;;  %v3426_v43 = vmul.f32 %v4581_v37, %v2994_v36  ;;  %v3427_v34 = vmul.f32 %v4582_v33, %v2998_v44  ;;  %3241 = vperm.xlu1 %4732, %v7620_v46   ;;  %3245 = vperm.xlu0 %4731, %v7621_v52   ;;  %v7622_v37 = vld [vmem:[#allocation72_spill] sm:$0xff]  ;;  %v4458_v44 = vld [vmem:[%s7376_s0 + $0x3e] ss:$0 sm:$0xff] }
 0x213   : > { %v2277_v33 = vmul.f32 %v4456_v49, %v7622_v37  ;;  %v2276_v36 = vmul.f32 %v4455_v47, %v7623_v50  ;;  %v4457_v49 = vld [vmem:[%s7376_s0 + $0x3c] ss:$0 sm:$0xff]  ;;  %v7627_v37 = vld [vmem:[#allocation77_spill] sm:$0xff] }
 0x214   : > { %v3554_v45 = vadd.f32 %v3426_v43, %v2274_v51  ;;  %v3555_v38 = vadd.f32 %v3427_v34, %v2275_v35  ;;  %v7624_v51 = vld [vmem:[#allocation71_spill] sm:$0xff]  ;;  %v7625_v35 = vld [vmem:[#allocation70_spill] sm:$0xff] }
 0x215   : > { %v3002_v39 = vpop.permute.xlu1 %3001  ;;  %v3006_v42 = vpop.permute.xlu0 %3005  ;;  %v4585_v43 = vld [vmem:[%s7376_s0 + $0x3d] ss:$0 sm:$0xff]  ;;  %v4586_v34 = vld [vmem:[%s7376_s0 + $0x3f] ss:$0 sm:$0xff] }
 0x216   : > { %3683 = vst.msk [vmem:[%s5910_s27 + $0xd0] sm:$0xff] %vm3656_vm0, %v3554_v45  ;;  %3684 = vst.msk [vmem:[%s5910_s27 + $0xd8] sm:$0xff] %vm3656_vm0, %v3555_v38  ;;  %v3428_v41 = vmul.f32 %v4583_v48, %v3002_v39  ;;  %v3429_v46 = vmul.f32 %v4584_v40, %v3006_v42  ;;  %3249 = vperm.xlu1 %4732, %v7624_v51   ;;  %3253 = vperm.xlu0 %4731, %v7625_v35   ;;  %v7626_v48 = vld [vmem:[#allocation76_spill] sm:$0xff] }
 0x217   : > { %v2279_v40 = vmul.f32 %v4458_v44, %v7626_v48  ;;  %v2278_v39 = vmul.f32 %v4457_v49, %v7627_v37  ;;  %v4460_v42 = vld [vmem:[%s7376_s0 + $0x42] ss:$0 sm:$0xff]  ;;  %v4459_v44 = vld [vmem:[%s7376_s0 + $0x40] ss:$0 sm:$0xff]  ;;  %v7631_v48 = vld [vmem:[#allocation81_spill] sm:$0xff] }
 0x218   : > { %v3556_v52 = vadd.f32 %v3428_v41, %v2276_v36  ;;  %v3557_v47 = vadd.f32 %v3429_v46, %v2277_v33  ;;  %v7628_v36 = vld [vmem:[#allocation75_spill] sm:$0xff]  ;;  %v7629_v33 = vld [vmem:[#allocation74_spill] sm:$0xff]  ;;  %v4587_v41 = vld [vmem:[%s7376_s0 + $0x41] ss:$0 sm:$0xff] }
 0x219   : > { %v3010_v45 = vpop.permute.xlu1 %3009  ;;  %v3014_v38 = vpop.permute.xlu0 %3013  ;;  %v4588_v46 = vld [vmem:[%s7376_s0 + $0x43] ss:$0 sm:$0xff] }
 0x21a   : > { %3685 = vst.msk [vmem:[%s5910_s27 + $0xe0] sm:$0xff] %vm3656_vm0, %v3556_v52  ;;  %3686 = vst.msk [vmem:[%s5910_s27 + $0xe8] sm:$0xff] %vm3656_vm0, %v3557_v47  ;;  %v3430_v50 = vmul.f32 %v4585_v43, %v3010_v45  ;;  %v3431_v51 = vmul.f32 %v4586_v34, %v3014_v38  ;;  %3257 = vperm.xlu1 %4732, %v7628_v36   ;;  %3261 = vperm.xlu0 %4731, %v7629_v33   ;;  %v7630_v43 = vld [vmem:[#allocation80_spill] sm:$0xff] }
 0x21b   : > { %v2281_v34 = vmul.f32 %v4460_v42, %v7630_v43  ;;  %v2280_v45 = vmul.f32 %v4459_v44, %v7631_v48  ;;  %v4462_v38 = vld [vmem:[%s7376_s0 + $0x46] ss:$0 sm:$0xff]  ;;  %v4461_v42 = vld [vmem:[%s7376_s0 + $0x44] ss:$0 sm:$0xff]  ;;  %v7635_v43 = vld [vmem:[#allocation85_spill] sm:$0xff] }
 0x21c   : > { %v3558_v35 = vadd.f32 %v3430_v50, %v2278_v39  ;;  %v3559_v49 = vadd.f32 %v3431_v51, %v2279_v40  ;;  %v7632_v39 = vld [vmem:[#allocation79_spill] sm:$0xff]  ;;  %v7633_v40 = vld [vmem:[#allocation78_spill] sm:$0xff]  ;;  %v4589_v50 = vld [vmem:[%s7376_s0 + $0x45] ss:$0 sm:$0xff] }
 0x21d   : > { %v3018_v52 = vpop.permute.xlu1 %3017  ;;  %v3022_v47 = vpop.permute.xlu0 %3021  ;;  %v4590_v51 = vld [vmem:[%s7376_s0 + $0x47] ss:$0 sm:$0xff] }
 0x21e   : > { %3687 = vst.msk [vmem:[%s5910_s27 + $0xf0] sm:$0xff] %vm3656_vm0, %v3558_v35  ;;  %3688 = vst.msk [vmem:[%s5910_s27 + $0xf8] sm:$0xff] %vm3656_vm0, %v3559_v49  ;;  %v3432_v37 = vmul.f32 %v4587_v41, %v3018_v52  ;;  %v3433_v36 = vmul.f32 %v4588_v46, %v3022_v47  ;;  %3265 = vperm.xlu1 %4732, %v7632_v39   ;;  %3269 = vperm.xlu0 %4731, %v7633_v40   ;;  %v7634_v41 = vld [vmem:[#allocation84_spill] sm:$0xff]  ;;  %v4464_v47 = vld [vmem:[%s7376_s0 + $0x4a] ss:$0 sm:$0xff] }
 0x21f   : > { %v2283_v46 = vmul.f32 %v4462_v38, %v7634_v41  ;;  %v2282_v52 = vmul.f32 %v4461_v42, %v7635_v43  ;;  %v4463_v38 = vld [vmem:[%s7376_s0 + $0x48] ss:$0 sm:$0xff]  ;;  %v7639_v41 = vld [vmem:[#allocation87_spill] sm:$0xff] }
 0x220   : > { %v3560_v33 = vadd.f32 %v3432_v37, %v2280_v45  ;;  %v3561_v44 = vadd.f32 %v3433_v36, %v2281_v34  ;;  %v7636_v45 = vld [vmem:[#allocation83_spill] sm:$0xff]  ;;  %v7637_v34 = vld [vmem:[#allocation82_spill] sm:$0xff]  ;;  %v4591_v37 = vld [vmem:[%s7376_s0 + $0x49] ss:$0 sm:$0xff] }
 0x221   : > { %v3026_v35 = vpop.permute.xlu1 %3025  ;;  %v3030_v49 = vpop.permute.xlu0 %3029  ;;  %v4592_v36 = vld [vmem:[%s7376_s0 + $0x4b] ss:$0 sm:$0xff] }
 0x222   : > { %3689 = vst.msk [vmem:[%s5910_s27 + $0x100] sm:$0xff] %vm3656_vm0, %v3560_v33  ;;  %3690 = vst.msk [vmem:[%s5910_s27 + $0x108] sm:$0xff] %vm3656_vm0, %v3561_v44  ;;  %v3434_v48 = vmul.f32 %v4589_v50, %v3026_v35  ;;  %v3435_v39 = vmul.f32 %v4590_v51, %v3030_v49  ;;  %3273 = vperm.xlu1 %4732, %v7636_v45   ;;  %3277 = vperm.xlu0 %4731, %v7637_v34   ;;  %v7638_v50 = vld [vmem:[#allocation86_spill] sm:$0xff]  ;;  %v4466_v49 = vld [vmem:[%s7376_s0 + $0x4e] ss:$0 sm:$0xff] }
 0x223   : > { %v2285_v51 = vmul.f32 %v4464_v47, %v7638_v50  ;;  %v2284_v35 = vmul.f32 %v4463_v38, %v7639_v41  ;;  %v4465_v47 = vld [vmem:[%s7376_s0 + $0x4c] ss:$0 sm:$0xff] }
 0x224   : > { %v3562_v40 = vadd.f32 %v3434_v48, %v2282_v52  ;;  %v3563_v42 = vadd.f32 %v3435_v39, %v2283_v46  ;;  %v4733_v52 = vld [vmem:[%s5134_s29 + $0x310] sm:$0xff]  ;;  %v4734_v46 = vld [vmem:[%s5134_s29 + $0x318] sm:$0xff]  ;;  %v4593_v48 = vld [vmem:[%s7376_s0 + $0x4d] ss:$0 sm:$0xff] }
 0x225   : > { %v3034_v33 = vpop.permute.xlu1 %3033  ;;  %v3038_v44 = vpop.permute.xlu0 %3037  ;;  %v4594_v39 = vld [vmem:[%s7376_s0 + $0x4f] ss:$0 sm:$0xff] }
 0x226   : > { %3691 = vst.msk [vmem:[%s5910_s27 + $0x110] sm:$0xff] %vm3656_vm0, %v3562_v40  ;;  %3692 = vst.msk [vmem:[%s5910_s27 + $0x118] sm:$0xff] %vm3656_vm0, %v3563_v42  ;;  %v3436_v43 = vmul.f32 %v4591_v37, %v3034_v33  ;;  %v3437_v45 = vmul.f32 %v4592_v36, %v3038_v44  ;;  %3281 = vperm.xlu1 %4732, %v4733_v52   ;;  %3285 = vperm.xlu0 %4731, %v4734_v46   ;;  %v7640_v37 = vld [vmem:[#allocation88_spill] sm:$0xff]  ;;  %v7641_v50 = vld [vmem:[#allocation89_spill] sm:$0xff] }
 0x227   : > { %v2287_v36 = vmul.f32 %v4466_v49, %v7640_v37  ;;  %v2286_v33 = vmul.f32 %v4465_v47, %v7641_v50  ;;  %v4468_v44 = vld [vmem:[%s7376_s0 + $0x52] ss:$0 sm:$0xff]  ;;  %v4467_v49 = vld [vmem:[%s7376_s0 + $0x50] ss:$0 sm:$0xff]  ;;  %v7643_v37 = vld [vmem:[#allocation91_spill] sm:$0xff] }
 0x228   : > { %v3564_v34 = vadd.f32 %v3436_v43, %v2284_v35  ;;  %v3565_v38 = vadd.f32 %v3437_v45, %v2285_v51  ;;  %v4735_v35 = vld [vmem:[%s5134_s29 + $0x320] sm:$0xff]  ;;  %v4736_v51 = vld [vmem:[%s5134_s29 + $0x328] sm:$0xff]  ;;  %v4595_v43 = vld [vmem:[%s7376_s0 + $0x51] ss:$0 sm:$0xff] }
 0x229   : > { %v3042_v40 = vpop.permute.xlu1 %3041  ;;  %v3046_v42 = vpop.permute.xlu0 %3045  ;;  %v4596_v45 = vld [vmem:[%s7376_s0 + $0x53] ss:$0 sm:$0xff] }
 0x22a   : > { %3693 = vst.msk [vmem:[%s5910_s27 + $0x120] sm:$0xff] %vm3656_vm0, %v3564_v34  ;;  %3694 = vst.msk [vmem:[%s5910_s27 + $0x128] sm:$0xff] %vm3656_vm0, %v3565_v38  ;;  %v3438_v41 = vmul.f32 %v4593_v48, %v3042_v40  ;;  %v3439_v52 = vmul.f32 %v4594_v39, %v3046_v42  ;;  %3289 = vperm.xlu1 %4732, %v4735_v35   ;;  %3293 = vperm.xlu0 %4731, %v4736_v51   ;;  %v7642_v48 = vld [vmem:[#allocation90_spill] sm:$0xff] }
 0x22b   : > { %v2289_v39 = vmul.f32 %v4468_v44, %v7642_v48  ;;  %v2288_v40 = vmul.f32 %v4467_v49, %v7643_v37  ;;  %v4470_v42 = vld [vmem:[%s7376_s0 + $0x56] ss:$0 sm:$0xff]  ;;  %v4469_v44 = vld [vmem:[%s7376_s0 + $0x54] ss:$0 sm:$0xff]  ;;  %v7645_v48 = vld [vmem:[#allocation93_spill] sm:$0xff] }
 0x22c   : > { %v3566_v46 = vadd.f32 %v3438_v41, %v2286_v33  ;;  %v3567_v47 = vadd.f32 %v3439_v52, %v2287_v36  ;;  %v4737_v33 = vld [vmem:[%s5134_s29 + $0x330] sm:$0xff]  ;;  %v4738_v36 = vld [vmem:[%s5134_s29 + $0x338] sm:$0xff] }
 0x22d   : > { %v3050_v34 = vpop.permute.xlu1 %3049  ;;  %v3054_v38 = vpop.permute.xlu0 %3053  ;;  %v4597_v41 = vld [vmem:[%s7376_s0 + $0x55] ss:$0 sm:$0xff]  ;;  %v4598_v52 = vld [vmem:[%s7376_s0 + $0x57] ss:$0 sm:$0xff] }
 0x22e   : > { %3695 = vst.msk [vmem:[%s5910_s27 + $0x130] sm:$0xff] %vm3656_vm0, %v3566_v46  ;;  %3696 = vst.msk [vmem:[%s5910_s27 + $0x138] sm:$0xff] %vm3656_vm0, %v3567_v47  ;;  %v3440_v50 = vmul.f32 %v4595_v43, %v3050_v34  ;;  %v3441_v35 = vmul.f32 %v4596_v45, %v3054_v38  ;;  %3297 = vperm.xlu1 %4732, %v4737_v33   ;;  %3301 = vperm.xlu0 %4731, %v4738_v36   ;;  %v7644_v43 = vld [vmem:[#allocation92_spill] sm:$0xff]  ;;  %v4472_v38 = vld [vmem:[%s7376_s0 + $0x5a] ss:$0 sm:$0xff] }
 0x22f   : > { %v2291_v45 = vmul.f32 %v4470_v42, %v7644_v43  ;;  %v2290_v34 = vmul.f32 %v4469_v44, %v7645_v48  ;;  %v4471_v42 = vld [vmem:[%s7376_s0 + $0x58] ss:$0 sm:$0xff] }
 0x230   : > { %v3568_v51 = vadd.f32 %v3440_v50, %v2288_v40  ;;  %v3569_v49 = vadd.f32 %v3441_v35, %v2289_v39  ;;  %v4739_v40 = vld [vmem:[%s5134_s29 + $0x340] sm:$0xff]  ;;  %v4740_v39 = vld [vmem:[%s5134_s29 + $0x348] sm:$0xff]  ;;  %v4599_v50 = vld [vmem:[%s7376_s0 + $0x59] ss:$0 sm:$0xff] }
 0x231   : > { %v3058_v46 = vpop.permute.xlu1 %3057  ;;  %v3062_v47 = vpop.permute.xlu0 %3061  ;;  %v4600_v35 = vld [vmem:[%s7376_s0 + $0x5b] ss:$0 sm:$0xff] }
 0x232   : > { %3697 = vst.msk [vmem:[%s5910_s27 + $0x140] sm:$0xff] %vm3656_vm0, %v3568_v51  ;;  %3698 = vst.msk [vmem:[%s5910_s27 + $0x148] sm:$0xff] %vm3656_vm0, %v3569_v49  ;;  %v3442_v37 = vmul.f32 %v4597_v41, %v3058_v46  ;;  %v3443_v33 = vmul.f32 %v4598_v52, %v3062_v47  ;;  %3305 = vperm.xlu1 %4732, %v4739_v40   ;;  %3309 = vperm.xlu0 %4731, %v4740_v39   ;;  %v7646_v41 = vld [vmem:[#allocation94_spill] sm:$0xff]  ;;  %v7647_v43 = vld [vmem:[#allocation95_spill] sm:$0xff] }
 0x233   : > { %v2293_v52 = vmul.f32 %v4472_v38, %v7646_v41  ;;  %v2292_v46 = vmul.f32 %v4471_v42, %v7647_v43  ;;  %v4474_v47 = vld [vmem:[%s7376_s0 + $0x5e] ss:$0 sm:$0xff]  ;;  %v4473_v38 = vld [vmem:[%s7376_s0 + $0x5c] ss:$0 sm:$0xff]  ;;  %v7649_v41 = vld [vmem:[#allocation97_spill] sm:$0xff] }
 0x234   : > { %v3570_v36 = vadd.f32 %v3442_v37, %v2290_v34  ;;  %v3571_v44 = vadd.f32 %v3443_v33, %v2291_v45  ;;  %v4741_v34 = vld [vmem:[%s5134_s29 + $0x350] sm:$0xff]  ;;  %v4742_v45 = vld [vmem:[%s5134_s29 + $0x358] sm:$0xff] }
 0x235   : > { %v3066_v51 = vpop.permute.xlu1 %3065  ;;  %v3070_v49 = vpop.permute.xlu0 %3069  ;;  %v4601_v37 = vld [vmem:[%s7376_s0 + $0x5d] ss:$0 sm:$0xff]  ;;  %v4602_v33 = vld [vmem:[%s7376_s0 + $0x5f] ss:$0 sm:$0xff] }
 0x236   : > { %3699 = vst.msk [vmem:[%s5910_s27 + $0x150] sm:$0xff] %vm3656_vm0, %v3570_v36  ;;  %3700 = vst.msk [vmem:[%s5910_s27 + $0x158] sm:$0xff] %vm3656_vm0, %v3571_v44  ;;  %v3444_v48 = vmul.f32 %v4599_v50, %v3066_v51  ;;  %v3445_v40 = vmul.f32 %v4600_v35, %v3070_v49  ;;  %3313 = vperm.xlu1 %4732, %v4741_v34   ;;  %3317 = vperm.xlu0 %4731, %v4742_v45   ;;  %v7648_v50 = vld [vmem:[#allocation96_spill] sm:$0xff] }
 0x237   : > { %v2295_v35 = vmul.f32 %v4474_v47, %v7648_v50  ;;  %v2294_v51 = vmul.f32 %v4473_v38, %v7649_v41  ;;  %v4476_v49 = vld [vmem:[%s7376_s0 + $0x62] ss:$0 sm:$0xff]  ;;  %v4475_v47 = vld [vmem:[%s7376_s0 + $0x60] ss:$0 sm:$0xff]  ;;  %v7651_v50 = vld [vmem:[#allocation99_spill] sm:$0xff] }
 0x238   : > { %v3572_v39 = vadd.f32 %v3444_v48, %v2292_v46  ;;  %v3573_v42 = vadd.f32 %v3445_v40, %v2293_v52  ;;  %v4743_v46 = vld [vmem:[%s5134_s29 + $0x360] sm:$0xff]  ;;  %v4744_v52 = vld [vmem:[%s5134_s29 + $0x368] sm:$0xff] }
 0x239   : > { %v3074_v36 = vpop.permute.xlu1 %3073  ;;  %v3078_v44 = vpop.permute.xlu0 %3077  ;;  %v4603_v48 = vld [vmem:[%s7376_s0 + $0x61] ss:$0 sm:$0xff]  ;;  %v4604_v40 = vld [vmem:[%s7376_s0 + $0x63] ss:$0 sm:$0xff] }
 0x23a   : > { %3701 = vst.msk [vmem:[%s5910_s27 + $0x160] sm:$0xff] %vm3656_vm0, %v3572_v39  ;;  %3702 = vst.msk [vmem:[%s5910_s27 + $0x168] sm:$0xff] %vm3656_vm0, %v3573_v42  ;;  %v3446_v43 = vmul.f32 %v4601_v37, %v3074_v36  ;;  %v3447_v34 = vmul.f32 %v4602_v33, %v3078_v44  ;;  %3321 = vperm.xlu1 %4732, %v4743_v46   ;;  %3325 = vperm.xlu0 %4731, %v4744_v52   ;;  %v7650_v37 = vld [vmem:[#allocation98_spill] sm:$0xff]  ;;  %v4478_v44 = vld [vmem:[%s7376_s0 + $0x66] ss:$0 sm:$0xff] }
 0x23b   : > { %v2297_v33 = vmul.f32 %v4476_v49, %v7650_v37  ;;  %v2296_v36 = vmul.f32 %v4475_v47, %v7651_v50  ;;  %v4477_v49 = vld [vmem:[%s7376_s0 + $0x64] ss:$0 sm:$0xff]  ;;  %v7653_v37 = vld [vmem:[#allocation101_spill] sm:$0xff] }
 0x23c   : > { %v3574_v45 = vadd.f32 %v3446_v43, %v2294_v51  ;;  %v3575_v38 = vadd.f32 %v3447_v34, %v2295_v35  ;;  %v4745_v51 = vld [vmem:[%s5134_s29 + $0x370] sm:$0xff]  ;;  %v4746_v35 = vld [vmem:[%s5134_s29 + $0x378] sm:$0xff]  ;;  %v4605_v43 = vld [vmem:[%s7376_s0 + $0x65] ss:$0 sm:$0xff] }
 0x23d   : > { %v3082_v39 = vpop.permute.xlu1 %3081  ;;  %v3086_v42 = vpop.permute.xlu0 %3085  ;;  %v4606_v34 = vld [vmem:[%s7376_s0 + $0x67] ss:$0 sm:$0xff] }
 0x23e   : > { %3703 = vst.msk [vmem:[%s5910_s27 + $0x170] sm:$0xff] %vm3656_vm0, %v3574_v45  ;;  %3704 = vst.msk [vmem:[%s5910_s27 + $0x178] sm:$0xff] %vm3656_vm0, %v3575_v38  ;;  %v3448_v41 = vmul.f32 %v4603_v48, %v3082_v39  ;;  %v3449_v46 = vmul.f32 %v4604_v40, %v3086_v42  ;;  %3329 = vperm.xlu1 %4732, %v4745_v51   ;;  %3333 = vperm.xlu0 %4731, %v4746_v35   ;;  %v7652_v48 = vld [vmem:[#allocation100_spill] sm:$0xff]  ;;  %v4480_v42 = vld [vmem:[%s7376_s0 + $0x6a] ss:$0 sm:$0xff] }
 0x23f   : > { %v2299_v40 = vmul.f32 %v4478_v44, %v7652_v48  ;;  %v2298_v39 = vmul.f32 %v4477_v49, %v7653_v37  ;;  %v4479_v44 = vld [vmem:[%s7376_s0 + $0x68] ss:$0 sm:$0xff]  ;;  %v7655_v48 = vld [vmem:[#allocation103_spill] sm:$0xff] }
 0x240   : > { %v3576_v52 = vadd.f32 %v3448_v41, %v2296_v36  ;;  %v3577_v47 = vadd.f32 %v3449_v46, %v2297_v33  ;;  %v4747_v36 = vld [vmem:[%s5134_s29 + $0x380] sm:$0xff]  ;;  %v4748_v33 = vld [vmem:[%s5134_s29 + $0x388] sm:$0xff] }
 0x241   : > { %v3090_v45 = vpop.permute.xlu1 %3089  ;;  %v3094_v38 = vpop.permute.xlu0 %3093  ;;  %v4607_v41 = vld [vmem:[%s7376_s0 + $0x69] ss:$0 sm:$0xff]  ;;  %v4608_v46 = vld [vmem:[%s7376_s0 + $0x6b] ss:$0 sm:$0xff] }
 0x242   : > { %3705 = vst.msk [vmem:[%s5910_s27 + $0x180] sm:$0xff] %vm3656_vm0, %v3576_v52  ;;  %3706 = vst.msk [vmem:[%s5910_s27 + $0x188] sm:$0xff] %vm3656_vm0, %v3577_v47  ;;  %v3450_v50 = vmul.f32 %v4605_v43, %v3090_v45  ;;  %v3451_v51 = vmul.f32 %v4606_v34, %v3094_v38  ;;  %3337 = vperm.xlu1 %4732, %v4747_v36   ;;  %3341 = vperm.xlu0 %4731, %v4748_v33   ;;  %v7654_v43 = vld [vmem:[#allocation102_spill] sm:$0xff]  ;;  %v4482_v38 = vld [vmem:[%s7376_s0 + $0x6e] ss:$0 sm:$0xff] }
 0x243   : > { %v2301_v34 = vmul.f32 %v4480_v42, %v7654_v43  ;;  %v2300_v45 = vmul.f32 %v4479_v44, %v7655_v48  ;;  %v4481_v42 = vld [vmem:[%s7376_s0 + $0x6c] ss:$0 sm:$0xff] }
 0x244   : > { %v3578_v35 = vadd.f32 %v3450_v50, %v2298_v39  ;;  %v3579_v49 = vadd.f32 %v3451_v51, %v2299_v40  ;;  %v4749_v39 = vld [vmem:[%s5134_s29 + $0x390] sm:$0xff]  ;;  %v4750_v40 = vld [vmem:[%s5134_s29 + $0x398] sm:$0xff]  ;;  %v4609_v50 = vld [vmem:[%s7376_s0 + $0x6d] ss:$0 sm:$0xff] }
 0x245   : > { %v3098_v52 = vpop.permute.xlu1 %3097  ;;  %v3102_v47 = vpop.permute.xlu0 %3101  ;;  %v4610_v51 = vld [vmem:[%s7376_s0 + $0x6f] ss:$0 sm:$0xff] }
 0x246   : > { %3707 = vst.msk [vmem:[%s5910_s27 + $0x190] sm:$0xff] %vm3656_vm0, %v3578_v35  ;;  %3708 = vst.msk [vmem:[%s5910_s27 + $0x198] sm:$0xff] %vm3656_vm0, %v3579_v49  ;;  %v3452_v37 = vmul.f32 %v4607_v41, %v3098_v52  ;;  %v3453_v36 = vmul.f32 %v4608_v46, %v3102_v47  ;;  %3345 = vperm.xlu1 %4732, %v4749_v39   ;;  %3349 = vperm.xlu0 %4731, %v4750_v40   ;;  %v7656_v41 = vld [vmem:[#allocation104_spill] sm:$0xff]  ;;  %v7657_v43 = vld [vmem:[#allocation105_spill] sm:$0xff] }
 0x247   : > { %v2303_v46 = vmul.f32 %v4482_v38, %v7656_v41  ;;  %v2302_v52 = vmul.f32 %v4481_v42, %v7657_v43  ;;  %v4484_v47 = vld [vmem:[%s7376_s0 + $0x72] ss:$0 sm:$0xff]  ;;  %v4483_v38 = vld [vmem:[%s7376_s0 + $0x70] ss:$0 sm:$0xff]  ;;  %v7659_v41 = vld [vmem:[#allocation107_spill] sm:$0xff] }
 0x248   : > { %v3580_v33 = vadd.f32 %v3452_v37, %v2300_v45  ;;  %v3581_v44 = vadd.f32 %v3453_v36, %v2301_v34  ;;  %v4751_v45 = vld [vmem:[%s5134_s29 + $0x3a0] sm:$0xff]  ;;  %v4752_v34 = vld [vmem:[%s5134_s29 + $0x3a8] sm:$0xff]  ;;  %v4611_v37 = vld [vmem:[%s7376_s0 + $0x71] ss:$0 sm:$0xff] }
 0x249   : > { %v3106_v35 = vpop.permute.xlu1 %3105  ;;  %v3110_v49 = vpop.permute.xlu0 %3109  ;;  %v4612_v36 = vld [vmem:[%s7376_s0 + $0x73] ss:$0 sm:$0xff] }
 0x24a   : > { %3709 = vst.msk [vmem:[%s5910_s27 + $0x1a0] sm:$0xff] %vm3656_vm0, %v3580_v33  ;;  %3710 = vst.msk [vmem:[%s5910_s27 + $0x1a8] sm:$0xff] %vm3656_vm0, %v3581_v44  ;;  %v3454_v48 = vmul.f32 %v4609_v50, %v3106_v35  ;;  %v3455_v39 = vmul.f32 %v4610_v51, %v3110_v49  ;;  %3353 = vperm.xlu1 %4732, %v4751_v45   ;;  %3357 = vperm.xlu0 %4731, %v4752_v34   ;;  %v7658_v50 = vld [vmem:[#allocation106_spill] sm:$0xff] }
 0x24b   : > { %v2305_v51 = vmul.f32 %v4484_v47, %v7658_v50  ;;  %v2304_v35 = vmul.f32 %v4483_v38, %v7659_v41  ;;  %v4486_v49 = vld [vmem:[%s7376_s0 + $0x76] ss:$0 sm:$0xff]  ;;  %v4485_v47 = vld [vmem:[%s7376_s0 + $0x74] ss:$0 sm:$0xff]  ;;  %v7661_v50 = vld [vmem:[#allocation109_spill] sm:$0xff] }
 0x24c   : > { %v3582_v40 = vadd.f32 %v3454_v48, %v2302_v52  ;;  %v3583_v42 = vadd.f32 %v3455_v39, %v2303_v46  ;;  %v4753_v52 = vld [vmem:[%s5134_s29 + $0x3b0] sm:$0xff]  ;;  %v4754_v46 = vld [vmem:[%s5134_s29 + $0x3b8] sm:$0xff] }
 0x24d   : > { %v3114_v33 = vpop.permute.xlu1 %3113  ;;  %v3118_v44 = vpop.permute.xlu0 %3117  ;;  %v4613_v48 = vld [vmem:[%s7376_s0 + $0x75] ss:$0 sm:$0xff]  ;;  %v4614_v39 = vld [vmem:[%s7376_s0 + $0x77] ss:$0 sm:$0xff] }
 0x24e   : > { %3711 = vst.msk [vmem:[%s5910_s27 + $0x1b0] sm:$0xff] %vm3656_vm0, %v3582_v40  ;;  %3712 = vst.msk [vmem:[%s5910_s27 + $0x1b8] sm:$0xff] %vm3656_vm0, %v3583_v42  ;;  %v3456_v43 = vmul.f32 %v4611_v37, %v3114_v33  ;;  %v3457_v45 = vmul.f32 %v4612_v36, %v3118_v44  ;;  %3361 = vperm.xlu1 %4732, %v4753_v52   ;;  %3365 = vperm.xlu0 %4731, %v4754_v46   ;;  %v7660_v37 = vld [vmem:[#allocation108_spill] sm:$0xff]  ;;  %v4488_v44 = vld [vmem:[%s7376_s0 + $0x7a] ss:$0 sm:$0xff] }
 0x24f   : > { %v2307_v36 = vmul.f32 %v4486_v49, %v7660_v37  ;;  %v2306_v33 = vmul.f32 %v4485_v47, %v7661_v50  ;;  %v4487_v49 = vld [vmem:[%s7376_s0 + $0x78] ss:$0 sm:$0xff] }
 0x250   : > { %v3584_v34 = vadd.f32 %v3456_v43, %v2304_v35  ;;  %v3585_v38 = vadd.f32 %v3457_v45, %v2305_v51  ;;  %v4755_v35 = vld [vmem:[%s5134_s29 + $0x3c0] sm:$0xff]  ;;  %v4756_v51 = vld [vmem:[%s5134_s29 + $0x3c8] sm:$0xff]  ;;  %v4615_v43 = vld [vmem:[%s7376_s0 + $0x79] ss:$0 sm:$0xff]  ;;  %v2308_v37 = vmul.f32 %v4487_v49, %v5676_v55 }
 0x251   : > { %v3122_v40 = vpop.permute.xlu1 %3121  ;;  %v3126_v42 = vpop.permute.xlu0 %3125  ;;  %v4616_v45 = vld [vmem:[%s7376_s0 + $0x7b] ss:$0 sm:$0xff]  ;;  %v4489_v55 = vld [vmem:[%s7376_s0 + $0x7c] ss:$0 sm:$0xff] }
 0x252   : > { %3713 = vst.msk [vmem:[%s5910_s27 + $0x1c0] sm:$0xff] %vm3656_vm0, %v3584_v34  ;;  %3714 = vst.msk [vmem:[%s5910_s27 + $0x1c8] sm:$0xff] %vm3656_vm0, %v3585_v38  ;;  %v3458_v41 = vmul.f32 %v4613_v48, %v3122_v40  ;;  %v3459_v52 = vmul.f32 %v4614_v39, %v3126_v42  ;;  %3369 = vperm.xlu1 %4732, %v4755_v35   ;;  %3373 = vperm.xlu0 %4731, %v4756_v51   ;;  %v7662_v48 = vld [vmem:[#allocation110_spill] sm:$0xff]  ;;  %v4490_v40 = vld [vmem:[%s7376_s0 + $0x7e] ss:$0 sm:$0xff] }
 0x253   : > { %v2309_v39 = vmul.f32 %v4488_v44, %v7662_v48  ;;  %v4617_v44 = vld [vmem:[%s7376_s0 + $0x7d] ss:$0 sm:$0xff]  ;;  %v2311_v51 = vmul.f32 %v4490_v40, %v5680_v63  ;;  %v4619_v63 = vld [vmem:[%s7376_s0 + $0x81] ss:$0 sm:$0xff] }
 0x254   : > { %v3586_v46 = vadd.f32 %v3458_v41, %v2306_v33  ;;  %v3587_v47 = vadd.f32 %v3459_v52, %v2307_v36  ;;  %v4757_v33 = vld [vmem:[%s5134_s29 + $0x3d0] sm:$0xff]  ;;  %v4758_v36 = vld [vmem:[%s5134_s29 + $0x3d8] sm:$0xff] }
 0x255   : > { %v3130_v34 = vpop.permute.xlu1 %3129  ;;  %v3134_v38 = vpop.permute.xlu0 %3133  ;;  %v4618_v41 = vld [vmem:[%s7376_s0 + $0x7f] ss:$0 sm:$0xff] }
 0x256   : > { %3715 = vst.msk [vmem:[%s5910_s27 + $0x1d0] sm:$0xff] %vm3656_vm0, %v3586_v46  ;;  %3716 = vst.msk [vmem:[%s5910_s27 + $0x1d8] sm:$0xff] %vm3656_vm0, %v3587_v47  ;;  %v3460_v42 = vmul.f32 %v4615_v43, %v3130_v34  ;;  %v3461_v50 = vmul.f32 %v4616_v45, %v3134_v38  ;;  %3377 = vperm.xlu1 %4732, %v4757_v33   ;;  %3381 = vperm.xlu0 %4731, %v4758_v36   ;;  %v4492_v46 = vld [vmem:[%s7376_s0 + $0x82] ss:$0 sm:$0xff]  ;;  %v4620_v38 = vld [vmem:[%s7376_s0 + $0x83] ss:$0 sm:$0xff] }
 0x257   : > { %v2310_v45 = vmul.f32 %v4489_v55, %v5682_v54  ;;  %v4759_v34 = vld [vmem:[%s5134_s29 + $0x3e0] sm:$0xff] }
 0x258   : > { %v3588_v52 = vadd.f32 %v3460_v42, %v2308_v37  ;;  %v3589_v35 = vadd.f32 %v3461_v50, %v2309_v39  ;;  %v4760_v39 = vld [vmem:[%s5134_s29 + $0x3e8] sm:$0xff]  ;;  %v4491_v54 = vld [vmem:[%s7376_s0 + $0x80] ss:$0 sm:$0xff]  ;;  %v2313_v42 = vmul.f32 %v4492_v46, %v5686_v58  ;;  %v4494_v55 = vld [vmem:[%s7376_s0 + $0x86] ss:$0 sm:$0xff] }
 0x259   : > { %v3138_v49 = vpop.permute.xlu1 %3137  ;;  %v3142_v43 = vpop.permute.xlu0 %3141  ;;  %v2312_v36 = vmul.f32 %v4491_v54, %v5688_v60  ;;  %v4493_v58 = vld [vmem:[%s7376_s0 + $0x84] ss:$0 sm:$0xff]  ;;  %v4621_v60 = vld [vmem:[%s7376_s0 + $0x85] ss:$0 sm:$0xff] }
 0x25a   : > { %3717 = vst.msk [vmem:[%s5910_s27 + $0x1e0] sm:$0xff] %vm3656_vm0, %v3588_v52  ;;  %3718 = vst.msk [vmem:[%s5910_s27 + $0x1e8] sm:$0xff] %vm3656_vm0, %v3589_v35  ;;  %v3462_v47 = vmul.f32 %v4617_v44, %v3138_v49  ;;  %v3463_v48 = vmul.f32 %v4618_v41, %v3142_v43  ;;  %3385 = vperm.xlu1 %4732, %v4759_v34   ;;  %3389 = vperm.xlu0 %4731, %v4760_v39   ;;  %v4761_v52 = vld [vmem:[%s5134_s29 + $0x3f0] sm:$0xff]  ;;  %v4762_v35 = vld [vmem:[%s5134_s29 + $0x3f8] sm:$0xff]  ;;  %s4684_s29 = sshll.u32 (%p4855_p6), %s4793_s11, 3 }
 0x25b   : > { %v4496_v34 = vld [vmem:[%s7376_s0 + $0x8a] ss:$0 sm:$0xff]  ;;  %s7106_s15 = scalar_lea.vmem (%p4855_p6), %s7378_s2, %s4684_s29 }
 0x25c   : > { %v3590_v37 = vadd.f32 %v3462_v47, %v2310_v45  ;;  %v3591_v40 = vadd.f32 %v3463_v48, %v2311_v51  ;;  %v4622_v51 = vld [vmem:[%s7376_s0 + $0x87] ss:$0 sm:$0xff]  ;;  %v2315_v47 = vmul.f32 %v4494_v55, %v5690_v53  ;;  %v2314_v48 = vmul.f32 %v4493_v58, %v5692_v57  ;;  %v4623_v53 = vld [vmem:[%s7376_s0 + $0x89] ss:$0 sm:$0xff]  ;;  %v4624_v57 = vld [vmem:[%s7376_s0 + $0x8b] ss:$0 sm:$0xff] }
 0x25d   : > { %v3146_v50 = vpop.permute.xlu1 %3145  ;;  %v3150_v33 = vpop.permute.xlu0 %3149 }
 0x25e   : > { %3719 = vst.msk [vmem:[%s5910_s27 + $0x1f0] sm:$0xff] %vm3656_vm0, %v3590_v37  ;;  %3720 = vst.msk [vmem:[%s5910_s27 + $0x1f8] sm:$0xff] %vm3656_vm0, %v3591_v40  ;;  %v3464_v44 = vmul.f32 %v4619_v63, %v3146_v50  ;;  %v3465_v41 = vmul.f32 %v4620_v38, %v3150_v33  ;;  %3393 = vperm.xlu1 %4732, %v4761_v52   ;;  %3397 = vperm.xlu0 %4731, %v4762_v35   ;;  %v4495_v63 = vld [vmem:[%s7376_s0 + $0x88] ss:$0 sm:$0xff] }
 0x25f   : > { %v2317_v50 = vmul.f32 %v4496_v34, %v5696_v62  ;;  %v2316_v33 = vmul.f32 %v4495_v63, %v5698_v0  ;;  %v4625_v62 = vld [vmem:[%s7376_s0 + $0x8d] ss:$0 sm:$0xff]  ;;  %v4626_v0 = vld [vmem:[%s7376_s0 + $0x8f] ss:$0 sm:$0xff] }
 0x260   : > { %v3592_v49 = vadd.f32 %v3464_v44, %v2312_v36  ;;  %v3593_v43 = vadd.f32 %v3465_v41, %v2313_v42  ;;  %v4498_v36 = vld [vmem:[%s7376_s0 + $0x8e] ss:$0 sm:$0xff]  ;;  %v4497_v41 = vld [vmem:[%s7376_s0 + $0x8c] ss:$0 sm:$0xff] }
 0x261   : > { %v3154_v45 = vpop.permute.xlu1 %3153  ;;  %v3158_v46 = vpop.permute.xlu0 %3157 }
 0x262   : > { %3721 = vst.msk [vmem:[%s5910_s27 + $0x200] sm:$0xff] %vm3656_vm0, %v3592_v49  ;;  %3722 = vst.msk [vmem:[%s5910_s27 + $0x208] sm:$0xff] %vm3656_vm0, %v3593_v43  ;;  %v3466_v39 = vmul.f32 %v4621_v60, %v3154_v45  ;;  %v3467_v54 = vmul.f32 %v4622_v51, %v3158_v46  ;;  %v2319_v51 = vmul.f32 %v4498_v36, %v5702_v56  ;;  %v4500_v43 = vld [vmem:[%s7376_s0 + $0x92] ss:$0 sm:$0xff]  ;;  %v4627_v56 = vld [vmem:[%s7376_s0 + $0x91] ss:$0 sm:$0xff] }
 0x263   : > { %v2318_v49 = vmul.f32 %v4497_v41, %v5704_v61  ;;  %v4628_v61 = vld [vmem:[%s7376_s0 + $0x93] ss:$0 sm:$0xff]  ;;  %v2321_v63 = vmul.f32 %v4500_v43, %v5708_v59  ;;  %v4629_v59 = vld [vmem:[%s7376_s0 + $0x95] ss:$0 sm:$0xff]  ;;  %v4504_v41 = vld [vmem:[%s7376_s0 + $0x9a] ss:$0 sm:$0xff] }
 0x264   : > { %v3594_v38 = vadd.f32 %v3466_v39, %v2314_v48  ;;  %v3595_v37 = vadd.f32 %v3467_v54, %v2315_v47  ;;  %v4499_v47 = vld [vmem:[%s7376_s0 + $0x90] ss:$0 sm:$0xff] }
 0x265   : > { %v3162_v40 = vpop.permute.xlu1 %3161  ;;  %v3166_v42 = vpop.permute.xlu0 %3165 }
 0x266   : > { %3723 = vst.msk [vmem:[%s5910_s27 + $0x210] sm:$0xff] %vm3656_vm0, %v3594_v38  ;;  %3724 = vst.msk [vmem:[%s5910_s27 + $0x218] sm:$0xff] %vm3656_vm0, %v3595_v37  ;;  %v3468_v55 = vmul.f32 %v4623_v53, %v3162_v40  ;;  %v3469_v44 = vmul.f32 %v4624_v57, %v3166_v42  ;;  %v2320_v53 = vmul.f32 %v4499_v47, %v5710_v4  ;;  %v4502_v57 = vld [vmem:[%s7376_s0 + $0x96] ss:$0 sm:$0xff]  ;;  %v4501_v40 = vld [vmem:[%s7376_s0 + $0x94] ss:$0 sm:$0xff] }
 0x267   : > { %v4630_v4 = vld [vmem:[%s7376_s0 + $0x97] ss:$0 sm:$0xff] }
 0x268   : > { %v3596_v52 = vadd.f32 %v3468_v55, %v2316_v33  ;;  %v3597_v35 = vadd.f32 %v3469_v44, %v2317_v50  ;;  %v2323_v55 = vmul.f32 %v4502_v57, %v5714_v2  ;;  %v2322_v44 = vmul.f32 %v4501_v40, %v5716_v1  ;;  %v4631_v2 = vld [vmem:[%s7376_s0 + $0x99] ss:$0 sm:$0xff]  ;;  %v4632_v1 = vld [vmem:[%s7376_s0 + $0x9b] ss:$0 sm:$0xff] }
 0x269   : > { %v3170_v58 = vpop.permute.xlu1 %3169  ;;  %v3174_v60 = vpop.permute.xlu0 %3173 }
 0x26a   : > { %3725 = vst.msk [vmem:[%s5910_s27 + $0x220] sm:$0xff] %vm3656_vm0, %v3596_v52  ;;  %3726 = vst.msk [vmem:[%s5910_s27 + $0x228] sm:$0xff] %vm3656_vm0, %v3597_v35  ;;  %v3470_v45 = vmul.f32 %v4625_v62, %v3170_v58  ;;  %v3471_v46 = vmul.f32 %v4626_v0, %v3174_v60  ;;  %v4503_v52 = vld [vmem:[%s7376_s0 + $0x98] ss:$0 sm:$0xff] }
 0x26b   : > { %v2324_v43 = vmul.f32 %v4503_v52, %v5722_v6  ;;  %v4634_v6 = vld [vmem:[%s7376_s0 + $0x9f] ss:$0 sm:$0xff] }
 0x26c   : > { %v3598_v48 = vadd.f32 %v3470_v45, %v2318_v49  ;;  %v3599_v34 = vadd.f32 %v3471_v46, %v2319_v51  ;;  %v2325_v49 = vmul.f32 %v4504_v41, %v5720_v3  ;;  %v4506_v45 = vld [vmem:[%s7376_s0 + $0x9e] ss:$0 sm:$0xff]  ;;  %v4633_v3 = vld [vmem:[%s7376_s0 + $0x9d] ss:$0 sm:$0xff]  ;;  %v4509_v41 = vld [vmem:[%s7376_s0 + $0xa4] ss:$0 sm:$0xff] }
 0x26d   : > { %v3178_v39 = vpop.permute.xlu1 %3177  ;;  %v3182_v54 = vpop.permute.xlu0 %3181 }
 0x26e   : > { %3727 = vst.msk [vmem:[%s5910_s27 + $0x230] sm:$0xff] %vm3656_vm0, %v3598_v48  ;;  %3728 = vst.msk [vmem:[%s5910_s27 + $0x238] sm:$0xff] %vm3656_vm0, %v3599_v34  ;;  %v3472_v38 = vmul.f32 %v4627_v56, %v3178_v39  ;;  %v3473_v37 = vmul.f32 %v4628_v61, %v3182_v54  ;;  %v4505_v56 = vld [vmem:[%s7376_s0 + $0x9c] ss:$0 sm:$0xff]  ;;  %v2327_v54 = vmul.f32 %v4506_v45, %v5726_v5  ;;  %v4635_v5 = vld [vmem:[%s7376_s0 + $0xa1] ss:$0 sm:$0xff] }
 0x270   : > { %v3600_v42 = vadd.f32 %v3472_v38, %v2320_v53  ;;  %v3601_v50 = vadd.f32 %v3473_v37, %v2321_v63  ;;  %v2326_v63 = vmul.f32 %v4505_v56, %v5728_v8  ;;  %v4508_v53 = vld [vmem:[%s7376_s0 + $0xa2] ss:$0 sm:$0xff]  ;;  %v4507_v37 = vld [vmem:[%s7376_s0 + $0xa0] ss:$0 sm:$0xff]  ;;  %v4636_v8 = vld [vmem:[%s7376_s0 + $0xa3] ss:$0 sm:$0xff] }
 0x271   : > { %v3186_v33 = vpop.permute.xlu1 %3185  ;;  %v3190_v36 = vpop.permute.xlu0 %3189 }
 0x272   : > { %3729 = vst.msk [vmem:[%s5910_s27 + $0x240] sm:$0xff] %vm3656_vm0, %v3600_v42  ;;  %3730 = vst.msk [vmem:[%s5910_s27 + $0x248] sm:$0xff] %vm3656_vm0, %v3601_v50  ;;  %v3474_v62 = vmul.f32 %v4629_v59, %v3186_v33  ;;  %v3475_v0 = vmul.f32 %v4630_v4, %v3190_v36  ;;  %v2329_v50 = vmul.f32 %v4508_v53, %v5732_v7  ;;  %v4510_v36 = vld [vmem:[%s7376_s0 + $0xa6] ss:$0 sm:$0xff]  ;;  %v4637_v7 = vld [vmem:[%s7376_s0 + $0xa5] ss:$0 sm:$0xff] }
 0x273   : > { %v2328_v33 = vmul.f32 %v4507_v37, %v5734_v10  ;;  %v4638_v10 = vld [vmem:[%s7376_s0 + $0xa7] ss:$0 sm:$0xff]  ;;  %v4516_v37 = vld [vmem:[%s7376_s0 + $0xb2] ss:$0 sm:$0xff] }
 0x274   : > { %v3602_v35 = vadd.f32 %v3474_v62, %v2322_v44  ;;  %v3603_v58 = vadd.f32 %v3475_v0, %v2323_v55 }
 0x275   : > { %v3194_v60 = vpop.permute.xlu1 %3193  ;;  %v3198_v51 = vpop.permute.xlu0 %3197 }
 0x276   : > { %3731 = vst.msk [vmem:[%s5910_s27 + $0x250] sm:$0xff] %vm3656_vm0, %v3602_v35  ;;  %3732 = vst.msk [vmem:[%s5910_s27 + $0x258] sm:$0xff] %vm3656_vm0, %v3603_v58  ;;  %v3476_v46 = vmul.f32 %v4631_v2, %v3194_v60  ;;  %v3477_v47 = vmul.f32 %v4632_v1, %v3198_v51  ;;  %v2331_v1 = vmul.f32 %v4510_v36, %v5738_v9  ;;  %v4512_v58 = vld [vmem:[%s7376_s0 + $0xaa] ss:$0 sm:$0xff]  ;;  %v4639_v9 = vld [vmem:[%s7376_s0 + $0xa9] ss:$0 sm:$0xff] }
 0x277   : > { %v2330_v35 = vmul.f32 %v4509_v41, %v5740_v12  ;;  %v4640_v12 = vld [vmem:[%s7376_s0 + $0xab] ss:$0 sm:$0xff]  ;;  %v2333_v56 = vmul.f32 %v4512_v58, %v5744_v11  ;;  %v4641_v11 = vld [vmem:[%s7376_s0 + $0xad] ss:$0 sm:$0xff] }
 0x278   : > { %v3604_v61 = vadd.f32 %v3476_v46, %v2324_v43  ;;  %v3605_v48 = vadd.f32 %v3477_v47, %v2325_v49  ;;  %v4511_v49 = vld [vmem:[%s7376_s0 + $0xa8] ss:$0 sm:$0xff] }
 0x279   : > { %v3202_v34 = vpop.permute.xlu1 %3201  ;;  %v3206_v39 = vpop.permute.xlu0 %3205 }
 0x27a   : > { %3733 = vst.msk [vmem:[%s5910_s27 + $0x260] sm:$0xff] %vm3656_vm0, %v3604_v61  ;;  %3734 = vst.msk [vmem:[%s5910_s27 + $0x268] sm:$0xff] %vm3656_vm0, %v3605_v48  ;;  %v3478_v57 = vmul.f32 %v4633_v3, %v3202_v34  ;;  %v3479_v38 = vmul.f32 %v4634_v6, %v3206_v39  ;;  %v2332_v3 = vmul.f32 %v4511_v49, %v5746_v14  ;;  %v4514_v6 = vld [vmem:[%s7376_s0 + $0xae] ss:$0 sm:$0xff]  ;;  %v4513_v34 = vld [vmem:[%s7376_s0 + $0xac] ss:$0 sm:$0xff] }
 0x27b   : > { %v4642_v14 = vld [vmem:[%s7376_s0 + $0xaf] ss:$0 sm:$0xff] }
 0x27c   : > { %v3606_v40 = vadd.f32 %v3478_v57, %v2326_v63  ;;  %v3607_v59 = vadd.f32 %v3479_v38, %v2327_v54  ;;  %v2335_v57 = vmul.f32 %v4514_v6, %v5750_v13  ;;  %v2334_v38 = vmul.f32 %v4513_v34, %v5752_v16  ;;  %v4643_v13 = vld [vmem:[%s7376_s0 + $0xb1] ss:$0 sm:$0xff]  ;;  %v4644_v16 = vld [vmem:[%s7376_s0 + $0xb3] ss:$0 sm:$0xff]  ;;  %v4521_v6 = vld [vmem:[%s7376_s0 + $0xbc] ss:$0 sm:$0xff] }
 0x27d   : > { %v3210_v4 = vpop.permute.xlu1 %3209  ;;  %v3214_v42 = vpop.permute.xlu0 %3213 }
 0x27e   : > { %3735 = vst.msk [vmem:[%s5910_s27 + $0x270] sm:$0xff] %vm3656_vm0, %v3606_v40  ;;  %3736 = vst.msk [vmem:[%s5910_s27 + $0x278] sm:$0xff] %vm3656_vm0, %v3607_v59  ;;  %v3480_v55 = vmul.f32 %v4635_v5, %v3210_v4  ;;  %v3481_v44 = vmul.f32 %v4636_v8, %v3214_v42  ;;  %v4515_v40 = vld [vmem:[%s7376_s0 + $0xb0] ss:$0 sm:$0xff] }
 0x27f   : > { %v2336_v36 = vmul.f32 %v4515_v40, %v5758_v18  ;;  %v4646_v18 = vld [vmem:[%s7376_s0 + $0xb7] ss:$0 sm:$0xff] }
 0x280   : > { %v3608_v62 = vadd.f32 %v3480_v55, %v2328_v33  ;;  %v3609_v0 = vadd.f32 %v3481_v44, %v2329_v50  ;;  %v2337_v33 = vmul.f32 %v4516_v37, %v5756_v15  ;;  %v4518_v55 = vld [vmem:[%s7376_s0 + $0xb6] ss:$0 sm:$0xff]  ;;  %v4645_v15 = vld [vmem:[%s7376_s0 + $0xb5] ss:$0 sm:$0xff] }
 0x281   : > { %v3218_v52 = vpop.permute.xlu1 %3217  ;;  %v3222_v2 = vpop.permute.xlu0 %3221 }
 0x282   : > { %3737 = vst.msk [vmem:[%s5910_s27 + $0x280] sm:$0xff] %vm3656_vm0, %v3608_v62  ;;  %3738 = vst.msk [vmem:[%s5910_s27 + $0x288] sm:$0xff] %vm3656_vm0, %v3609_v0  ;;  %v3482_v60 = vmul.f32 %v4637_v7, %v3218_v52  ;;  %v3483_v51 = vmul.f32 %v4638_v10, %v3222_v2  ;;  %v4517_v7 = vld [vmem:[%s7376_s0 + $0xb4] ss:$0 sm:$0xff]  ;;  %v2339_v2 = vmul.f32 %v4518_v55, %v5762_v17  ;;  %v4647_v17 = vld [vmem:[%s7376_s0 + $0xb9] ss:$0 sm:$0xff] }
 0x284   : > { %v3610_v43 = vadd.f32 %v3482_v60, %v2330_v35  ;;  %v3611_v45 = vadd.f32 %v3483_v51, %v2331_v1  ;;  %v2338_v1 = vmul.f32 %v4517_v7, %v5764_v20  ;;  %v4520_v35 = vld [vmem:[%s7376_s0 + $0xba] ss:$0 sm:$0xff]  ;;  %v4519_v51 = vld [vmem:[%s7376_s0 + $0xb8] ss:$0 sm:$0xff]  ;;  %v4648_v20 = vld [vmem:[%s7376_s0 + $0xbb] ss:$0 sm:$0xff] }
 0x285   : > { %v3226_v46 = vpop.permute.xlu1 %3225  ;;  %v3230_v47 = vpop.permute.xlu0 %3229  ;;  %v4528_v7 = vld [vmem:[%s7376_s0 + $0xca] ss:$0 sm:$0xff] }
 0x286   : > { %3739 = vst.msk [vmem:[%s5910_s27 + $0x290] sm:$0xff] %vm3656_vm0, %v3610_v43  ;;  %3740 = vst.msk [vmem:[%s5910_s27 + $0x298] sm:$0xff] %vm3656_vm0, %v3611_v45  ;;  %v3484_v61 = vmul.f32 %v4639_v9, %v3226_v46  ;;  %v3485_v48 = vmul.f32 %v4640_v12, %v3230_v47  ;;  %v2341_v45 = vmul.f32 %v4520_v35, %v5768_v19  ;;  %v4522_v47 = vld [vmem:[%s7376_s0 + $0xbe] ss:$0 sm:$0xff]  ;;  %v4649_v19 = vld [vmem:[%s7376_s0 + $0xbd] ss:$0 sm:$0xff] }
 0x287   : > { %v2340_v46 = vmul.f32 %v4519_v51, %v5770_v22  ;;  %v4650_v22 = vld [vmem:[%s7376_s0 + $0xbf] ss:$0 sm:$0xff] }
 0x288   : > { %v3612_v39 = vadd.f32 %v3484_v61, %v2332_v3  ;;  %v3613_v54 = vadd.f32 %v3485_v48, %v2333_v56 }
 0x289   : > { %v3234_v63 = vpop.permute.xlu1 %3233  ;;  %v3238_v53 = vpop.permute.xlu0 %3237 }
 0x28a   : > { %3741 = vst.msk [vmem:[%s5910_s27 + $0x2a0] sm:$0xff] %vm3656_vm0, %v3612_v39  ;;  %3742 = vst.msk [vmem:[%s5910_s27 + $0x2a8] sm:$0xff] %vm3656_vm0, %v3613_v54  ;;  %v3486_v5 = vmul.f32 %v4641_v11, %v3234_v63  ;;  %v3487_v8 = vmul.f32 %v4642_v14, %v3238_v53  ;;  %v2343_v14 = vmul.f32 %v4522_v47, %v5774_v21  ;;  %v4524_v54 = vld [vmem:[%s7376_s0 + $0xc2] ss:$0 sm:$0xff]  ;;  %v4651_v21 = vld [vmem:[%s7376_s0 + $0xc1] ss:$0 sm:$0xff] }
 0x28b   : > { %v2342_v39 = vmul.f32 %v4521_v6, %v5776_v24  ;;  %v4652_v24 = vld [vmem:[%s7376_s0 + $0xc3] ss:$0 sm:$0xff]  ;;  %v2345_v40 = vmul.f32 %v4524_v54, %v5780_v23  ;;  %v4653_v23 = vld [vmem:[%s7376_s0 + $0xc5] ss:$0 sm:$0xff] }
 0x28c   : > { %v3614_v59 = vadd.f32 %v3486_v5, %v2334_v38  ;;  %v3615_v4 = vadd.f32 %v3487_v8, %v2335_v57  ;;  %v4523_v57 = vld [vmem:[%s7376_s0 + $0xc0] ss:$0 sm:$0xff] }
 0x28d   : > { %v3242_v42 = vpop.permute.xlu1 %3241  ;;  %v3246_v50 = vpop.permute.xlu0 %3245 }
 0x28e   : > { %3743 = vst.msk [vmem:[%s5910_s27 + $0x2b0] sm:$0xff] %vm3656_vm0, %v3614_v59  ;;  %3744 = vst.msk [vmem:[%s5910_s27 + $0x2b8] sm:$0xff] %vm3656_vm0, %v3615_v4  ;;  %v3488_v44 = vmul.f32 %v4643_v13, %v3242_v42  ;;  %v3489_v41 = vmul.f32 %v4644_v16, %v3246_v50  ;;  %v2344_v13 = vmul.f32 %v4523_v57, %v5782_v26  ;;  %v4526_v16 = vld [vmem:[%s7376_s0 + $0xc6] ss:$0 sm:$0xff]  ;;  %v4525_v42 = vld [vmem:[%s7376_s0 + $0xc4] ss:$0 sm:$0xff] }
 0x28f   : > { %v4654_v26 = vld [vmem:[%s7376_s0 + $0xc7] ss:$0 sm:$0xff] }
 0x290   : > { %v3616_v10 = vadd.f32 %v3488_v44, %v2336_v36  ;;  %v3617_v62 = vadd.f32 %v3489_v41, %v2337_v33  ;;  %v2347_v44 = vmul.f32 %v4526_v16, %v5786_v25  ;;  %v2346_v41 = vmul.f32 %v4525_v42, %v5788_v28  ;;  %v4655_v25 = vld [vmem:[%s7376_s0 + $0xc9] ss:$0 sm:$0xff]  ;;  %v4656_v28 = vld [vmem:[%s7376_s0 + $0xcb] ss:$0 sm:$0xff]  ;;  %v4663_v42 = vld [vmem:[%s7376_s0 + $0xd9] ss:$0 sm:$0xff] }
 0x291   : > { %v3250_v0 = vpop.permute.xlu1 %3249  ;;  %v3254_v52 = vpop.permute.xlu0 %3253 }
 0x292   : > { %3745 = vst.msk [vmem:[%s5910_s27 + $0x2c0] sm:$0xff] %vm3656_vm0, %v3616_v10  ;;  %3746 = vst.msk [vmem:[%s5910_s27 + $0x2c8] sm:$0xff] %vm3656_vm0, %v3617_v62  ;;  %v3490_v58 = vmul.f32 %v4645_v15, %v3250_v0  ;;  %v3491_v60 = vmul.f32 %v4646_v18, %v3254_v52  ;;  %v4527_v10 = vld [vmem:[%s7376_s0 + $0xc8] ss:$0 sm:$0xff] }
 0x293   : > { %v2348_v35 = vmul.f32 %v4527_v10, %v5794_v30  ;;  %v4658_v30 = vld [vmem:[%s7376_s0 + $0xcf] ss:$0 sm:$0xff] }
 0x294   : > { %v3618_v49 = vadd.f32 %v3490_v58, %v2338_v1  ;;  %v3619_v9 = vadd.f32 %v3491_v60, %v2339_v2  ;;  %v2349_v1 = vmul.f32 %v4528_v7, %v5792_v27  ;;  %v4530_v58 = vld [vmem:[%s7376_s0 + $0xce] ss:$0 sm:$0xff]  ;;  %v4657_v27 = vld [vmem:[%s7376_s0 + $0xcd] ss:$0 sm:$0xff] }
 0x295   : > { %v3258_v12 = vpop.permute.xlu1 %3257  ;;  %v3262_v43 = vpop.permute.xlu0 %3261 }
 0x296   : > { %3747 = vst.msk [vmem:[%s5910_s27 + $0x2d0] sm:$0xff] %vm3656_vm0, %v3618_v49  ;;  %3748 = vst.msk [vmem:[%s5910_s27 + $0x2d8] sm:$0xff] %vm3656_vm0, %v3619_v9  ;;  %v3492_v56 = vmul.f32 %v4647_v17, %v3258_v12  ;;  %v3493_v3 = vmul.f32 %v4648_v20, %v3262_v43  ;;  %v4529_v17 = vld [vmem:[%s7376_s0 + $0xcc] ss:$0 sm:$0xff]  ;;  %v2351_v43 = vmul.f32 %v4530_v58, %v5798_v29  ;;  %v4659_v29 = vld [vmem:[%s7376_s0 + $0xd1] ss:$0 sm:$0xff] }
 0x298   : > { %v3620_v61 = vadd.f32 %v3492_v56, %v2340_v46  ;;  %v3621_v48 = vadd.f32 %v3493_v3, %v2341_v45  ;;  %v2350_v45 = vmul.f32 %v4529_v17, %v5800_v32  ;;  %v4532_v46 = vld [vmem:[%s7376_s0 + $0xd2] ss:$0 sm:$0xff]  ;;  %v4531_v3 = vld [vmem:[%s7376_s0 + $0xd0] ss:$0 sm:$0xff]  ;;  %v4660_v32 = vld [vmem:[%s7376_s0 + $0xd3] ss:$0 sm:$0xff] }
 0x299   : > { %v3266_v34 = vpop.permute.xlu1 %3265  ;;  %v3270_v11 = vpop.permute.xlu0 %3269  ;;  %v4540_v17 = vld [vmem:[%s7376_s0 + $0xe2] ss:$0 sm:$0xff] }
 0x29a   : > { %3749 = vst.msk [vmem:[%s5910_s27 + $0x2e0] sm:$0xff] %vm3656_vm0, %v3620_v61  ;;  %3750 = vst.msk [vmem:[%s5910_s27 + $0x2e8] sm:$0xff] %vm3656_vm0, %v3621_v48  ;;  %v3494_v63 = vmul.f32 %v4649_v19, %v3266_v34  ;;  %v3495_v53 = vmul.f32 %v4650_v22, %v3270_v11  ;;  %v2353_v48 = vmul.f32 %v4532_v46, %v5804_v31  ;;  %v7663_v34 = vld [vmem:[#allocation111_spill] sm:$0xff]  ;;  %v4661_v31 = vld [vmem:[%s7376_s0 + $0xd5] ss:$0 sm:$0xff] }
 0x29b   : > { %v2352_v11 = vmul.f32 %v4531_v3, %v7663_v34  ;;  %v7671_v3 = vld [vmem:[#allocation119_spill] sm:$0xff] }
 0x29c   : > { %v3622_v38 = vadd.f32 %v3494_v63, %v2342_v39  ;;  %v3623_v37 = vadd.f32 %v3495_v53, %v2343_v14  ;;  %v4534_v14 = vld [vmem:[%s7376_s0 + $0xd6] ss:$0 sm:$0xff]  ;;  %v4533_v63 = vld [vmem:[%s7376_s0 + $0xd4] ss:$0 sm:$0xff]  ;;  %v4662_v53 = vld [vmem:[%s7376_s0 + $0xd7] ss:$0 sm:$0xff] }
 0x29d   : > { %v3274_v5 = vpop.permute.xlu1 %3273  ;;  %v3278_v8 = vpop.permute.xlu0 %3277 }
 0x29e   : > { %3751 = vst.msk [vmem:[%s5910_s27 + $0x2f0] sm:$0xff] %vm3656_vm0, %v3622_v38  ;;  %3752 = vst.msk [vmem:[%s5910_s27 + $0x2f8] sm:$0xff] %vm3656_vm0, %v3623_v37  ;;  %v3496_v59 = vmul.f32 %v4651_v21, %v3274_v5  ;;  %v3497_v4 = vmul.f32 %v4652_v24, %v3278_v8  ;;  %v7664_v37 = vld [vmem:[#allocation112_spill] sm:$0xff]  ;;  %v7665_v8 = vld [vmem:[#allocation113_spill] sm:$0xff] }
 0x29f   : > { %v2355_v5 = vmul.f32 %v4534_v14, %v7664_v37  ;;  %v4671_v37 = vld [vmem:[%s7376_s0 + $0xe9] ss:$0 sm:$0xff] }
 0x2a0   : > { %v3624_v50 = vadd.f32 %v3496_v59, %v2344_v13  ;;  %v3625_v33 = vadd.f32 %v3497_v4, %v2345_v40  ;;  %v2354_v40 = vmul.f32 %v4533_v63, %v7665_v8  ;;  %v4536_v13 = vld [vmem:[%s7376_s0 + $0xda] ss:$0 sm:$0xff]  ;;  %v4535_v4 = vld [vmem:[%s7376_s0 + $0xd8] ss:$0 sm:$0xff] }
 0x2a1   : > { %v3282_v36 = vpop.permute.xlu1 %3281  ;;  %v3286_v55 = vpop.permute.xlu0 %3285 }
 0x2a2   : > { %3753 = vst.msk [vmem:[%s5910_s27 + $0x300] sm:$0xff] %vm3656_vm0, %v3624_v50  ;;  %3754 = vst.msk [vmem:[%s5910_s27 + $0x308] sm:$0xff] %vm3656_vm0, %v3625_v33  ;;  %v3498_v15 = vmul.f32 %v4653_v23, %v3282_v36  ;;  %v3499_v18 = vmul.f32 %v4654_v26, %v3286_v55  ;;  %v4664_v23 = vld [vmem:[%s7376_s0 + $0xdb] ss:$0 sm:$0xff]  ;;  %v7666_v55 = vld [vmem:[#allocation114_spill] sm:$0xff] }
 0x2a4   : > { %v3626_v62 = vadd.f32 %v3498_v15, %v2346_v41  ;;  %v3627_v0 = vadd.f32 %v3499_v18, %v2347_v44  ;;  %v2357_v44 = vmul.f32 %v4536_v13, %v7666_v55  ;;  %v7667_v41 = vld [vmem:[#allocation115_spill] sm:$0xff]  ;;  %v4673_v55 = vld [vmem:[%s7376_s0 + $0xed] ss:$0 sm:$0xff] }
 0x2a5   : > { %v3290_v52 = vpop.permute.xlu1 %3289  ;;  %v3294_v2 = vpop.permute.xlu0 %3293  ;;  %v2356_v7 = vmul.f32 %v4535_v4, %v7667_v41  ;;  %v4538_v15 = vld [vmem:[%s7376_s0 + $0xde] ss:$0 sm:$0xff] }
 0x2a6   : > { %3755 = vst.msk [vmem:[%s5910_s27 + $0x310] sm:$0xff] %vm3656_vm0, %v3626_v62  ;;  %3756 = vst.msk [vmem:[%s5910_s27 + $0x318] sm:$0xff] %vm3656_vm0, %v3627_v0  ;;  %v3500_v60 = vmul.f32 %v4655_v25, %v3290_v52  ;;  %v3501_v51 = vmul.f32 %v4656_v28, %v3294_v2  ;;  %v4537_v25 = vld [vmem:[%s7376_s0 + $0xdc] ss:$0 sm:$0xff]  ;;  %v4665_v28 = vld [vmem:[%s7376_s0 + $0xdd] ss:$0 sm:$0xff] }
 0x2a7   : > { %v4666_v62 = vld [vmem:[%s7376_s0 + $0xdf] ss:$0 sm:$0xff] }
 0x2a8   : > { %v3628_v20 = vadd.f32 %v3500_v60, %v2348_v35  ;;  %v3629_v49 = vadd.f32 %v3501_v51, %v2349_v1  ;;  %v7668_v35 = vld [vmem:[#allocation116_spill] sm:$0xff]  ;;  %v7669_v60 = vld [vmem:[#allocation117_spill] sm:$0xff] }
 0x2a9   : > { %v3298_v9 = vpop.permute.xlu1 %3297  ;;  %v3302_v12 = vpop.permute.xlu0 %3301  ;;  %v2359_v58 = vmul.f32 %v4538_v15, %v7668_v35  ;;  %v2358_v51 = vmul.f32 %v4537_v25, %v7669_v60  ;;  %v4675_v35 = vld [vmem:[%s7376_s0 + $0xf1] ss:$0 sm:$0xff] }
 0x2aa   : > { %3757 = vst.msk [vmem:[%s5910_s27 + $0x320] sm:$0xff] %vm3656_vm0, %v3628_v20  ;;  %3758 = vst.msk [vmem:[%s5910_s27 + $0x328] sm:$0xff] %vm3656_vm0, %v3629_v49  ;;  %v3502_v47 = vmul.f32 %v4657_v27, %v3298_v9  ;;  %v3503_v56 = vmul.f32 %v4658_v30, %v3302_v12  ;;  %v4539_v20 = vld [vmem:[%s7376_s0 + $0xe0] ss:$0 sm:$0xff]  ;;  %v4667_v49 = vld [vmem:[%s7376_s0 + $0xe1] ss:$0 sm:$0xff] }
 0x2ab   : > { %v4668_v9 = vld [vmem:[%s7376_s0 + $0xe3] ss:$0 sm:$0xff] }
 0x2ac   : > { %v3630_v6 = vadd.f32 %v3502_v47, %v2350_v45  ;;  %v3631_v19 = vadd.f32 %v3503_v56, %v2351_v43  ;;  %v7670_v47 = vld [vmem:[#allocation118_spill] sm:$0xff] }
 0x2ad   : > { %v3306_v22 = vpop.permute.xlu1 %3305  ;;  %v3310_v61 = vpop.permute.xlu0 %3309  ;;  %v2361_v56 = vmul.f32 %v4540_v17, %v7670_v47  ;;  %v4677_v47 = vld [vmem:[%s7376_s0 + $0xf5] ss:$0 sm:$0xff] }
 0x2ae   : > { %3759 = vst.msk [vmem:[%s5910_s27 + $0x330] sm:$0xff] %vm3656_vm0, %v3630_v6  ;;  %3760 = vst.msk [vmem:[%s5910_s27 + $0x338] sm:$0xff] %vm3656_vm0, %v3631_v19  ;;  %v3504_v39 = vmul.f32 %v4659_v29, %v3306_v22  ;;  %v3505_v54 = vmul.f32 %v4660_v32, %v3310_v61  ;;  %v2360_v29 = vmul.f32 %v4539_v20, %v7671_v3  ;;  %v4542_v32 = vld [vmem:[%s7376_s0 + $0xe6] ss:$0 sm:$0xff]  ;;  %v4541_v22 = vld [vmem:[%s7376_s0 + $0xe4] ss:$0 sm:$0xff] }
 0x2af   : > { %v4669_v61 = vld [vmem:[%s7376_s0 + $0xe5] ss:$0 sm:$0xff] }
 0x2b0   : > { %v3632_v57 = vadd.f32 %v3504_v39, %v2352_v11  ;;  %v3633_v21 = vadd.f32 %v3505_v54, %v2353_v48  ;;  %v4670_v48 = vld [vmem:[%s7376_s0 + $0xe7] ss:$0 sm:$0xff] }
 0x2b1   : > { %v3314_v24 = vpop.permute.xlu1 %3313  ;;  %v3318_v38 = vpop.permute.xlu0 %3317  ;;  %v7672_v54 = vld [vmem:[#allocation120_spill] sm:$0xff] }
 0x2b2   : > { %3761 = vst.msk [vmem:[%s5910_s27 + $0x340] sm:$0xff] %vm3656_vm0, %v3632_v57  ;;  %3762 = vst.msk [vmem:[%s5910_s27 + $0x348] sm:$0xff] %vm3656_vm0, %v3633_v21  ;;  %v3506_v16 = vmul.f32 %v4661_v31, %v3314_v24  ;;  %v3507_v59 = vmul.f32 %v4662_v53, %v3318_v38  ;;  %v2363_v63 = vmul.f32 %v4542_v32, %v7672_v54  ;;  %v7673_v31 = vld [vmem:[#allocation121_spill] sm:$0xff]  ;;  %v4679_v54 = vld [vmem:[%s7376_s0 + $0xf9] ss:$0 sm:$0xff] }
 0x2b3   : > { %v2362_v53 = vmul.f32 %v4541_v22, %v7673_v31  ;;  %v4544_v57 = vld [vmem:[%s7376_s0 + $0xea] ss:$0 sm:$0xff]  ;;  %v4543_v38 = vld [vmem:[%s7376_s0 + $0xe8] ss:$0 sm:$0xff] }
 0x2b4   : > { %v3634_v26 = vadd.f32 %v3506_v16, %v2354_v40  ;;  %v3635_v50 = vadd.f32 %v3507_v59, %v2355_v5  ;;  %v4672_v5 = vld [vmem:[%s7376_s0 + $0xeb] ss:$0 sm:$0xff]  ;;  %v7674_v59 = vld [vmem:[#allocation122_spill] sm:$0xff] }
 0x2b5   : > { %v3322_v33 = vpop.permute.xlu1 %3321  ;;  %v3326_v36 = vpop.permute.xlu0 %3325  ;;  %v2365_v4 = vmul.f32 %v4544_v57, %v7674_v59  ;;  %v4681_v59 = vld [vmem:[%s7376_s0 + $0xfd] ss:$0 sm:$0xff] }
 0x2b6   : > { %3763 = vst.msk [vmem:[%s5910_s27 + $0x350] sm:$0xff] %vm3656_vm0, %v3634_v26  ;;  %3764 = vst.msk [vmem:[%s5910_s27 + $0x358] sm:$0xff] %vm3656_vm0, %v3635_v50  ;;  %v3508_v18 = vmul.f32 %v4663_v42, %v3322_v33  ;;  %v3509_v10 = vmul.f32 %v4664_v23, %v3326_v36  ;;  %v7675_v42 = vld [vmem:[#allocation123_spill] sm:$0xff]  ;;  %v4546_v26 = vld [vmem:[%s7376_s0 + $0xee] ss:$0 sm:$0xff] }
 0x2b7   : > { %v2364_v23 = vmul.f32 %v4543_v38, %v7675_v42  ;;  %v4545_v36 = vld [vmem:[%s7376_s0 + $0xec] ss:$0 sm:$0xff] }
 0x2b8   : > { %v3636_v0 = vadd.f32 %v3508_v18, %v2356_v7  ;;  %v3637_v52 = vadd.f32 %v3509_v10, %v2357_v44  ;;  %v4674_v44 = vld [vmem:[%s7376_s0 + $0xef] ss:$0 sm:$0xff]  ;;  %v7676_v10 = vld [vmem:[#allocation124_spill] sm:$0xff] }
 0x2b9   : > { %v3330_v2 = vpop.permute.xlu1 %3329  ;;  %v3334_v1 = vpop.permute.xlu0 %3333  ;;  %v2367_v25 = vmul.f32 %v4546_v26, %v7676_v10  ;;  %v4077_v10 = vld [vmem:[%s5910_s27] sm:$0xff] (%p4855_p6) }
 0x2ba   : > { %3765 = vst.msk [vmem:[%s5910_s27 + $0x360] sm:$0xff] %vm3656_vm0, %v3636_v0  ;;  %3766 = vst.msk [vmem:[%s5910_s27 + $0x368] sm:$0xff] %vm3656_vm0, %v3637_v52  ;;  %v3510_v27 = vmul.f32 %v4665_v28, %v3330_v2  ;;  %v3511_v30 = vmul.f32 %v4666_v62, %v3334_v1  ;;  %v7677_v28 = vld [vmem:[#allocation125_spill] sm:$0xff]  ;;  %v4548_v0 = vld [vmem:[%s7376_s0 + $0xf2] ss:$0 sm:$0xff] }
 0x2bb   : > { %v2366_v62 = vmul.f32 %v4545_v36, %v7677_v28  ;;  %v4547_v1 = vld [vmem:[%s7376_s0 + $0xf0] ss:$0 sm:$0xff]  ;;  %4078 = vst [vmem:[%s7106_s15] sm:$0xff] (%p4855_p6), %v4077_v10  ;;  %v4205_v10 = vld [vmem:[%s5910_s27 + $0x200] sm:$0xff] (%p4855_p6) }
 0x2bc   : > { %v3638_v12 = vadd.f32 %v3510_v27, %v2358_v51  ;;  %v3639_v43 = vadd.f32 %v3511_v30, %v2359_v58  ;;  %v4676_v58 = vld [vmem:[%s7376_s0 + $0xf3] ss:$0 sm:$0xff]  ;;  %v7678_v30 = vld [vmem:[#allocation5_spill] sm:$0xff]  ;;  %4206 = vst [vmem:[%s7106_s15 + $0x400] sm:$0xff] (%p4855_p6), %v4205_v10 }
 0x2bd   : > { %v3338_v45 = vpop.permute.xlu1 %3337  ;;  %v3342_v46 = vpop.permute.xlu0 %3341  ;;  %v2369_v20 = vmul.f32 %v4548_v0, %v7678_v30  ;;  %v4081_v28 = vld [vmem:[%s5910_s27 + $0x10] sm:$0xff] (%p4855_p6)  ;;  %v4085_v0 = vld [vmem:[%s5910_s27 + $0x20] sm:$0xff] (%p4855_p6) }
 0x2be   : > { %3767 = vst.msk [vmem:[%s5910_s27 + $0x370] sm:$0xff] %vm3656_vm0, %v3638_v12  ;;  %3768 = vst.msk [vmem:[%s5910_s27 + $0x378] sm:$0xff] %vm3656_vm0, %v3639_v43  ;;  %v3512_v6 = vmul.f32 %v4667_v49, %v3338_v45  ;;  %v3513_v19 = vmul.f32 %v4668_v9, %v3342_v46  ;;  %v7679_v49 = vld [vmem:[#allocation4_spill] sm:$0xff]  ;;  %v4550_v12 = vld [vmem:[%s7376_s0 + $0xf6] ss:$0 sm:$0xff] }
 0x2bf   : > { %v2368_v9 = vmul.f32 %v4547_v1, %v7679_v49  ;;  %v4549_v46 = vld [vmem:[%s7376_s0 + $0xf4] ss:$0 sm:$0xff]  ;;  %4082 = vst [vmem:[%s7106_s15 + $0x20] sm:$0xff] (%p4855_p6), %v4081_v28  ;;  %4086 = vst [vmem:[%s7106_s15 + $0x40] sm:$0xff] (%p4855_p6), %v4085_v0  ;;  %v4091_v1 = vld [vmem:[%s5910_s27 + $0x38] sm:$0xff] (%p4855_p6) }
 0x2c0   : > { %v3640_v34 = vadd.f32 %v3512_v6, %v2360_v29  ;;  %v3641_v11 = vadd.f32 %v3513_v19, %v2361_v56  ;;  %v4678_v56 = vld [vmem:[%s7376_s0 + $0xf7] ss:$0 sm:$0xff]  ;;  %v7680_v19 = vld [vmem:[#allocation7_spill] sm:$0xff]  ;;  %4092 = vst [vmem:[%s7106_s15 + $0x70] sm:$0xff] (%p4855_p6), %v4091_v1  ;;  %v4109_v49 = vld [vmem:[%s5910_s27 + $0x80] sm:$0xff] (%p4855_p6) }
 0x2c1   : > { %v3346_v14 = vpop.permute.xlu1 %3345  ;;  %v3350_v39 = vpop.permute.xlu0 %3349  ;;  %v2371_v22 = vmul.f32 %v4550_v12, %v7680_v19  ;;  %v4105_v30 = vld [vmem:[%s5910_s27 + $0x70] sm:$0xff] (%p4855_p6)  ;;  %4110 = vst [vmem:[%s7106_s15 + $0x100] sm:$0xff] (%p4855_p6), %v4109_v49  ;;  %v4133_v19 = vld [vmem:[%s5910_s27 + $0xe0] sm:$0xff] (%p4855_p6)  ;;  %v4219_v1 = vld [vmem:[%s5910_s27 + $0x238] sm:$0xff] (%p4855_p6) }
 0x2c2   : > { %3769 = vst.msk [vmem:[%s5910_s27 + $0x380] sm:$0xff] %vm3656_vm0, %v3640_v34  ;;  %3770 = vst.msk [vmem:[%s5910_s27 + $0x388] sm:$0xff] %vm3656_vm0, %v3641_v11  ;;  %v3514_v21 = vmul.f32 %v4669_v61, %v3346_v14  ;;  %v3515_v24 = vmul.f32 %v4670_v48, %v3350_v39  ;;  %v7681_v61 = vld [vmem:[#allocation6_spill] sm:$0xff]  ;;  %v4552_v34 = vld [vmem:[%s7376_s0 + $0xfa] ss:$0 sm:$0xff] }
 0x2c3   : > { %v2370_v48 = vmul.f32 %v4549_v46, %v7681_v61  ;;  %v4551_v39 = vld [vmem:[%s7376_s0 + $0xf8] ss:$0 sm:$0xff]  ;;  %4106 = vst [vmem:[%s7106_s15 + $0xe0] sm:$0xff] (%p4855_p6), %v4105_v30  ;;  %v4113_v12 = vld [vmem:[%s5910_s27 + $0x90] sm:$0xff] (%p4855_p6)  ;;  %v4119_v46 = vld [vmem:[%s5910_s27 + $0xa8] sm:$0xff] (%p4855_p6) }
 0x2c4   : > { %v3642_v8 = vadd.f32 %v3514_v21, %v2362_v53  ;;  %v3643_v40 = vadd.f32 %v3515_v24, %v2363_v63  ;;  %v4680_v63 = vld [vmem:[%s7376_s0 + $0xfb] ss:$0 sm:$0xff]  ;;  %v7682_v24 = vld [vmem:[#allocation9_spill] sm:$0xff]  ;;  %4114 = vst [vmem:[%s7106_s15 + $0x120] sm:$0xff] (%p4855_p6), %v4113_v12  ;;  %4120 = vst [vmem:[%s7106_s15 + $0x150] sm:$0xff] (%p4855_p6), %v4119_v46 }
 0x2c5   : > { %v3354_v13 = vpop.permute.xlu1 %3353  ;;  %v3358_v16 = vpop.permute.xlu0 %3357  ;;  %v2373_v38 = vmul.f32 %v4552_v34, %v7682_v24  ;;  %4134 = vst [vmem:[%s7106_s15 + $0x1c0] sm:$0xff] (%p4855_p6), %v4133_v19  ;;  %v4137_v61 = vld [vmem:[%s5910_s27 + $0xf0] sm:$0xff] (%p4855_p6)  ;;  %v4141_v34 = vld [vmem:[%s5910_s27 + $0x100] sm:$0xff] (%p4855_p6)  ;;  %4220 = vst [vmem:[%s7106_s15 + $0x470] sm:$0xff] (%p4855_p6), %v4219_v1 }
 0x2c6   : > { %3771 = vst.msk [vmem:[%s5910_s27 + $0x390] sm:$0xff] %vm3656_vm0, %v3642_v8  ;;  %3772 = vst.msk [vmem:[%s5910_s27 + $0x398] sm:$0xff] %vm3656_vm0, %v3643_v40  ;;  %v3516_v50 = vmul.f32 %v4671_v37, %v3354_v13  ;;  %v3517_v33 = vmul.f32 %v4672_v5, %v3358_v16  ;;  %v7683_v37 = vld [vmem:[#allocation8_spill] sm:$0xff]  ;;  %v4554_v8 = vld [vmem:[%s7376_s0 + $0xfe] ss:$0 sm:$0xff] }
 0x2c7   : > { %v2372_v5 = vmul.f32 %v4551_v39, %v7683_v37  ;;  %v4553_v16 = vld [vmem:[%s7376_s0 + $0xfc] ss:$0 sm:$0xff]  ;;  %4138 = vst [vmem:[%s7106_s15 + $0x1e0] sm:$0xff] (%p4855_p6), %v4137_v61  ;;  %4142 = vst [vmem:[%s7106_s15 + $0x200] sm:$0xff] (%p4855_p6), %v4141_v34  ;;  %v4161_v24 = vld [vmem:[%s5910_s27 + $0x150] sm:$0xff] (%p4855_p6) }
 0x2c8   : > { %v3644_v41 = vadd.f32 %v3516_v50, %v2364_v23  ;;  %v3645_v7 = vadd.f32 %v3517_v33, %v2365_v4  ;;  %v4682_v4 = vld [vmem:[%s7376_s0 + $0xff] ss:$0 sm:$0xff]  ;;  %v4165_v37 = vld [vmem:[%s5910_s27 + $0x160] sm:$0xff] (%p4855_p6)  ;;  %4162 = vst [vmem:[%s7106_s15 + $0x2a0] sm:$0xff] (%p4855_p6), %v4161_v24  ;;  %v4209_v28 = vld [vmem:[%s5910_s27 + $0x210] sm:$0xff] (%p4855_p6) }
 0x2c9   : > { %v3362_v15 = vpop.permute.xlu1 %3361  ;;  %v3366_v18 = vpop.permute.xlu0 %3365  ;;  %v7684_v33 = vld [vmem:[#allocation11_spill] sm:$0xff]  ;;  %4166 = vst [vmem:[%s7106_s15 + $0x2c0] sm:$0xff] (%p4855_p6), %v4165_v37  ;;  %v4213_v0 = vld [vmem:[%s5910_s27 + $0x220] sm:$0xff] (%p4855_p6)  ;;  %4210 = vst [vmem:[%s7106_s15 + $0x420] sm:$0xff] (%p4855_p6), %v4209_v28 }
 0x2ca   : > { %3773 = vst.msk [vmem:[%s5910_s27 + $0x3a0] sm:$0xff] %vm3656_vm0, %v3644_v41  ;;  %3774 = vst.msk [vmem:[%s5910_s27 + $0x3a8] sm:$0xff] %vm3656_vm0, %v3645_v7  ;;  %v3518_v52 = vmul.f32 %v4673_v55, %v3362_v15  ;;  %v3519_v2 = vmul.f32 %v4674_v44, %v3366_v18  ;;  %v2375_v36 = vmul.f32 %v4554_v8, %v7684_v33  ;;  %v7685_v55 = vld [vmem:[#allocation10_spill] sm:$0xff]  ;;  %v4147_v39 = vld [vmem:[%s5910_s27 + $0x118] sm:$0xff] (%p4855_p6) }
 0x2cb   : > { %v2374_v44 = vmul.f32 %v4553_v16, %v7685_v55  ;;  %4148 = vst [vmem:[%s7106_s15 + $0x230] sm:$0xff] (%p4855_p6), %v4147_v39  ;;  %v4169_v8 = vld [vmem:[%s5910_s27 + $0x170] sm:$0xff] (%p4855_p6)  ;;  %v4175_v16 = vld [vmem:[%s5910_s27 + $0x188] sm:$0xff] (%p4855_p6)  ;;  %v4189_v33 = vld [vmem:[%s5910_s27 + $0x1c0] sm:$0xff] (%p4855_p6) }
 0x2cc   : > { %v3646_v60 = vadd.f32 %v3518_v52, %v2366_v62  ;;  %v3647_v51 = vadd.f32 %v3519_v2, %v2367_v25  ;;  %v4079_v25 = vld [vmem:[%s5910_s27 + $0x8] sm:$0xff] (%p4855_p6)  ;;  %v4083_v62 = vld [vmem:[%s5910_s27 + $0x18] sm:$0xff] (%p4855_p6)  ;;  %v4089_v2 = vld [vmem:[%s5910_s27 + $0x30] sm:$0xff] (%p4855_p6)  ;;  %4170 = vst [vmem:[%s7106_s15 + $0x2e0] sm:$0xff] (%p4855_p6), %v4169_v8 }
 0x2cd   : > { %v3370_v17 = vpop.permute.xlu1 %3369  ;;  %v3374_v27 = vpop.permute.xlu0 %3373  ;;  %v4087_v52 = vld [vmem:[%s5910_s27 + $0x28] sm:$0xff] (%p4855_p6)  ;;  %4080 = vst [vmem:[%s7106_s15 + $0x10] sm:$0xff] (%p4855_p6), %v4079_v25  ;;  %4084 = vst [vmem:[%s7106_s15 + $0x30] sm:$0xff] (%p4855_p6), %v4083_v62  ;;  %v4193_v55 = vld [vmem:[%s5910_s27 + $0x1d0] sm:$0xff] (%p4855_p6) }
 0x2ce   : > { %3775 = vst.msk [vmem:[%s5910_s27 + $0x3b0] sm:$0xff] %vm3656_vm0, %v3646_v60  ;;  %3776 = vst.msk [vmem:[%s5910_s27 + $0x3b8] sm:$0xff] %vm3656_vm0, %v3647_v51  ;;  %v3520_v43 = vmul.f32 %v4675_v35, %v3370_v17  ;;  %v3521_v45 = vmul.f32 %v4676_v58, %v3374_v27  ;;  %v4093_v35 = vld [vmem:[%s5910_s27 + $0x40] sm:$0xff] (%p4855_p6)  ;;  %v4095_v58 = vld [vmem:[%s5910_s27 + $0x48] sm:$0xff] (%p4855_p6) }
 0x2cf   : > { %4088 = vst [vmem:[%s7106_s15 + $0x50] sm:$0xff] (%p4855_p6), %v4087_v52  ;;  %4090 = vst [vmem:[%s7106_s15 + $0x60] sm:$0xff] (%p4855_p6), %v4089_v2  ;;  %v4097_v60 = vld [vmem:[%s5910_s27 + $0x50] sm:$0xff] (%p4855_p6)  ;;  %v4099_v51 = vld [vmem:[%s5910_s27 + $0x58] sm:$0xff] (%p4855_p6) }
 0x2d0   : > { %v3648_v3 = vadd.f32 %v3520_v43, %v2368_v9  ;;  %v3649_v29 = vadd.f32 %v3521_v45, %v2369_v20  ;;  %4094 = vst [vmem:[%s7106_s15 + $0x80] sm:$0xff] (%p4855_p6), %v4093_v35  ;;  %4096 = vst [vmem:[%s7106_s15 + $0x90] sm:$0xff] (%p4855_p6), %v4095_v58  ;;  %v4101_v17 = vld [vmem:[%s5910_s27 + $0x60] sm:$0xff] (%p4855_p6)  ;;  %v4103_v27 = vld [vmem:[%s5910_s27 + $0x68] sm:$0xff] (%p4855_p6) }
 0x2d1   : > { %v3378_v32 = vpop.permute.xlu1 %3377  ;;  %v3382_v6 = vpop.permute.xlu0 %3381  ;;  %4098 = vst [vmem:[%s7106_s15 + $0xa0] sm:$0xff] (%p4855_p6), %v4097_v60  ;;  %4100 = vst [vmem:[%s7106_s15 + $0xb0] sm:$0xff] (%p4855_p6), %v4099_v51  ;;  %v4107_v20 = vld [vmem:[%s5910_s27 + $0x78] sm:$0xff] (%p4855_p6)  ;;  %v4111_v9 = vld [vmem:[%s5910_s27 + $0x88] sm:$0xff] (%p4855_p6) }
 0x2d2   : > { %3777 = vst.msk [vmem:[%s5910_s27 + $0x3c0] sm:$0xff] %vm3656_vm0, %v3648_v3  ;;  %3778 = vst.msk [vmem:[%s5910_s27 + $0x3c8] sm:$0xff] %vm3656_vm0, %v3649_v29  ;;  %v3522_v11 = vmul.f32 %v4677_v47, %v3378_v32  ;;  %v3523_v14 = vmul.f32 %v4678_v56, %v3382_v6  ;;  %v4115_v43 = vld [vmem:[%s5910_s27 + $0x98] sm:$0xff] (%p4855_p6)  ;;  %v4117_v45 = vld [vmem:[%s5910_s27 + $0xa0] sm:$0xff] (%p4855_p6) }
 0x2d3   : > { %4102 = vst [vmem:[%s7106_s15 + $0xc0] sm:$0xff] (%p4855_p6), %v4101_v17  ;;  %4104 = vst [vmem:[%s7106_s15 + $0xd0] sm:$0xff] (%p4855_p6), %v4103_v27  ;;  %v4121_v47 = vld [vmem:[%s5910_s27 + $0xb0] sm:$0xff] (%p4855_p6)  ;;  %v4123_v56 = vld [vmem:[%s5910_s27 + $0xb8] sm:$0xff] (%p4855_p6) }
 0x2d4   : > { %v3650_v31 = vadd.f32 %v3522_v11, %v2370_v48  ;;  %v3651_v53 = vadd.f32 %v3523_v14, %v2371_v22  ;;  %4108 = vst [vmem:[%s7106_s15 + $0xf0] sm:$0xff] (%p4855_p6), %v4107_v20  ;;  %4112 = vst [vmem:[%s7106_s15 + $0x110] sm:$0xff] (%p4855_p6), %v4111_v9  ;;  %v4125_v3 = vld [vmem:[%s5910_s27 + $0xc0] sm:$0xff] (%p4855_p6)  ;;  %v4127_v29 = vld [vmem:[%s5910_s27 + $0xc8] sm:$0xff] (%p4855_p6) }
 0x2d5   : > { %v3386_v57 = vpop.permute.xlu1 %3385  ;;  %v3390_v21 = vpop.permute.xlu0 %3389  ;;  %4116 = vst [vmem:[%s7106_s15 + $0x130] sm:$0xff] (%p4855_p6), %v4115_v43  ;;  %4118 = vst [vmem:[%s7106_s15 + $0x140] sm:$0xff] (%p4855_p6), %v4117_v45  ;;  %v4129_v32 = vld [vmem:[%s5910_s27 + $0xd0] sm:$0xff] (%p4855_p6)  ;;  %v4131_v6 = vld [vmem:[%s5910_s27 + $0xd8] sm:$0xff] (%p4855_p6) }
 0x2d6   : > { %3779 = vst.msk [vmem:[%s5910_s27 + $0x3d0] sm:$0xff] %vm3656_vm0, %v3650_v31  ;;  %3780 = vst.msk [vmem:[%s5910_s27 + $0x3d8] sm:$0xff] %vm3656_vm0, %v3651_v53  ;;  %v3524_v40 = vmul.f32 %v4679_v54, %v3386_v57  ;;  %v3525_v13 = vmul.f32 %v4680_v63, %v3390_v21  ;;  %v4135_v22 = vld [vmem:[%s5910_s27 + $0xe8] sm:$0xff] (%p4855_p6)  ;;  %v4139_v48 = vld [vmem:[%s5910_s27 + $0xf8] sm:$0xff] (%p4855_p6) }
 0x2d7   : > { %4122 = vst [vmem:[%s7106_s15 + $0x160] sm:$0xff] (%p4855_p6), %v4121_v47  ;;  %4124 = vst [vmem:[%s7106_s15 + $0x170] sm:$0xff] (%p4855_p6), %v4123_v56  ;;  %v4143_v11 = vld [vmem:[%s5910_s27 + $0x108] sm:$0xff] (%p4855_p6)  ;;  %v4145_v14 = vld [vmem:[%s5910_s27 + $0x110] sm:$0xff] (%p4855_p6) }
 0x2d8   : > { %v3652_v42 = vadd.f32 %v3524_v40, %v2372_v5  ;;  %v3653_v23 = vadd.f32 %v3525_v13, %v2373_v38  ;;  %4126 = vst [vmem:[%s7106_s15 + $0x180] sm:$0xff] (%p4855_p6), %v4125_v3  ;;  %4128 = vst [vmem:[%s7106_s15 + $0x190] sm:$0xff] (%p4855_p6), %v4127_v29  ;;  %v4149_v54 = vld [vmem:[%s5910_s27 + $0x120] sm:$0xff] (%p4855_p6)  ;;  %v4151_v63 = vld [vmem:[%s5910_s27 + $0x128] sm:$0xff] (%p4855_p6) }
 0x2d9   : > { %v3394_v26 = vpop.permute.xlu1 %3393  ;;  %v3398_v50 = vpop.permute.xlu0 %3397  ;;  %4130 = vst [vmem:[%s7106_s15 + $0x1a0] sm:$0xff] (%p4855_p6), %v4129_v32  ;;  %4132 = vst [vmem:[%s7106_s15 + $0x1b0] sm:$0xff] (%p4855_p6), %v4131_v6  ;;  %v4153_v31 = vld [vmem:[%s5910_s27 + $0x130] sm:$0xff] (%p4855_p6)  ;;  %v4155_v53 = vld [vmem:[%s5910_s27 + $0x138] sm:$0xff] (%p4855_p6) }
 0x2da   : > { %3781 = vst.msk [vmem:[%s5910_s27 + $0x3e0] sm:$0xff] %vm3656_vm0, %v3652_v42  ;;  %3782 = vst.msk [vmem:[%s5910_s27 + $0x3e8] sm:$0xff] %vm3656_vm0, %v3653_v23  ;;  %v3526_v41 = vmul.f32 %v4681_v59, %v3394_v26  ;;  %v3527_v7 = vmul.f32 %v4682_v4, %v3398_v50  ;;  %3791 = sbr.rel (!%p4855_p6) target bundleno = 777 (0x309), region = 70  ;;  %v4157_v57 = vld [vmem:[%s5910_s27 + $0x140] sm:$0xff] (%p4855_p6)  ;;  %v4159_v21 = vld [vmem:[%s5910_s27 + $0x148] sm:$0xff] (%p4855_p6) }
 0x2db   : > { %4136 = vst [vmem:[%s7106_s15 + $0x1d0] sm:$0xff] (%p4855_p6), %v4135_v22  ;;  %4140 = vst [vmem:[%s7106_s15 + $0x1f0] sm:$0xff] (%p4855_p6), %v4139_v48  ;;  %v4163_v38 = vld [vmem:[%s5910_s27 + $0x158] sm:$0xff] (%p4855_p6)  ;;  %v4167_v5 = vld [vmem:[%s5910_s27 + $0x168] sm:$0xff] (%p4855_p6) }
 0x2dc   : > { %v3654_v15 = vadd.f32 %v3526_v41, %v2374_v44  ;;  %v3655_v18 = vadd.f32 %v3527_v7, %v2375_v36  ;;  %4144 = vst [vmem:[%s7106_s15 + $0x210] sm:$0xff] (%p4855_p6), %v4143_v11  ;;  %4146 = vst [vmem:[%s7106_s15 + $0x220] sm:$0xff] (%p4855_p6), %v4145_v14  ;;  %v4171_v40 = vld [vmem:[%s5910_s27 + $0x178] sm:$0xff] (%p4855_p6)  ;;  %v4173_v13 = vld [vmem:[%s5910_s27 + $0x180] sm:$0xff] (%p4855_p6) }
 0x2dd   : > { %4150 = vst [vmem:[%s7106_s15 + $0x240] sm:$0xff] (%p4855_p6), %v4149_v54  ;;  %4152 = vst [vmem:[%s7106_s15 + $0x250] sm:$0xff] (%p4855_p6), %v4151_v63  ;;  %v4177_v59 = vld [vmem:[%s5910_s27 + $0x190] sm:$0xff] (%p4855_p6)  ;;  %v4179_v4 = vld [vmem:[%s5910_s27 + $0x198] sm:$0xff] (%p4855_p6) }
 0x2de   : > { %3783 = vst.msk [vmem:[%s5910_s27 + $0x3f0] sm:$0xff] %vm3656_vm0, %v3654_v15  ;;  %3784 = vst.msk [vmem:[%s5910_s27 + $0x3f8] sm:$0xff] %vm3656_vm0, %v3655_v18  ;;  %v4181_v42 = vld [vmem:[%s5910_s27 + $0x1a0] sm:$0xff] (%p4855_p6)  ;;  %v4183_v23 = vld [vmem:[%s5910_s27 + $0x1a8] sm:$0xff] (%p4855_p6) }
 0x2df   : > { %4154 = vst [vmem:[%s7106_s15 + $0x260] sm:$0xff] %v4153_v31  ;;  %4156 = vst [vmem:[%s7106_s15 + $0x270] sm:$0xff] %v4155_v53  ;;  %v4185_v26 = vld [vmem:[%s5910_s27 + $0x1b0] sm:$0xff]  ;;  %v4187_v50 = vld [vmem:[%s5910_s27 + $0x1b8] sm:$0xff] }
 0x2e0   : > { %4158 = vst [vmem:[%s7106_s15 + $0x280] sm:$0xff] %v4157_v57  ;;  %4160 = vst [vmem:[%s7106_s15 + $0x290] sm:$0xff] %v4159_v21  ;;  %v4191_v36 = vld [vmem:[%s5910_s27 + $0x1c8] sm:$0xff]  ;;  %v4195_v44 = vld [vmem:[%s5910_s27 + $0x1d8] sm:$0xff] }
 0x2e1   : > { %4164 = vst [vmem:[%s7106_s15 + $0x2b0] sm:$0xff] %v4163_v38  ;;  %4168 = vst [vmem:[%s7106_s15 + $0x2d0] sm:$0xff] %v4167_v5  ;;  %v4197_v41 = vld [vmem:[%s5910_s27 + $0x1e0] sm:$0xff]  ;;  %v4199_v7 = vld [vmem:[%s5910_s27 + $0x1e8] sm:$0xff] }
 0x2e2   : > { %4172 = vst [vmem:[%s7106_s15 + $0x2f0] sm:$0xff] %v4171_v40  ;;  %4174 = vst [vmem:[%s7106_s15 + $0x300] sm:$0xff] %v4173_v13  ;;  %v4201_v15 = vld [vmem:[%s5910_s27 + $0x1f0] sm:$0xff]  ;;  %v4203_v18 = vld [vmem:[%s5910_s27 + $0x1f8] sm:$0xff] }
 0x2e3   : > { %4176 = vst [vmem:[%s7106_s15 + $0x310] sm:$0xff] %v4175_v16  ;;  %4178 = vst [vmem:[%s7106_s15 + $0x320] sm:$0xff] %v4177_v59  ;;  %v4207_v25 = vld [vmem:[%s5910_s27 + $0x208] sm:$0xff]  ;;  %v4211_v62 = vld [vmem:[%s5910_s27 + $0x218] sm:$0xff] }
 0x2e4   : > { %4180 = vst [vmem:[%s7106_s15 + $0x330] sm:$0xff] %v4179_v4  ;;  %4182 = vst [vmem:[%s7106_s15 + $0x340] sm:$0xff] %v4181_v42  ;;  %v4215_v52 = vld [vmem:[%s5910_s27 + $0x228] sm:$0xff]  ;;  %v4217_v2 = vld [vmem:[%s5910_s27 + $0x230] sm:$0xff] }
 0x2e5   : > { %4184 = vst [vmem:[%s7106_s15 + $0x350] sm:$0xff] %v4183_v23  ;;  %4186 = vst [vmem:[%s7106_s15 + $0x360] sm:$0xff] %v4185_v26  ;;  %v4221_v35 = vld [vmem:[%s5910_s27 + $0x240] sm:$0xff]  ;;  %v4223_v58 = vld [vmem:[%s5910_s27 + $0x248] sm:$0xff] }
 0x2e6   : > { %4188 = vst [vmem:[%s7106_s15 + $0x370] sm:$0xff] %v4187_v50  ;;  %4190 = vst [vmem:[%s7106_s15 + $0x380] sm:$0xff] %v4189_v33  ;;  %v4225_v60 = vld [vmem:[%s5910_s27 + $0x250] sm:$0xff]  ;;  %v4227_v51 = vld [vmem:[%s5910_s27 + $0x258] sm:$0xff] }
 0x2e7   : > { %4192 = vst [vmem:[%s7106_s15 + $0x390] sm:$0xff] %v4191_v36  ;;  %4194 = vst [vmem:[%s7106_s15 + $0x3a0] sm:$0xff] %v4193_v55  ;;  %v4229_v17 = vld [vmem:[%s5910_s27 + $0x260] sm:$0xff]  ;;  %v4231_v27 = vld [vmem:[%s5910_s27 + $0x268] sm:$0xff] }
 0x2e8   : > { %4196 = vst [vmem:[%s7106_s15 + $0x3b0] sm:$0xff] %v4195_v44  ;;  %4198 = vst [vmem:[%s7106_s15 + $0x3c0] sm:$0xff] %v4197_v41  ;;  %v4233_v30 = vld [vmem:[%s5910_s27 + $0x270] sm:$0xff]  ;;  %v4235_v20 = vld [vmem:[%s5910_s27 + $0x278] sm:$0xff] }
 0x2e9   : > { %4200 = vst [vmem:[%s7106_s15 + $0x3d0] sm:$0xff] %v4199_v7  ;;  %4202 = vst [vmem:[%s7106_s15 + $0x3e0] sm:$0xff] %v4201_v15  ;;  %v4237_v49 = vld [vmem:[%s5910_s27 + $0x280] sm:$0xff]  ;;  %v4239_v9 = vld [vmem:[%s5910_s27 + $0x288] sm:$0xff] }
 0x2ea   : > { %4204 = vst [vmem:[%s7106_s15 + $0x3f0] sm:$0xff] %v4203_v18  ;;  %4208 = vst [vmem:[%s7106_s15 + $0x410] sm:$0xff] %v4207_v25  ;;  %v4241_v12 = vld [vmem:[%s5910_s27 + $0x290] sm:$0xff]  ;;  %v4243_v43 = vld [vmem:[%s5910_s27 + $0x298] sm:$0xff] }
 0x2eb   : > { %4212 = vst [vmem:[%s7106_s15 + $0x430] sm:$0xff] %v4211_v62  ;;  %4214 = vst [vmem:[%s7106_s15 + $0x440] sm:$0xff] %v4213_v0  ;;  %v4245_v45 = vld [vmem:[%s5910_s27 + $0x2a0] sm:$0xff]  ;;  %v4247_v46 = vld [vmem:[%s5910_s27 + $0x2a8] sm:$0xff] }
 0x2ec   : > { %4216 = vst [vmem:[%s7106_s15 + $0x450] sm:$0xff] %v4215_v52  ;;  %4218 = vst [vmem:[%s7106_s15 + $0x460] sm:$0xff] %v4217_v2  ;;  %v4249_v47 = vld [vmem:[%s5910_s27 + $0x2b0] sm:$0xff]  ;;  %v4251_v56 = vld [vmem:[%s5910_s27 + $0x2b8] sm:$0xff] }
 0x2ed   : > { %4222 = vst [vmem:[%s7106_s15 + $0x480] sm:$0xff] %v4221_v35  ;;  %4224 = vst [vmem:[%s7106_s15 + $0x490] sm:$0xff] %v4223_v58  ;;  %v4253_v3 = vld [vmem:[%s5910_s27 + $0x2c0] sm:$0xff]  ;;  %v4255_v29 = vld [vmem:[%s5910_s27 + $0x2c8] sm:$0xff] }
 0x2ee   : > { %4226 = vst [vmem:[%s7106_s15 + $0x4a0] sm:$0xff] %v4225_v60  ;;  %4228 = vst [vmem:[%s7106_s15 + $0x4b0] sm:$0xff] %v4227_v51  ;;  %v4257_v32 = vld [vmem:[%s5910_s27 + $0x2d0] sm:$0xff]  ;;  %v4259_v6 = vld [vmem:[%s5910_s27 + $0x2d8] sm:$0xff] }
 0x2ef   : > { %4230 = vst [vmem:[%s7106_s15 + $0x4c0] sm:$0xff] %v4229_v17  ;;  %4232 = vst [vmem:[%s7106_s15 + $0x4d0] sm:$0xff] %v4231_v27  ;;  %v4261_v19 = vld [vmem:[%s5910_s27 + $0x2e0] sm:$0xff]  ;;  %v4263_v22 = vld [vmem:[%s5910_s27 + $0x2e8] sm:$0xff] }
 0x2f0   : > { %4234 = vst [vmem:[%s7106_s15 + $0x4e0] sm:$0xff] %v4233_v30  ;;  %4236 = vst [vmem:[%s7106_s15 + $0x4f0] sm:$0xff] %v4235_v20  ;;  %v4265_v61 = vld [vmem:[%s5910_s27 + $0x2f0] sm:$0xff]  ;;  %v4267_v48 = vld [vmem:[%s5910_s27 + $0x2f8] sm:$0xff] }
 0x2f1   : > { %4238 = vst [vmem:[%s7106_s15 + $0x500] sm:$0xff] %v4237_v49  ;;  %4240 = vst [vmem:[%s7106_s15 + $0x510] sm:$0xff] %v4239_v9  ;;  %v4269_v34 = vld [vmem:[%s5910_s27 + $0x300] sm:$0xff]  ;;  %v4271_v11 = vld [vmem:[%s5910_s27 + $0x308] sm:$0xff] }
 0x2f2   : > { %4242 = vst [vmem:[%s7106_s15 + $0x520] sm:$0xff] %v4241_v12  ;;  %4244 = vst [vmem:[%s7106_s15 + $0x530] sm:$0xff] %v4243_v43  ;;  %v4273_v14 = vld [vmem:[%s5910_s27 + $0x310] sm:$0xff]  ;;  %v4275_v39 = vld [vmem:[%s5910_s27 + $0x318] sm:$0xff] }
 0x2f3   : > { %4246 = vst [vmem:[%s7106_s15 + $0x540] sm:$0xff] %v4245_v45  ;;  %4248 = vst [vmem:[%s7106_s15 + $0x550] sm:$0xff] %v4247_v46  ;;  %v4277_v54 = vld [vmem:[%s5910_s27 + $0x320] sm:$0xff]  ;;  %v4279_v63 = vld [vmem:[%s5910_s27 + $0x328] sm:$0xff] }
 0x2f4   : > { %4250 = vst [vmem:[%s7106_s15 + $0x560] sm:$0xff] %v4249_v47  ;;  %4252 = vst [vmem:[%s7106_s15 + $0x570] sm:$0xff] %v4251_v56  ;;  %v4281_v31 = vld [vmem:[%s5910_s27 + $0x330] sm:$0xff]  ;;  %v4283_v53 = vld [vmem:[%s5910_s27 + $0x338] sm:$0xff] }
 0x2f5   : > { %4254 = vst [vmem:[%s7106_s15 + $0x580] sm:$0xff] %v4253_v3  ;;  %4256 = vst [vmem:[%s7106_s15 + $0x590] sm:$0xff] %v4255_v29  ;;  %v4285_v57 = vld [vmem:[%s5910_s27 + $0x340] sm:$0xff]  ;;  %v4287_v21 = vld [vmem:[%s5910_s27 + $0x348] sm:$0xff] }
 0x2f6   : > { %4258 = vst [vmem:[%s7106_s15 + $0x5a0] sm:$0xff] %v4257_v32  ;;  %4260 = vst [vmem:[%s7106_s15 + $0x5b0] sm:$0xff] %v4259_v6  ;;  %v4289_v24 = vld [vmem:[%s5910_s27 + $0x350] sm:$0xff]  ;;  %v4291_v38 = vld [vmem:[%s5910_s27 + $0x358] sm:$0xff] }
 0x2f7   : > { %4262 = vst [vmem:[%s7106_s15 + $0x5c0] sm:$0xff] %v4261_v19  ;;  %4264 = vst [vmem:[%s7106_s15 + $0x5d0] sm:$0xff] %v4263_v22  ;;  %v4293_v37 = vld [vmem:[%s5910_s27 + $0x360] sm:$0xff]  ;;  %v4295_v5 = vld [vmem:[%s5910_s27 + $0x368] sm:$0xff] }
 0x2f8   : > { %4266 = vst [vmem:[%s7106_s15 + $0x5e0] sm:$0xff] %v4265_v61  ;;  %4268 = vst [vmem:[%s7106_s15 + $0x5f0] sm:$0xff] %v4267_v48  ;;  %v4297_v8 = vld [vmem:[%s5910_s27 + $0x370] sm:$0xff]  ;;  %v4299_v40 = vld [vmem:[%s5910_s27 + $0x378] sm:$0xff] }
 0x2f9   : > { %4270 = vst [vmem:[%s7106_s15 + $0x600] sm:$0xff] %v4269_v34  ;;  %4272 = vst [vmem:[%s7106_s15 + $0x610] sm:$0xff] %v4271_v11  ;;  %v4301_v13 = vld [vmem:[%s5910_s27 + $0x380] sm:$0xff]  ;;  %v4303_v16 = vld [vmem:[%s5910_s27 + $0x388] sm:$0xff] }
 0x2fa   : > { %4274 = vst [vmem:[%s7106_s15 + $0x620] sm:$0xff] %v4273_v14  ;;  %4276 = vst [vmem:[%s7106_s15 + $0x630] sm:$0xff] %v4275_v39  ;;  %v4305_v59 = vld [vmem:[%s5910_s27 + $0x390] sm:$0xff]  ;;  %v4307_v4 = vld [vmem:[%s5910_s27 + $0x398] sm:$0xff] }
 0x2fb   : > { %4278 = vst [vmem:[%s7106_s15 + $0x640] sm:$0xff] %v4277_v54  ;;  %4280 = vst [vmem:[%s7106_s15 + $0x650] sm:$0xff] %v4279_v63  ;;  %v4309_v42 = vld [vmem:[%s5910_s27 + $0x3a0] sm:$0xff]  ;;  %v4311_v23 = vld [vmem:[%s5910_s27 + $0x3a8] sm:$0xff] }
 0x2fc   : > { %4282 = vst [vmem:[%s7106_s15 + $0x660] sm:$0xff] %v4281_v31  ;;  %4284 = vst [vmem:[%s7106_s15 + $0x670] sm:$0xff] %v4283_v53  ;;  %v4313_v26 = vld [vmem:[%s5910_s27 + $0x3b0] sm:$0xff]  ;;  %v4315_v50 = vld [vmem:[%s5910_s27 + $0x3b8] sm:$0xff] }
 0x2fd   : > { %4286 = vst [vmem:[%s7106_s15 + $0x680] sm:$0xff] %v4285_v57  ;;  %4288 = vst [vmem:[%s7106_s15 + $0x690] sm:$0xff] %v4287_v21  ;;  %v4317_v33 = vld [vmem:[%s5910_s27 + $0x3c0] sm:$0xff]  ;;  %v4319_v36 = vld [vmem:[%s5910_s27 + $0x3c8] sm:$0xff] }
 0x2fe   : > { %4290 = vst [vmem:[%s7106_s15 + $0x6a0] sm:$0xff] %v4289_v24  ;;  %4292 = vst [vmem:[%s7106_s15 + $0x6b0] sm:$0xff] %v4291_v38  ;;  %v4321_v55 = vld [vmem:[%s5910_s27 + $0x3d0] sm:$0xff]  ;;  %v4323_v44 = vld [vmem:[%s5910_s27 + $0x3d8] sm:$0xff] }
 0x2ff   : > { %4294 = vst [vmem:[%s7106_s15 + $0x6c0] sm:$0xff] %v4293_v37  ;;  %4296 = vst [vmem:[%s7106_s15 + $0x6d0] sm:$0xff] %v4295_v5  ;;  %v4325_v41 = vld [vmem:[%s5910_s27 + $0x3e0] sm:$0xff]  ;;  %v4327_v7 = vld [vmem:[%s5910_s27 + $0x3e8] sm:$0xff] }
 0x300   : > { %4298 = vst [vmem:[%s7106_s15 + $0x6e0] sm:$0xff] %v4297_v8  ;;  %4300 = vst [vmem:[%s7106_s15 + $0x6f0] sm:$0xff] %v4299_v40  ;;  %v4329_v15 = vld [vmem:[%s5910_s27 + $0x3f0] sm:$0xff]  ;;  %v4331_v18 = vld [vmem:[%s5910_s27 + $0x3f8] sm:$0xff] }
 0x301   : > { %4302 = vst [vmem:[%s7106_s15 + $0x700] sm:$0xff] %v4301_v13  ;;  %4304 = vst [vmem:[%s7106_s15 + $0x710] sm:$0xff] %v4303_v16 }
 0x302   : > { %4306 = vst [vmem:[%s7106_s15 + $0x720] sm:$0xff] %v4305_v59  ;;  %4308 = vst [vmem:[%s7106_s15 + $0x730] sm:$0xff] %v4307_v4 }
 0x303   : > { %4310 = vst [vmem:[%s7106_s15 + $0x740] sm:$0xff] %v4309_v42  ;;  %4312 = vst [vmem:[%s7106_s15 + $0x750] sm:$0xff] %v4311_v23 }
 0x304   : > { %4314 = vst [vmem:[%s7106_s15 + $0x760] sm:$0xff] %v4313_v26  ;;  %4316 = vst [vmem:[%s7106_s15 + $0x770] sm:$0xff] %v4315_v50 }
 0x305   : > { %4318 = vst [vmem:[%s7106_s15 + $0x780] sm:$0xff] %v4317_v33  ;;  %4320 = vst [vmem:[%s7106_s15 + $0x790] sm:$0xff] %v4319_v36 }
 0x306   : > { %4322 = vst [vmem:[%s7106_s15 + $0x7a0] sm:$0xff] %v4321_v55  ;;  %4324 = vst [vmem:[%s7106_s15 + $0x7b0] sm:$0xff] %v4323_v44 }
 0x307   : > { %4326 = vst [vmem:[%s7106_s15 + $0x7c0] sm:$0xff] %v4325_v41  ;;  %4328 = vst [vmem:[%s7106_s15 + $0x7d0] sm:$0xff] %v4327_v7 }
 0x308   : > { %4330 = vst [vmem:[%s7106_s15 + $0x7e0] sm:$0xff] %v4329_v15  ;;  %4332 = vst [vmem:[%s7106_s15 + $0x7f0] sm:$0xff] %v4331_v18 }
 0x309 PF: > { %s12_s13 = sadd.s32 1, %s4801_s13   ;;  %s7686_s9 = smov %s4789_s10 }
 0x30a   : > { %p9_p11 = scmp.ge.s32.totalorder %s12_s13, 4   ;;  %s7687_s10 = smov %s4860_s19 }
 0x30b   : > { %s7688_s11 = smov %s4797_s12  ;;  %s7689_s12 = smov %s7691_s14 }
 0x30c   :  { %11 = sbr.rel (!%p9_p11) target bundleno = 3 (0x3), region = 142 }

</bundles_post_ra>
